<compile_context>
chip_gen: v6e
topology: v6e:2x2x1
jax: 0.10.0
libtpu: 0.0.40
codegen_flags: <defaults>
</compile_context>

<pallas_src>
import functools

import jax
import jax.numpy as jnp
from jax.experimental import pallas as pl
from jax.experimental.pallas import tpu as pltpu

BN_EPS = 1e-5


def _round_up(n, m):
    return ((n + m - 1) // m) * m


def _pad_axis(x, axis, target):
    pad = target - x.shape[axis]
    if pad <= 0:
        return x
    widths = [(0, 0)] * x.ndim
    widths[axis] = (0, pad)
    return jnp.pad(x, widths)


def _fold_bn(w, b, gamma, beta, mean, var):
    """Fold an eval-mode BatchNorm1d into the preceding Linear (bit-identical)."""
    s = gamma * jax.lax.rsqrt(var + BN_EPS)          # [1, out]
    return w * s, s * (b - mean) + beta


# --------------------------------------------------------------------------
# Fused kernel: num_layers x GIN layer + JK 'sum' + mean pool + FC head
# --------------------------------------------------------------------------
def drugnet_fused_kernel(num_layers,
                         eps_ref,                                    # SMEM f32[L]
                         h0_ref, eemb_ref, gsrc_ref, sdst_ref,
                         w1_ref, b1_ref, w2_ref, b2_ref, pool_ref,
                         fw1_ref, fb1_ref, fw2_ref, fb2_ref,
                         fw3_ref, fb3_ref, fw4_ref, fb4_ref,
                         out_ref):
    h = h0_ref[...]                                  # [N, Dp]   f32 node features
    jk = h                                           # JK='sum' accumulator (VMEM-resident)
    gsrc = gsrc_ref[...]                             # [E, N]    bf16 one-hot gather
    sdst = sdst_ref[...]                             # [N, E]    bf16 one-hot scatter-add
    w1 = w1_ref[...]                                 # [Dp, H1p] bf16 (BN1 folded in)
    b1 = b1_ref[...]                                 # [1, H1p]  f32

    for layer in range(num_layers):                  # static unroll (num_layers is small)
        # message: relu(x[src] + edge_emb)  -- gather as bf16 MXU matmul
        x_src = jnp.dot(gsrc, h.astype(jnp.bfloat16),
                        preferred_element_type=jnp.float32)               # [E, Dp]
        msg = jnp.maximum(x_src + eemb_ref[layer], 0.0)
        # aggregate (aggr='add'): scatter-add onto destination nodes
        aggr = jnp.dot(sdst, msg.astype(jnp.bfloat16),
                       preferred_element_type=jnp.float32)                # [N, Dp]

        # GIN update: mlp((1 + eps) * x + aggr); BN folded into the linears
        z = (1.0 + eps_ref[layer]) * h + aggr
        t = jnp.dot(z.astype(jnp.bfloat16), w1,
                    preferred_element_type=jnp.float32) + b1              # Linear(D,2D)+BN(2D)
        t = jnp.maximum(t, 0.0)
        h = jnp.dot(t.astype(jnp.bfloat16), w2_ref[layer],
                    preferred_element_type=jnp.float32) + b2_ref[layer]   # Linear(2D,D)+BN_layer(D)
        if layer < num_layers - 1:                   # static relu gate; dropout = identity (eval)
            h = jnp.maximum(h, 0.0)
        jk = jk + h

    # global_mean_pool expressed as a [G, N] averaging-matrix matmul
    g = jnp.dot(pool_ref[...], jk, preferred_element_type=jnp.float32)    # [G, Dp]

    # FC head: D -> 1024 -> 1024 -> 512 -> 1  (bf16 weights, f32 accum/elementwise)
    a = jnp.maximum(jnp.dot(g.astype(jnp.bfloat16), fw1_ref[...],
                            preferred_element_type=jnp.float32) + fb1_ref[...], 0.0)
    a = jnp.maximum(jnp.dot(a.astype(jnp.bfloat16), fw2_ref[...],
                            preferred_element_type=jnp.float32) + fb2_ref[...], 0.0)
    a = jnp.maximum(jnp.dot(a.astype(jnp.bfloat16), fw3_ref[...],
                            preferred_element_type=jnp.float32) + fb3_ref[...], 0.0)
    out_ref[...] = jnp.dot(a, fw4_ref[...],
                           preferred_element_type=jnp.float32) + fb4_ref[...]


def _drugnet_pallas(eps_arr, h0, eemb, gsrc, sdst, w1, b1, w2, b2, pool,
                    fw1, fb1, fw2, fb2, fw3, fb3, fw4, fb4,
                    *, num_layers, num_graphs):
    smem = pl.BlockSpec(memory_space=pltpu.MemorySpace.SMEM)
    vmem = pl.BlockSpec(memory_space=pltpu.MemorySpace.VMEM)
    kernel = functools.partial(drugnet_fused_kernel, num_layers)
    return pl.pallas_call(
        kernel,
        out_shape=jax.ShapeDtypeStruct((num_graphs, 1), jnp.float32),
        in_specs=[smem] + [vmem] * 17,
        out_specs=vmem,
    )(eps_arr, h0, eemb, gsrc, sdst, w1, b1, w2, b2, pool,
      fw1, fb1, fw2, fb2, fw3, fb3, fw4, fb4)


# --------------------------------------------------------------------------
# Parameter construction (deterministic, synthetic; eval-mode BN stats)
# --------------------------------------------------------------------------
def init_params(key, emb_dim, num_layers,
                atom_feats, atom_vocab, bond_feats, bond_vocab):
    D = emb_dim
    keys = iter(jax.random.split(key, 128))

    def dense(shape, fan_in):
        return jax.random.normal(next(keys), shape, jnp.float32) / jnp.sqrt(fan_in)

    params = {}
    params["atom_tables"] = jax.random.normal(
        next(keys), (atom_feats, atom_vocab, D), jnp.float32) * 0.1
    # One BondEncoder per GINConv, as in the PyTorch module
    params["bond_tables"] = jax.random.normal(
        next(keys), (num_layers, bond_feats, bond_vocab, D), jnp.float32) * 0.1

    # Shared GIN mlp: Linear(D,2D) -> BN(2D) -> ReLU -> Linear(2D,D)
    params["mlp"] = dict(
        w1=dense((D, 2 * D), D),
        b1=dense((1, 2 * D), D),
        bn1_g=1.0 + 0.1 * jax.random.normal(next(keys), (1, 2 * D), jnp.float32),
        bn1_b=0.1 * jax.random.normal(next(keys), (1, 2 * D), jnp.float32),
        bn1_m=0.1 * jax.random.normal(next(keys), (1, 2 * D), jnp.float32),
        bn1_v=0.5 + jnp.abs(jax.random.normal(next(keys), (1, 2 * D), jnp.float32)),
        w2=dense((2 * D, D), 2 * D),
        b2=dense((1, D), 2 * D),
    )

    params["eps"] = jnp.zeros((num_layers,), jnp.float32)     # GINConv eps (init 0)

    params["bn_layers"] = []
    for _ in range(num_layers):
        params["bn_layers"].append(dict(
            g=1.0 + 0.1 * jax.random.normal(next(keys), (1, D), jnp.float32),
            b=0.1 * jax.random.normal(next(keys), (1, D), jnp.float32),
            m=0.1 * jax.random.normal(next(keys), (1, D), jnp.float32),
            v=0.5 + jnp.abs(jax.random.normal(next(keys), (1, D), jnp.float32)),
        ))

    # FC head: D -> 1024 -> 1024 -> 512 -> 1
    params["fc"] = (
        dense((D, 1024), D), dense((1, 1024), D),
        dense((1024, 1024), 1024), dense((1, 1024), 1024),
        dense((1024, 512), 1024), dense((1, 512), 1024),
        dense((512, 1), 512), dense((1, 1), 512),
    )
    return params


# --------------------------------------------------------------------------
# Full DrugNet forward (eval mode, JK='sum')
# --------------------------------------------------------------------------
def drugnet_forward(params, x_feats, edge_index, edge_attr, batch,
                    num_layers, num_graphs):
    D = params["atom_tables"].shape[-1]
    Dp = _round_up(D, 128)             # lane-dense node/edge feature width
    H1p = _round_up(2 * D, 128)        # lane-dense MLP hidden width
    N = x_feats.shape[0]

    # AtomEncoder: sum of per-feature embeddings (single vectorized gather)
    fa = x_feats.shape[1]
    h0 = jnp.sum(params["atom_tables"][jnp.arange(fa)[:, None], x_feats.T], axis=0)    # [N, D]

    # BondEncoder per layer: [L, E, D]
    fb = edge_attr.shape[1]
    eemb = jnp.sum(params["bond_tables"][:, jnp.arange(fb)[:, None], edge_attr.T], axis=1)

    # Dense gather / scatter matrices (bf16: one-hot values are exact)
    src, dst = edge_index[0], edge_index[1]
    gsrc = jax.nn.one_hot(src, N, dtype=jnp.bfloat16)        # [E, N]: x_j = gsrc @ x
    sdst = jax.nn.one_hot(dst, N, dtype=jnp.bfloat16).T      # [N, E]: scatter-add
    # TODO(synk): for large graphs, switch to index-driven gather/scatter via
    #             PrefetchScalarGridSpec instead of O(E*N) one-hot matrices.

    # global_mean_pool as a [G, N] averaging matrix (f32 for an exact mean)
    onehot = jax.nn.one_hot(batch, num_graphs, dtype=jnp.float32)   # [N, G]
    counts = jnp.maximum(onehot.sum(axis=0), 1.0)
    pool = (onehot / counts[None, :]).T                              # [G, N]

    # Fold eval-mode BatchNorms into the adjacent Linears
    m = params["mlp"]
    w1f, b1f = _fold_bn(m["w1"], m["b1"],
                        m["bn1_g"], m["bn1_b"], m["bn1_m"], m["bn1_v"])
    w2f_list, b2f_list = [], []
    for layer in range(num_layers):
        bn = params["bn_layers"][layer]
        w2f_l, b2f_l = _fold_bn(m["w2"], m["b2"], bn["g"], bn["b"], bn["m"], bn["v"])
        w2f_list.append(w2f_l)
        b2f_list.append(b2f_l)
    w2f = jnp.stack(w2f_list)            # [L, 2D, D]
    b2f = jnp.stack(b2f_list)            # [L, 1, D]

    # Lane-dense zero padding of the feature axes (preserves math exactly)
    h0p = _pad_axis(h0, 1, Dp)
    eembp = _pad_axis(eemb, 2, Dp)
    w1fp = _pad_axis(_pad_axis(w1f, 0, Dp), 1, H1p).astype(jnp.bfloat16)
    b1fp = _pad_axis(b1f, 1, H1p)
    w2fp = _pad_axis(_pad_axis(w2f, 1, H1p), 2, Dp).astype(jnp.bfloat16)
    b2fp = _pad_axis(b2f, 2, Dp)

    fw1, fb1, fw2, fb2, fw3, fb3, fw4, fb4 = params["fc"]
    fw1p = _pad_axis(fw1, 0, Dp).astype(jnp.bfloat16)
    fw2b = fw2.astype(jnp.bfloat16)
    fw3b = fw3.astype(jnp.bfloat16)

    out = _drugnet_pallas(params["eps"], h0p, eembp, gsrc, sdst,
                          w1fp, b1fp, w2fp, b2fp, pool,
                          fw1p, fb1, fw2b, fb2, fw3b, fb3, fw4, fb4,
                          num_layers=num_layers, num_graphs=num_graphs)   # [G, 1]
    return jnp.squeeze(out)


# --------------------------------------------------------------------------
if __name__ == "__main__":
    emb_dim = 32
    num_layers = 3
    N = 16          # nodes
    E = 32          # edges
    G = 2           # graphs in batch
    ATOM_FEATS, ATOM_VOCAB = 3, 16
    BOND_FEATS, BOND_VOCAB = 2, 8

    key = jax.random.PRNGKey(0)
    k_par, k_x, k_src, k_dst, k_ea = jax.random.split(key, 5)

    params = init_params(k_par, emb_dim, num_layers,
                         ATOM_FEATS, ATOM_VOCAB, BOND_FEATS, BOND_VOCAB)

    x_feats = jax.random.randint(k_x, (N, ATOM_FEATS), 0, ATOM_VOCAB, dtype=jnp.int32)
    src = jax.random.randint(k_src, (E,), 0, N, dtype=jnp.int32)
    dst = jax.random.randint(k_dst, (E,), 0, N, dtype=jnp.int32)
    edge_index = jnp.stack([src, dst], axis=0)                       # [2, E]
    edge_attr = jax.random.randint(k_ea, (E, BOND_FEATS), 0, BOND_VOCAB, dtype=jnp.int32)
    batch = jnp.concatenate([jnp.zeros((N // 2,), jnp.int32),
                             jnp.ones((N - N // 2,), jnp.int32)])    # [N]

    out = drugnet_forward(params, x_feats, edge_index, edge_attr, batch,
                          num_layers, G)
    out = jax.block_until_ready(out)
    assert out.shape == (G,)
    assert bool(jnp.all(jnp.isfinite(out)))
    print("KERNEL_OK")
</pallas_src>

<mosaic_0001>
module attributes {stable_mosaic.version = 11 : i64} {
  func.func @drugnet_fused_kernel(%arg0: memref<3xf32, #tpu.memory_space<smem>>, %arg1: memref<16x128xf32, #tpu.memory_space<vmem>>, %arg2: memref<3x32x128xf32, #tpu.memory_space<vmem>>, %arg3: memref<32x16xbf16, #tpu.memory_space<vmem>>, %arg4: memref<16x32xbf16, #tpu.memory_space<vmem>>, %arg5: memref<128x128xbf16, #tpu.memory_space<vmem>>, %arg6: memref<1x128xf32, #tpu.memory_space<vmem>>, %arg7: memref<3x128x128xbf16, #tpu.memory_space<vmem>>, %arg8: memref<3x1x128xf32, #tpu.memory_space<vmem>>, %arg9: memref<2x16xf32, #tpu.memory_space<vmem>>, %arg10: memref<128x1024xbf16, #tpu.memory_space<vmem>>, %arg11: memref<1x1024xf32, #tpu.memory_space<vmem>>, %arg12: memref<1024x1024xbf16, #tpu.memory_space<vmem>>, %arg13: memref<1x1024xf32, #tpu.memory_space<vmem>>, %arg14: memref<1024x512xbf16, #tpu.memory_space<vmem>>, %arg15: memref<1x512xf32, #tpu.memory_space<vmem>>, %arg16: memref<512x1xf32, #tpu.memory_space<vmem>>, %arg17: memref<1x1xf32, #tpu.memory_space<vmem>>, %arg18: memref<2x1xf32, #tpu.memory_space<vmem>>) attributes {dimension_semantics = [], scalar_prefetch = 0 : i64, scratch_operands = 0 : i64, tpu.core_type = #tpu.core_type<tc>} {
    %c0 = arith.constant 0 : index
    %c0_0 = arith.constant 0 : index
    %0 = vector.load %arg1[%c0, %c0_0] : memref<16x128xf32, #tpu.memory_space<vmem>>, vector<16x128xf32>
    %c0_1 = arith.constant 0 : index
    %c0_2 = arith.constant 0 : index
    %1 = vector.load %arg3[%c0_1, %c0_2] : memref<32x16xbf16, #tpu.memory_space<vmem>>, vector<32x16xbf16>
    %c0_3 = arith.constant 0 : index
    %c0_4 = arith.constant 0 : index
    %2 = vector.load %arg4[%c0_3, %c0_4] : memref<16x32xbf16, #tpu.memory_space<vmem>>, vector<16x32xbf16>
    %c0_5 = arith.constant 0 : index
    %c0_6 = arith.constant 0 : index
    %3 = vector.load %arg5[%c0_5, %c0_6] : memref<128x128xbf16, #tpu.memory_space<vmem>>, vector<128x128xbf16>
    %c0_7 = arith.constant 0 : index
    %c0_8 = arith.constant 0 : index
    %4 = vector.load %arg6[%c0_7, %c0_8] : memref<1x128xf32, #tpu.memory_space<vmem>>, vector<1x128xf32>
    %5 = arith.truncf %0 : vector<16x128xf32> to vector<16x128xbf16>
    %cst = arith.constant dense<0.000000e+00> : vector<32x128xf32>
    %6 = tpu.matmul %1, %5, %cst {dimension_numbers = #tpu.dot_dimension_numbers<[1], [0], [0], [1], [0, 0, 1, 1], [], []>} : vector<32x16xbf16>, vector<16x128xbf16>, vector<32x128xf32> -> vector<32x128xf32>
    %c0_9 = arith.constant 0 : index
    %c0_10 = arith.constant 0 : index
    %c0_11 = arith.constant 0 : index
    %7 = vector.load %arg2[%c0_9, %c0_10, %c0_11] : memref<3x32x128xf32, #tpu.memory_space<vmem>>, vector<1x32x128xf32>
    %8 = vector.shape_cast %7 : vector<1x32x128xf32> to vector<32x128xf32>
    %9 = arith.addf %6, %8 : vector<32x128xf32>
    %cst_12 = arith.constant 0.000000e+00 : f32
    %10 = vector.broadcast %cst_12 : f32 to vector<32x128xf32>
    %11 = arith.maximumf %9, %10 : vector<32x128xf32>
    %12 = arith.truncf %11 : vector<32x128xf32> to vector<32x128xbf16>
    %cst_13 = arith.constant dense<0.000000e+00> : vector<16x128xf32>
    %13 = tpu.matmul %2, %12, %cst_13 {dimension_numbers = #tpu.dot_dimension_numbers<[1], [0], [0], [1], [0, 0, 1, 1], [], []>} : vector<16x32xbf16>, vector<32x128xbf16>, vector<16x128xf32> -> vector<16x128xf32>
    %c0_14 = arith.constant 0 : index
    %14 = memref.load %arg0[%c0_14] : memref<3xf32, #tpu.memory_space<smem>>
    %cst_15 = arith.constant 1.000000e+00 : f32
    %15 = arith.addf %cst_15, %14 : f32
    %16 = vector.broadcast %15 : f32 to vector<16x128xf32>
    %17 = arith.mulf %16, %0 : vector<16x128xf32>
    %18 = arith.addf %17, %13 : vector<16x128xf32>
    %19 = arith.truncf %18 : vector<16x128xf32> to vector<16x128xbf16>
    %cst_16 = arith.constant dense<0.000000e+00> : vector<16x128xf32>
    %20 = tpu.matmul %19, %3, %cst_16 {dimension_numbers = #tpu.dot_dimension_numbers<[1], [0], [0], [1], [0, 0, 1, 1], [], []>} : vector<16x128xbf16>, vector<128x128xbf16>, vector<16x128xf32> -> vector<16x128xf32>
    %21 = vector.broadcast %4 : vector<1x128xf32> to vector<16x128xf32>
    %22 = arith.addf %20, %21 : vector<16x128xf32>
    %cst_17 = arith.constant 0.000000e+00 : f32
    %23 = vector.broadcast %cst_17 : f32 to vector<16x128xf32>
    %24 = arith.maximumf %22, %23 : vector<16x128xf32>
    %25 = arith.truncf %24 : vector<16x128xf32> to vector<16x128xbf16>
    %c0_18 = arith.constant 0 : index
    %c0_19 = arith.constant 0 : index
    %c0_20 = arith.constant 0 : index
    %26 = vector.load %arg7[%c0_18, %c0_19, %c0_20] : memref<3x128x128xbf16, #tpu.memory_space<vmem>>, vector<1x128x128xbf16>
    %27 = vector.shape_cast %26 : vector<1x128x128xbf16> to vector<128x128xbf16>
    %cst_21 = arith.constant dense<0.000000e+00> : vector<16x128xf32>
    %28 = tpu.matmul %25, %27, %cst_21 {dimension_numbers = #tpu.dot_dimension_numbers<[1], [0], [0], [1], [0, 0, 1, 1], [], []>} : vector<16x128xbf16>, vector<128x128xbf16>, vector<16x128xf32> -> vector<16x128xf32>
    %c0_22 = arith.constant 0 : index
    %c0_23 = arith.constant 0 : index
    %c0_24 = arith.constant 0 : index
    %29 = vector.load %arg8[%c0_22, %c0_23, %c0_24] : memref<3x1x128xf32, #tpu.memory_space<vmem>>, vector<1x1x128xf32>
    %30 = vector.shape_cast %29 : vector<1x1x128xf32> to vector<1x128xf32>
    %31 = vector.broadcast %30 : vector<1x128xf32> to vector<16x128xf32>
    %32 = arith.addf %28, %31 : vector<16x128xf32>
    %cst_25 = arith.constant 0.000000e+00 : f32
    %33 = vector.broadcast %cst_25 : f32 to vector<16x128xf32>
    %34 = arith.maximumf %32, %33 : vector<16x128xf32>
    %35 = arith.addf %0, %34 : vector<16x128xf32>
    %36 = arith.truncf %34 : vector<16x128xf32> to vector<16x128xbf16>
    %cst_26 = arith.constant dense<0.000000e+00> : vector<32x128xf32>
    %37 = tpu.matmul %1, %36, %cst_26 {dimension_numbers = #tpu.dot_dimension_numbers<[1], [0], [0], [1], [0, 0, 1, 1], [], []>} : vector<32x16xbf16>, vector<16x128xbf16>, vector<32x128xf32> -> vector<32x128xf32>
    %c1 = arith.constant 1 : index
    %c0_27 = arith.constant 0 : index
    %c0_28 = arith.constant 0 : index
    %38 = vector.load %arg2[%c1, %c0_27, %c0_28] : memref<3x32x128xf32, #tpu.memory_space<vmem>>, vector<1x32x128xf32>
    %39 = vector.shape_cast %38 : vector<1x32x128xf32> to vector<32x128xf32>
    %40 = arith.addf %37, %39 : vector<32x128xf32>
    %cst_29 = arith.constant 0.000000e+00 : f32
    %41 = vector.broadcast %cst_29 : f32 to vector<32x128xf32>
    %42 = arith.maximumf %40, %41 : vector<32x128xf32>
    %43 = arith.truncf %42 : vector<32x128xf32> to vector<32x128xbf16>
    %cst_30 = arith.constant dense<0.000000e+00> : vector<16x128xf32>
    %44 = tpu.matmul %2, %43, %cst_30 {dimension_numbers = #tpu.dot_dimension_numbers<[1], [0], [0], [1], [0, 0, 1, 1], [], []>} : vector<16x32xbf16>, vector<32x128xbf16>, vector<16x128xf32> -> vector<16x128xf32>
    %c1_31 = arith.constant 1 : index
    %45 = memref.load %arg0[%c1_31] : memref<3xf32, #tpu.memory_space<smem>>
    %cst_32 = arith.constant 1.000000e+00 : f32
    %46 = arith.addf %cst_32, %45 : f32
    %47 = vector.broadcast %46 : f32 to vector<16x128xf32>
    %48 = arith.mulf %47, %34 : vector<16x128xf32>
    %49 = arith.addf %48, %44 : vector<16x128xf32>
    %50 = arith.truncf %49 : vector<16x128xf32> to vector<16x128xbf16>
    %cst_33 = arith.constant dense<0.000000e+00> : vector<16x128xf32>
    %51 = tpu.matmul %50, %3, %cst_33 {dimension_numbers = #tpu.dot_dimension_numbers<[1], [0], [0], [1], [0, 0, 1, 1], [], []>} : vector<16x128xbf16>, vector<128x128xbf16>, vector<16x128xf32> -> vector<16x128xf32>
    %52 = vector.broadcast %4 : vector<1x128xf32> to vector<16x128xf32>
    %53 = arith.addf %51, %52 : vector<16x128xf32>
    %cst_34 = arith.constant 0.000000e+00 : f32
    %54 = vector.broadcast %cst_34 : f32 to vector<16x128xf32>
    %55 = arith.maximumf %53, %54 : vector<16x128xf32>
    %56 = arith.truncf %55 : vector<16x128xf32> to vector<16x128xbf16>
    %c1_35 = arith.constant 1 : index
    %c0_36 = arith.constant 0 : index
    %c0_37 = arith.constant 0 : index
    %57 = vector.load %arg7[%c1_35, %c0_36, %c0_37] : memref<3x128x128xbf16, #tpu.memory_space<vmem>>, vector<1x128x128xbf16>
    %58 = vector.shape_cast %57 : vector<1x128x128xbf16> to vector<128x128xbf16>
    %cst_38 = arith.constant dense<0.000000e+00> : vector<16x128xf32>
    %59 = tpu.matmul %56, %58, %cst_38 {dimension_numbers = #tpu.dot_dimension_numbers<[1], [0], [0], [1], [0, 0, 1, 1], [], []>} : vector<16x128xbf16>, vector<128x128xbf16>, vector<16x128xf32> -> vector<16x128xf32>
    %c1_39 = arith.constant 1 : index
    %c0_40 = arith.constant 0 : index
    %c0_41 = arith.constant 0 : index
    %60 = vector.load %arg8[%c1_39, %c0_40, %c0_41] : memref<3x1x128xf32, #tpu.memory_space<vmem>>, vector<1x1x128xf32>
    %61 = vector.shape_cast %60 : vector<1x1x128xf32> to vector<1x128xf32>
    %62 = vector.broadcast %61 : vector<1x128xf32> to vector<16x128xf32>
    %63 = arith.addf %59, %62 : vector<16x128xf32>
    %cst_42 = arith.constant 0.000000e+00 : f32
    %64 = vector.broadcast %cst_42 : f32 to vector<16x128xf32>
    %65 = arith.maximumf %63, %64 : vector<16x128xf32>
    %66 = arith.addf %35, %65 : vector<16x128xf32>
    %67 = arith.truncf %65 : vector<16x128xf32> to vector<16x128xbf16>
    %cst_43 = arith.constant dense<0.000000e+00> : vector<32x128xf32>
    %68 = tpu.matmul %1, %67, %cst_43 {dimension_numbers = #tpu.dot_dimension_numbers<[1], [0], [0], [1], [0, 0, 1, 1], [], []>} : vector<32x16xbf16>, vector<16x128xbf16>, vector<32x128xf32> -> vector<32x128xf32>
    %c2 = arith.constant 2 : index
    %c0_44 = arith.constant 0 : index
    %c0_45 = arith.constant 0 : index
    %69 = vector.load %arg2[%c2, %c0_44, %c0_45] : memref<3x32x128xf32, #tpu.memory_space<vmem>>, vector<1x32x128xf32>
    %70 = vector.shape_cast %69 : vector<1x32x128xf32> to vector<32x128xf32>
    %71 = arith.addf %68, %70 : vector<32x128xf32>
    %cst_46 = arith.constant 0.000000e+00 : f32
    %72 = vector.broadcast %cst_46 : f32 to vector<32x128xf32>
    %73 = arith.maximumf %71, %72 : vector<32x128xf32>
    %74 = arith.truncf %73 : vector<32x128xf32> to vector<32x128xbf16>
    %cst_47 = arith.constant dense<0.000000e+00> : vector<16x128xf32>
    %75 = tpu.matmul %2, %74, %cst_47 {dimension_numbers = #tpu.dot_dimension_numbers<[1], [0], [0], [1], [0, 0, 1, 1], [], []>} : vector<16x32xbf16>, vector<32x128xbf16>, vector<16x128xf32> -> vector<16x128xf32>
    %c2_48 = arith.constant 2 : index
    %76 = memref.load %arg0[%c2_48] : memref<3xf32, #tpu.memory_space<smem>>
    %cst_49 = arith.constant 1.000000e+00 : f32
    %77 = arith.addf %cst_49, %76 : f32
    %78 = vector.broadcast %77 : f32 to vector<16x128xf32>
    %79 = arith.mulf %78, %65 : vector<16x128xf32>
    %80 = arith.addf %79, %75 : vector<16x128xf32>
    %81 = arith.truncf %80 : vector<16x128xf32> to vector<16x128xbf16>
    %cst_50 = arith.constant dense<0.000000e+00> : vector<16x128xf32>
    %82 = tpu.matmul %81, %3, %cst_50 {dimension_numbers = #tpu.dot_dimension_numbers<[1], [0], [0], [1], [0, 0, 1, 1], [], []>} : vector<16x128xbf16>, vector<128x128xbf16>, vector<16x128xf32> -> vector<16x128xf32>
    %83 = vector.broadcast %4 : vector<1x128xf32> to vector<16x128xf32>
    %84 = arith.addf %82, %83 : vector<16x128xf32>
    %cst_51 = arith.constant 0.000000e+00 : f32
    %85 = vector.broadcast %cst_51 : f32 to vector<16x128xf32>
    %86 = arith.maximumf %84, %85 : vector<16x128xf32>
    %87 = arith.truncf %86 : vector<16x128xf32> to vector<16x128xbf16>
    %c2_52 = arith.constant 2 : index
    %c0_53 = arith.constant 0 : index
    %c0_54 = arith.constant 0 : index
    %88 = vector.load %arg7[%c2_52, %c0_53, %c0_54] : memref<3x128x128xbf16, #tpu.memory_space<vmem>>, vector<1x128x128xbf16>
    %89 = vector.shape_cast %88 : vector<1x128x128xbf16> to vector<128x128xbf16>
    %cst_55 = arith.constant dense<0.000000e+00> : vector<16x128xf32>
    %90 = tpu.matmul %87, %89, %cst_55 {dimension_numbers = #tpu.dot_dimension_numbers<[1], [0], [0], [1], [0, 0, 1, 1], [], []>} : vector<16x128xbf16>, vector<128x128xbf16>, vector<16x128xf32> -> vector<16x128xf32>
    %c2_56 = arith.constant 2 : index
    %c0_57 = arith.constant 0 : index
    %c0_58 = arith.constant 0 : index
    %91 = vector.load %arg8[%c2_56, %c0_57, %c0_58] : memref<3x1x128xf32, #tpu.memory_space<vmem>>, vector<1x1x128xf32>
    %92 = vector.shape_cast %91 : vector<1x1x128xf32> to vector<1x128xf32>
    %93 = vector.broadcast %92 : vector<1x128xf32> to vector<16x128xf32>
    %94 = arith.addf %90, %93 : vector<16x128xf32>
    %95 = arith.addf %66, %94 : vector<16x128xf32>
    %c0_59 = arith.constant 0 : index
    %c0_60 = arith.constant 0 : index
    %96 = vector.load %arg9[%c0_59, %c0_60] : memref<2x16xf32, #tpu.memory_space<vmem>>, vector<2x16xf32>
    %cst_61 = arith.constant dense<0.000000e+00> : vector<2x128xf32>
    %97 = tpu.matmul %96, %95, %cst_61 {dimension_numbers = #tpu.dot_dimension_numbers<[1], [0], [0], [1], [0, 0, 1, 1], [], []>} : vector<2x16xf32>, vector<16x128xf32>, vector<2x128xf32> -> vector<2x128xf32>
    %98 = arith.truncf %97 : vector<2x128xf32> to vector<2x128xbf16>
    %c0_62 = arith.constant 0 : index
    %c0_63 = arith.constant 0 : index
    %99 = vector.load %arg10[%c0_62, %c0_63] : memref<128x1024xbf16, #tpu.memory_space<vmem>>, vector<128x1024xbf16>
    %cst_64 = arith.constant dense<0.000000e+00> : vector<2x1024xf32>
    %100 = tpu.matmul %98, %99, %cst_64 {dimension_numbers = #tpu.dot_dimension_numbers<[1], [0], [0], [1], [0, 0, 1, 1], [], []>} : vector<2x128xbf16>, vector<128x1024xbf16>, vector<2x1024xf32> -> vector<2x1024xf32>
    %c0_65 = arith.constant 0 : index
    %c0_66 = arith.constant 0 : index
    %101 = vector.load %arg11[%c0_65, %c0_66] : memref<1x1024xf32, #tpu.memory_space<vmem>>, vector<1x1024xf32>
    %102 = vector.broadcast %101 : vector<1x1024xf32> to vector<2x1024xf32>
    %103 = arith.addf %100, %102 : vector<2x1024xf32>
    %cst_67 = arith.constant 0.000000e+00 : f32
    %104 = vector.broadcast %cst_67 : f32 to vector<2x1024xf32>
    %105 = arith.maximumf %103, %104 : vector<2x1024xf32>
    %106 = arith.truncf %105 : vector<2x1024xf32> to vector<2x1024xbf16>
    %c0_68 = arith.constant 0 : index
    %c0_69 = arith.constant 0 : index
    %107 = vector.load %arg12[%c0_68, %c0_69] : memref<1024x1024xbf16, #tpu.memory_space<vmem>>, vector<1024x1024xbf16>
    %cst_70 = arith.constant dense<0.000000e+00> : vector<2x1024xf32>
    %108 = tpu.matmul %106, %107, %cst_70 {dimension_numbers = #tpu.dot_dimension_numbers<[1], [0], [0], [1], [0, 0, 1, 1], [], []>} : vector<2x1024xbf16>, vector<1024x1024xbf16>, vector<2x1024xf32> -> vector<2x1024xf32>
    %c0_71 = arith.constant 0 : index
    %c0_72 = arith.constant 0 : index
    %109 = vector.load %arg13[%c0_71, %c0_72] : memref<1x1024xf32, #tpu.memory_space<vmem>>, vector<1x1024xf32>
    %110 = vector.broadcast %109 : vector<1x1024xf32> to vector<2x1024xf32>
    %111 = arith.addf %108, %110 : vector<2x1024xf32>
    %cst_73 = arith.constant 0.000000e+00 : f32
    %112 = vector.broadcast %cst_73 : f32 to vector<2x1024xf32>
    %113 = arith.maximumf %111, %112 : vector<2x1024xf32>
    %114 = arith.truncf %113 : vector<2x1024xf32> to vector<2x1024xbf16>
    %c0_74 = arith.constant 0 : index
    %c0_75 = arith.constant 0 : index
    %115 = vector.load %arg14[%c0_74, %c0_75] : memref<1024x512xbf16, #tpu.memory_space<vmem>>, vector<1024x512xbf16>
    %cst_76 = arith.constant dense<0.000000e+00> : vector<2x512xf32>
    %116 = tpu.matmul %114, %115, %cst_76 {dimension_numbers = #tpu.dot_dimension_numbers<[1], [0], [0], [1], [0, 0, 1, 1], [], []>} : vector<2x1024xbf16>, vector<1024x512xbf16>, vector<2x512xf32> -> vector<2x512xf32>
    %c0_77 = arith.constant 0 : index
    %c0_78 = arith.constant 0 : index
    %117 = vector.load %arg15[%c0_77, %c0_78] : memref<1x512xf32, #tpu.memory_space<vmem>>, vector<1x512xf32>
    %118 = vector.broadcast %117 : vector<1x512xf32> to vector<2x512xf32>
    %119 = arith.addf %116, %118 : vector<2x512xf32>
    %cst_79 = arith.constant 0.000000e+00 : f32
    %120 = vector.broadcast %cst_79 : f32 to vector<2x512xf32>
    %121 = arith.maximumf %119, %120 : vector<2x512xf32>
    %c0_80 = arith.constant 0 : index
    %c0_81 = arith.constant 0 : index
    %122 = vector.load %arg16[%c0_80, %c0_81] : memref<512x1xf32, #tpu.memory_space<vmem>>, vector<512x1xf32>
    %cst_82 = arith.constant dense<0.000000e+00> : vector<2x1xf32>
    %123 = tpu.matmul %121, %122, %cst_82 {dimension_numbers = #tpu.dot_dimension_numbers<[1], [0], [0], [1], [0, 0, 1, 1], [], []>} : vector<2x512xf32>, vector<512x1xf32>, vector<2x1xf32> -> vector<2x1xf32>
    %c0_83 = arith.constant 0 : index
    %c0_84 = arith.constant 0 : index
    %124 = vector.load %arg17[%c0_83, %c0_84] : memref<1x1xf32, #tpu.memory_space<vmem>>, vector<1x1xf32>
    %125 = vector.broadcast %124 : vector<1x1xf32> to vector<2x1xf32>
    %126 = arith.addf %123, %125 : vector<2x1xf32>
    %c0_85 = arith.constant 0 : index
    %c0_86 = arith.constant 0 : index
    %127 = vector.load %arg18[%c0_85, %c0_86] : memref<2x1xf32, #tpu.memory_space<vmem>>, vector<2x1xf32>
    tpu.vector_store %arg18[%c0_85, %c0_86], %126 {strides = array<i32>} : memref<2x1xf32, #tpu.memory_space<vmem>>, vector<2x1xf32>,
    return
  }
}

</mosaic_0001>

<bundles_post_ra>
// kernel: tpu_custom_call.1
= control target key start
LH: loop header
LB: loop body
LE: loop exit
PB: predicated region body
PF: predicated region fallthrough
CT: control target
= control target key end

     0   :  { %s10537_s0 = inlined_call_operand.hbm [shape: f32[3], index: 0, kind: input, shape index: {}]   ;;  %s10538_s1 = inlined_call_operand.hbm [shape: f32[16,128], index: 1, kind: input, shape index: {}]   ;;  %s10539_s2 = inlined_call_operand.hbm [shape: f32[3,32,128], index: 2, kind: input, shape index: {}]   ;;  %s10540_s3 = inlined_call_operand.vmem [shape: bf16[32,16], index: 3, kind: input, shape index: {}]   ;;  %s10541_s4 = inlined_call_operand.hbm [shape: bf16[16,32], index: 4, kind: input, shape index: {}]   ;;  %s10542_s5 = inlined_call_operand.hbm [shape: bf16[128,128], index: 5, kind: input, shape index: {}]   ;;  %s10543_s6 = inlined_call_operand.hbm [shape: f32[1,128], index: 6, kind: input, shape index: {}]   ;;  %s10544_s7 = inlined_call_operand.hbm [shape: bf16[3,128,128], index: 7, kind: input, shape index: {}]   ;;  %s10545_s8 = inlined_call_operand.hbm [shape: f32[3,1,128], index: 8, kind: input, shape index: {}]   ;;  %s10546_s9 = inlined_call_operand.hbm [shape: f32[2,16], index: 9, kind: input, shape index: {}]   ;;  %s10547_s10 = inlined_call_operand.hbm [shape: bf16[128,1024], index: 10, kind: input, shape index: {}]   ;;  %s10548_s11 = inlined_call_operand.hbm [shape: f32[1,1024], index: 11, kind: input, shape index: {}]   ;;  %s10549_s12 = inlined_call_operand.hbm [shape: bf16[1024,1024], index: 12, kind: input, shape index: {}]   ;;  %s10550_s13 = inlined_call_operand.hbm [shape: f32[1,1024], index: 13, kind: input, shape index: {}]   ;;  %s10551_s14 = inlined_call_operand.hbm [shape: bf16[1024,512], index: 14, kind: input, shape index: {}]   ;;  %s10552_s15 = inlined_call_operand.hbm [shape: f32[1,512], index: 15, kind: input, shape index: {}]   ;;  %s10553_s16 = inlined_call_operand.vmem [shape: f32[512,1], index: 16, kind: input, shape index: {}]   ;;  %s10554_s17 = inlined_call_operand.<no memory space> [shape: f32[1,1], index: 17, kind: input, shape index: {}]   ;;  %s10555_s18 = inlined_call_operand.vmem [shape: f32[2,1], index: 18, kind: output, shape index: {}]  }
   0x1   :  { %10556 = sst [smem:[#allocation36_spill]] %s10537_s0  ;;  %v23_v0 = vstv %s10554_s17 }
   0x2   :  { %10557 = sst [smem:[#allocation37_spill]] %s10538_s1  ;;  %24 = vst [vmem:[#allocation2] sm:$0x1] %v23_v0 }
   0x3   :  { %10558 = sst [smem:[#allocation38_spill]] %s10539_s2 }
   0x4   :  { %25 = vsyncpa [#allocation5], 0 }
   0x5   :  { %26 = vsyncpa [#allocation4], 0 }
   0x6   :  { %27 = vsyncpa [#allocation8], 0 }
   0x7   :  { %28 = vsyncpa [#allocation11], 0 }
   0x8   :  { %29 = vsyncpa [#allocation14], 0 }
   0x9   :  { %30 = vsyncpa [#allocation17], 0 }
   0xa   :  { %31 = vsyncpa [#allocation20], 0 }
   0xb   :  { %32 = vsyncpa [#allocation23], 0 }
   0xc   :  { %33 = vsyncpa [#allocation26], 0  ;;  %s9707_s29 = smov [#allocation7]  }
   0xd   :  { %s59_s30 = sshll.u32 %s9707_s29, 4  ;;  %s60_s30 = int_to_ptr.vmem [resolvable:$true] %s59_s30 }
   0xe   :  { %s9409_s0 = scalar_lea.vmem %s60_s30, 1536  ;;  %p9414_p1 = scmp.lt.s32.totalorder %s60_s30, %s60_s30 }
   0xf   :  { %p9410_p0 = scmp.ne.s32.totalorder %s60_s30, %s9409_s0  ;;  %p9415_p2 = scmp.lt.s32.totalorder %s9409_s0, %s9409_s0 }
  0x11   :  { %p9416_p3 = por %p9415_p2, %p9414_p1 }
  0x13   :  { %p9417_p4 = pnand %p9416_p3, %p9410_p0 }
  0x15   :  { %9420 = shalt.err (!%p9417_p4)
}
  0x16   :  { %s9708_s17 = smov 128   ;;  %s9709_s19 = smov 8  }
  0x17   :  { %s10559_s21 = sld [smem:[#allocation38_spill]]  ;;  %s9710_s22 = smov [#allocation10]  }
  0x18   :  { %s85_s2 = sshll.u32 %s9710_s22, 4  ;;  %s9711_s23 = smov [#allocation13]   ;;  %s86_s2 = int_to_ptr.vmem [resolvable:$true] %s85_s2 }
  0x19   :  { %s107_s24 = sshll.u32 %s9711_s23, 4  ;;  %s9429_s25 = scalar_lea.vmem %s86_s2, 1024  ;;  %s108_s24 = int_to_ptr.vmem [resolvable:$true] %s107_s24 }
  0x1a   :  { %p9430_p5 = scmp.ne.s32.totalorder %s86_s2, %s9429_s25  ;;  %p9434_p6 = scmp.lt.s32.totalorder %s86_s2, %s86_s2 }
  0x1b   :  { %p9435_p7 = scmp.lt.s32.totalorder %s9429_s25, %s9429_s25 }
  0x1d   :  { %65 = dma.hbm_to_vmem [thread:$0]  %s10559_s21, 1536, %s60_s30, [#allocation8], %s9708_s17, %s9708_s17, %s9709_s19  }
  0x1e   :  { %p9436_p8 = por %p9435_p7, %p9434_p6 }
  0x20   :  { %p9437_p9 = pnand %p9436_p8, %p9430_p5 }
  0x22   :  { %9440 = shalt.err (!%p9437_p9)
}
  0x23   :  { %s9712_s26 = smov 64   ;;  %s9713_s27 = smov 4  }
  0x24   :  { %91 = dma.hbm_to_vmem [thread:$0]  %s10542_s5, 1024, %s86_s2, [#allocation11], %s9712_s26, %s9712_s26, %s9713_s27  }
  0x25   :  { %s9449_s30 = scalar_lea.vmem %s108_s24, 3072  ;;  %p9454_p11 = scmp.lt.s32.totalorder %s108_s24, %s108_s24 }
  0x26   :  { %p9450_p10 = scmp.ne.s32.totalorder %s108_s24, %s9449_s30  ;;  %p9455_p12 = scmp.lt.s32.totalorder %s9449_s30, %s9449_s30 }
  0x28   :  { %p9456_p13 = por %p9455_p12, %p9454_p11 }
  0x2a   :  { %p9457_p0 = pnand %p9456_p13, %p9450_p10 }
  0x2c   :  { %9460 = shalt.err (!%p9457_p0)
}
  0x2d   :  { %113 = dma.hbm_to_vmem [thread:$0]  %s10544_s7, 3072, %s108_s24, [#allocation14], %s9712_s26, %s9712_s26, %s9713_s27  }
  0x2e   :  { %s9714_s20 = smov [#allocation16]   ;;  %s9715_s22 = smov [#allocation19]  }
  0x2f   :  { %s132_s21 = sshll.u32 %s9714_s20, 4  ;;  %s154_s5 = sshll.u32 %s9715_s22, 4  ;;  %s133_s21 = int_to_ptr.vmem [resolvable:$true] %s132_s21  ;;  %s155_s5 = int_to_ptr.vmem [resolvable:$true] %s154_s5 }
  0x30   :  { %s9469_s2 = scalar_lea.vmem %s133_s21, 32  ;;  %p9474_p2 = scmp.lt.s32.totalorder %s133_s21, %s133_s21 }
  0x31   :  { %p9470_p1 = scmp.ne.s32.totalorder %s133_s21, %s9469_s2  ;;  %p9475_p3 = scmp.lt.s32.totalorder %s9469_s2, %s9469_s2 }
  0x33   :  { %p9476_p4 = por %p9475_p3, %p9474_p2 }
  0x35   :  { %p9477_p5 = pnand %p9476_p4, %p9470_p1 }
  0x37   :  { %9480 = shalt.err (!%p9477_p5)
}
  0x38   :  { %135 = dma.hbm_to_vmem [thread:$0]  %s10546_s9, 32, %s133_s21, [#allocation17]  }
  0x39   :  { %s9489_s28 = scalar_lea.vmem %s155_s5, 128  ;;  %p9494_p7 = scmp.lt.s32.totalorder %s155_s5, %s155_s5 }
  0x3a   :  { %p9490_p6 = scmp.ne.s32.totalorder %s155_s5, %s9489_s28  ;;  %p9495_p8 = scmp.lt.s32.totalorder %s9489_s28, %s9489_s28 }
  0x3c   :  { %p9496_p9 = por %p9495_p8, %p9494_p7 }
  0x3e   :  { %p9497_p10 = pnand %p9496_p9, %p9490_p6 }
  0x40   :  { %9500 = shalt.err (!%p9497_p10)
}
  0x41   :  { %157 = dma.hbm_to_vmem [thread:$0]  %s10548_s11, 128, %s155_s5, [#allocation20]  }
  0x42   :  { %s9716_s29 = smov [#allocation22]  }
  0x43   :  { %s176_s30 = sshll.u32 %s9716_s29, 4  ;;  %s177_s30 = int_to_ptr.vmem [resolvable:$true] %s176_s30 }
  0x44   :  { %s9509_s0 = scalar_lea.vmem %s177_s30, 128  ;;  %p9514_p12 = scmp.lt.s32.totalorder %s177_s30, %s177_s30 }
  0x45   :  { %p9510_p11 = scmp.ne.s32.totalorder %s177_s30, %s9509_s0  ;;  %p9515_p13 = scmp.lt.s32.totalorder %s9509_s0, %s9509_s0 }
  0x47   :  { %p9516_p0 = por %p9515_p13, %p9514_p12 }
  0x49   :  { %p9517_p1 = pnand %p9516_p0, %p9510_p11 }
  0x4b   :  { %9520 = shalt.err (!%p9517_p1)
}
  0x4c   :  { %179 = dma.hbm_to_vmem [thread:$0]  %s10550_s13, 128, %s177_s30, [#allocation23]  }
  0x4d   :  { %s9717_s20 = smov [#allocation3]   ;;  %s10560_s2 = sld [smem:[#allocation36_spill]] }
  0x4e   :  { %s9718_s11 = smov [#allocation6]   ;;  %s9719_s23 = smov [#allocation9]  }
  0x4f   :  { %s47_s5 = sshll.u32 %s9718_s11, 4  ;;  %s73_s25 = sshll.u32 %s9719_s23, 4  ;;  %s48_s5 = int_to_ptr.vmem [resolvable:$true] %s47_s5  ;;  %s74_s25 = int_to_ptr.vmem [resolvable:$true] %s73_s25 }
  0x50   :  { %s9537_s28 = scalar_lea.vmem %s48_s5, 256  ;;  %p9542_p3 = scmp.lt.s32.totalorder %s48_s5, %s48_s5 }
  0x51   :  { %p9538_p2 = scmp.ne.s32.totalorder %s48_s5, %s9537_s28  ;;  %p9543_p4 = scmp.lt.s32.totalorder %s9537_s28, %s9537_s28 }
  0x53   :  { %41 = dma.hbm_to_smem %s10560_s2, 16, %s9717_s20, [#allocation5]  }
  0x54   :  { %p9544_p5 = por %p9543_p4, %p9542_p3 }
  0x56   :  { %p9545_p6 = pnand %p9544_p5, %p9538_p2 }
  0x58   :  { %9548 = shalt.err (!%p9545_p6)
}
  0x59   :  { %s10561_s24 = sld [smem:[#allocation37_spill]]  ;;  %s9557_s29 = scalar_lea.vmem %s74_s25, 128 }
  0x5a   :  { %p9558_p7 = scmp.ne.s32.totalorder %s74_s25, %s9557_s29  ;;  %p9562_p8 = scmp.lt.s32.totalorder %s74_s25, %s74_s25 }
  0x5b   :  { %p9563_p9 = scmp.lt.s32.totalorder %s9557_s29, %s9557_s29 }
  0x5d   :  { %p9564_p10 = por %p9563_p9, %p9562_p8 }
  0x5f   :  { %53 = dma.hbm_to_vmem [thread:$0]  %s10561_s24, 256, %s48_s5, [#allocation4], %s9708_s17, %s9708_s17, %s9709_s19  }
  0x60   :  { %p9565_p11 = pnand %p9564_p10, %p9558_p7 }
  0x62   :  { %9568 = shalt.err (!%p9565_p11)
}
  0x63   :  { %79 = dma.hbm_to_vmem [thread:$0]  %s10541_s4, 128, %s74_s25, [#allocation8], %s9712_s26, %s9712_s26, %s9713_s27  }
  0x64   :  { %s9720_s9 = smov [#allocation12]   ;;  %s9721_s20 = smov [#allocation15]  }
  0x65   :  { %s98_s1 = sshll.u32 %s9720_s9, 4  ;;  %s119_s17 = sshll.u32 %s9721_s20, 4  ;;  %s99_s1 = int_to_ptr.vmem [resolvable:$true] %s98_s1  ;;  %s120_s17 = int_to_ptr.vmem [resolvable:$true] %s119_s17 }
  0x66   :  { %s9577_s19 = scalar_lea.vmem %s99_s1, 16  ;;  %s9581_s21 = scalar_lea.vmem %s99_s1, 32 }
  0x67   :  { %p9578_p12 = scmp.ne.s32.totalorder %s99_s1, %s9577_s19  ;;  %p9582_p13 = scmp.lt.s32.totalorder %s99_s1, %s99_s1 }
  0x68   :  { %p9583_p0 = scmp.lt.s32.totalorder %s9581_s21, %s9577_s19 }
  0x6a   :  { %p9584_p1 = por %p9583_p0, %p9582_p13 }
  0x6c   :  { %p9585_p2 = pnand %p9584_p1, %p9578_p12 }
  0x6e   :  { %9588 = shalt.err (!%p9585_p2)
}
  0x6f   :  { %101 = dma.hbm_to_vmem [thread:$0]  %s10543_s6, 16, %s99_s1, [#allocation11]  }
  0x70   :  { %s9597_s11 = scalar_lea.vmem %s120_s17, 48  ;;  %s9601_s4 = scalar_lea.vmem %s120_s17, 64 }
  0x71   :  { %p9598_p3 = scmp.ne.s32.totalorder %s120_s17, %s9597_s11  ;;  %p9602_p4 = scmp.lt.s32.totalorder %s120_s17, %s120_s17 }
  0x72   :  { %p9603_p5 = scmp.lt.s32.totalorder %s9601_s4, %s9597_s11 }
  0x74   :  { %p9604_p6 = por %p9603_p5, %p9602_p4 }
  0x76   :  { %p9605_p7 = pnand %p9604_p6, %p9598_p3 }
  0x78   :  { %9608 = shalt.err (!%p9605_p7)
}
  0x79   :  { %s9722_s26 = smov 16   ;;  %s9723_s27 = smov 1  }
  0x7a   :  { %125 = dma.hbm_to_vmem [thread:$0]  %s10545_s8, 48, %s120_s17, [#allocation14], %s9722_s26, %s9722_s26, %s9723_s27  }
  0x7b   :  { %s9724_s25 = smov [#allocation18]  }
  0x7c   :  { %s141_s28 = sshll.u32 %s9724_s25, 4  ;;  %s142_s28 = int_to_ptr.vmem [resolvable:$true] %s141_s28 }
  0x7d   :  { %s9617_s6 = scalar_lea.vmem %s142_s28, 8192  ;;  %p9622_p9 = scmp.lt.s32.totalorder %s142_s28, %s142_s28 }
  0x7e   :  { %p9618_p8 = scmp.ne.s32.totalorder %s142_s28, %s9617_s6  ;;  %p9623_p10 = scmp.lt.s32.totalorder %s9617_s6, %s9617_s6 }
  0x80   :  { %p9624_p11 = por %p9623_p10, %p9622_p9 }
  0x82   :  { %p9625_p12 = pnand %p9624_p11, %p9618_p8 }
  0x84   :  { %9628 = shalt.err (!%p9625_p12)
}
  0x85   :  { %s9725_s13 = smov 512   ;;  %s9726_s7 = smov 32  }
  0x86   :  { %147 = dma.hbm_to_vmem [thread:$0]  %s10547_s10, 8192, %s142_s28, [#allocation17], %s9725_s13, %s9725_s13, %s9726_s7  }
  0x87   :  { %s9727_s30 = smov [#allocation21]   ;;  %s9728_s9 = smov [#allocation24]  }
  0x88   :  { %s163_s0 = sshll.u32 %s9727_s30, 4  ;;  %s185_s8 = sshll.u32 %s9728_s9, 4  ;;  %s164_s0 = int_to_ptr.vmem [resolvable:$true] %s163_s0  ;;  %s186_s8 = int_to_ptr.vmem [resolvable:$true] %s185_s8 }
  0x89   :  { %s9637_s1 = scalar_lea.vmem %s164_s0, 65536  ;;  %p9642_p0 = scmp.lt.s32.totalorder %s164_s0, %s164_s0 }
  0x8a   :  { %p9638_p13 = scmp.ne.s32.totalorder %s164_s0, %s9637_s1  ;;  %p9643_p1 = scmp.lt.s32.totalorder %s9637_s1, %s9637_s1 }
  0x8c   :  { %p9644_p2 = por %p9643_p1, %p9642_p0 }
  0x8e   :  { %p9645_p3 = pnand %p9644_p2, %p9638_p13 }
  0x90   :  { %9648 = shalt.err (!%p9645_p3)
}
  0x91   :  { %169 = dma.hbm_to_vmem [thread:$0]  %s10549_s12, 65536, %s164_s0, [#allocation20], %s9725_s13, %s9725_s13, %s9726_s7  }
  0x92   :  { %s9657_s19 = scalar_lea.vmem %s186_s8, 32768  ;;  %p9662_p5 = scmp.lt.s32.totalorder %s186_s8, %s186_s8 }
  0x93   :  { %p9658_p4 = scmp.ne.s32.totalorder %s186_s8, %s9657_s19  ;;  %p9663_p6 = scmp.lt.s32.totalorder %s9657_s19, %s9657_s19 }
  0x95   :  { %p9664_p7 = por %p9663_p6, %p9662_p5 }
  0x97   :  { %p9665_p8 = pnand %p9664_p7, %p9658_p4 }
  0x99   :  { %9668 = shalt.err (!%p9665_p8)
}
  0x9a   :  { %s9729_s10 = smov 256   ;;  %s9730_s2 = smov [#allocation25]  }
  0x9b   :  { %191 = dma.hbm_to_vmem [thread:$0]  %s10551_s14, 32768, %s186_s8, [#allocation23], %s9729_s10, %s9729_s10, %s9722_s26  }
  0x9c   :  { %s198_s11 = sshll.u32 %s9730_s2, 4  ;;  %s199_s11 = int_to_ptr.vmem [resolvable:$true] %s198_s11 }
  0x9d   :  { %s9677_s4 = scalar_lea.vmem %s199_s11, 64  ;;  %p9682_p10 = scmp.lt.s32.totalorder %s199_s11, %s199_s11 }
  0x9e   :  { %p9678_p9 = scmp.ne.s32.totalorder %s199_s11, %s9677_s4  ;;  %p9683_p11 = scmp.lt.s32.totalorder %s9677_s4, %s9677_s4 }
  0xa0   :  { %p9684_p12 = por %p9683_p11, %p9682_p10 }
  0xa2   :  { %p9685_p13 = pnand %p9684_p12, %p9678_p9 }
  0xa4   :  { %9688 = shalt.err (!%p9685_p13)
}
  0xa5   :  { %201 = dma.hbm_to_vmem [thread:$0]  %s10552_s15, 64, %s199_s11, [#allocation26]  }
  0xa6   :  { %9689 = dma.done.wait [#allocation5], 16  }
  0xa7   :  { %9690 = vsyncadd [#allocation5], 4294967280 }
  0xa8   :  { %9691 = dma.done.wait [#allocation4], 256  }
  0xa9   :  { %9692 = vsyncadd [#allocation4], 4294967040 }
  0xaa   :  { %9693 = dma.done.wait [#allocation8], 1664  }
  0xab   :  { %9694 = vsyncadd [#allocation8], 4294965632 }
  0xac   :  { %9695 = dma.done.wait [#allocation11], 1040  }
  0xad   :  { %9696 = vsyncadd [#allocation11], 4294966256 }
  0xae   :  { %9697 = dma.done.wait [#allocation14], 3120  }
  0xaf   :  { %9698 = vsyncadd [#allocation14], 4294964176 }
  0xb0   :  { %9699 = dma.done.wait [#allocation17], 8224  }
  0xb1   :  { %9700 = vsyncadd [#allocation17], 4294959072 }
  0xb2   :  { %9701 = dma.done.wait [#allocation20], 65664  }
  0xb3   :  { %9702 = vsyncadd [#allocation20], 4294901632 }
  0xb4   :  { %9703 = dma.done.wait [#allocation23], 32896  }
  0xb5   :  { %9704 = vsyncadd [#allocation23], 4294934400 }
  0xb6   :  { %9705 = dma.done.wait [#allocation26], 64  }
  0xb7   :  { %9706 = vsyncadd [#allocation26], 4294967232 }
  0xb8   :  { %251 = sfence }
  0xb9   :  { %v9895_v1 = vld [vmem:[#allocation6] sm:$0xff]  ;;  %v9897_v2 = vld [vmem:[#allocation6 + $0x8] sm:$0xff]  ;;  %vm293_vm0 = vcmask 130048   ;;  %v9731_v6 = vmov 0.0   ;;  %vm9732_vm1 = vmmov 0   ;;  %v9921_v7 = vld [vmem:[#allocation10 + $0x38] sm:$0xff]  }
  0xba   :  { %v278_v3 = vpack.c.bf16 %v9897_v2, %v9895_v1  ;;  %v9904_v4 = vld [vmem:[%s10540_s3] sm:$0xff]   ;;  %v9909_v5 = vld [vmem:[%s10540_s3 + $0x8] sm:$0xff]   ;;  %8787 = vmatprep.subr.bf16.mxu1 %v9731_v6  ;;  %8791 = vmatprep.mubr.msk.bf16.mxu1 %vm9732_vm1, %v9731_v6  ;;  %v9935_v11 = vld [vmem:[#allocation10 + $0x18] sm:$0xff]   ;;  %vm360_vm2 = vcmask 261120   ;;  %s405_s23 = sld [smem:[#allocation3]]  ;;  %vm7737_vm3 = vcmask 1024  }
  0xbb   :  { %8783 = vmatprep.mubr.msk.bf16.mxu0 %vm293_vm0, %v9904_v4  ;;  %v9923_v8 = vld [vmem:[#allocation10 + $0x30] sm:$0xff]   ;;  %v9927_v9 = vld [vmem:[#allocation10 + $0x28] sm:$0xff]   ;;  %v9931_v10 = vld [vmem:[#allocation10 + $0x20] sm:$0xff]   ;;  %s7779_s28 = sld [smem:[#allocation3 + $0x1]] }
  0xbc   :  { %8781 = vmatprep.subr.bf16.mxu0 %v278_v3  ;;  %v9939_v12 = vld [vmem:[#allocation10 + $0x10] sm:$0xff]   ;;  %v281_v13 = vld [vmem:[#allocation7 + $0x10] sm:$0xff]  ;;  %v279_v18 = vld [vmem:[#allocation7] sm:$0xff] }
  0xbd   :  { %8782 = vmatpush3.bf16.msra.mxu0 %v278_v3  ;;  %v282_v16 = vld [vmem:[#allocation7 + $0x18] sm:$0xff]  ;;  %v280_v20 = vld [vmem:[#allocation7 + $0x8] sm:$0xff]  ;;  %v9946_v31 = vld [vmem:[#allocation9] sm:$0xff]  }
  0xbe   :  { %8795 = vmatprep.subr.bf16.mxu0 %v9731_v6  ;;  %v9953_v32 = vld [vmem:[#allocation10 + $0x8] sm:$0xff]   ;;  %v9957_v33 = vld [vmem:[#allocation10] sm:$0xff]   ;;  %v8989_v35 = vld [vmem:[#allocation13 + $0x30] sm:$0xff]  }
  0xbf   :  { %v8988_v34 = vld [vmem:[#allocation13 + $0x38] sm:$0xff]   ;;  %v8990_v36 = vld [vmem:[#allocation13 + $0x28] sm:$0xff]   ;;  %v8991_v37 = vld [vmem:[#allocation13 + $0x20] sm:$0xff]  }
  0xc0   :  { %8784 = vmatmul.mubr.msk.bf16.vlgmr.msra.gmra.mxu0 %vm293_vm0, %v9909_v5  ;;  %v8992_v38 = vld [vmem:[#allocation13 + $0x18] sm:$0xff]   ;;  %s406_s25 = sadd.f32 1.0, %s405_s23  ;;  %v8993_v49 = vld [vmem:[#allocation13 + $0x10] sm:$0xff]   ;;  %v8994_v50 = vld [vmem:[#allocation13 + $0x8] sm:$0xff]  }
  0xc1   :  { %8811 = vmatprep.mubr.msk.bf16.mxu0 %vm9732_vm1, %v9731_v6  ;;  %8796 = vmatpush3.bf16.msra.mxu0 %v9921_v7  ;;  %v8995_v51 = vld [vmem:[#allocation13] sm:$0xff]   ;;  %v9972_v52 = vld [vmem:[#allocation12] ss:$0 sm:$0xff]  ;;  %s730_s6 = sadd.f32 1.0, %s7779_s28 }
  0xc2   :  { %8797 = vmatprep.subr.bf16.mxu0 %v9731_v6  ;;  %v407_v39 = vstv %s406_s25  ;;  %v7767_v62 = vld [vmem:[#allocation15] ss:$0 sm:$0xff] }
  0xc3   :  { %v408_v41 = vmul.f32 %v407_v39, %v9895_v1  ;;  %v409_v42 = vmul.f32 %v407_v39, %v9897_v2  ;;  %v8999_v39 = vld [vmem:[#allocation13 + $0x60] sm:$0xff]  }
  0xc5   :  { %8798 = vmatpush3.bf16.msra.mxu0 %v9923_v8 }
  0xc6   :  { %8799 = vmatprep.subr.bf16.mxu0 %v9731_v6 }
  0xc9   :  { %8800 = vmatpush3.bf16.msra.mxu0 %v9927_v9 }
  0xca   :  { %8801 = vmatprep.subr.bf16.mxu0 %v9731_v6 }
  0xcd   :  { %8802 = vmatpush3.bf16.msra.mxu0 %v9931_v10 }
  0xce   :  { %8803 = vmatprep.subr.bf16.mxu0 %v9731_v6 }
  0xd1   :  { %8804 = vmatpush3.bf16.msra.mxu0 %v9935_v11 }
  0xd2   :  { %8805 = vmatprep.subr.bf16.mxu0 %v9731_v6 }
  0xd5   :  { %8806 = vmatpush3.bf16.msra.mxu0 %v9939_v12 }
  0xd6   :  { %8807 = vmatprep.subr.bf16.mxu0 %v9731_v6 }
  0xd9   :  { %8808 = vmatpush3.bf16.msra.mxu0 %v9953_v32 }
  0xda   :  { %8809 = vmatprep.subr.bf16.mxu0 %v9731_v6 }
  0xdd   :  { %8810 = vmatpush3.bf16.msra.mxu0 %v9957_v33 }
 0x180   :  { %v8785_v14 = vpop.f32.mrf.mxu0 }
 0x181   :  { %v343_v17 = vadd.f32 %v8785_v14, %v281_v13 }
 0x182   :  { %v334_v15 = vpop.f32.mrf.mxu0 }
 0x183   :  { %v351_v23 = vmax.f32 %v343_v17, 0.0  ;;  %v335_v24 = vadd.f32 %v334_v15, %v279_v18  ;;  %v632_v18 = vld [vmem:[#allocation7 + $0x38] sm:$0xff] }
 0x184   :  { %v8786_v19 = vpop.f32.mrf.mxu0 }
 0x185   :  { %v346_v21 = vadd.f32 %v8786_v19, %v282_v16  ;;  %v349_v29 = vmax.f32 %v335_v24, 0.0 }
 0x186   :  { %v337_v22 = vpop.f32.mrf.mxu0 }
 0x187   :  { %v352_v25 = vmax.f32 %v346_v21, 0.0  ;;  %v338_v26 = vadd.f32 %v337_v22, %v280_v20  ;;  %v629_v20 = vld [vmem:[#allocation7 + $0x20] sm:$0xff]  ;;  %v630_v22 = vld [vmem:[#allocation7 + $0x28] sm:$0xff] }
 0x189   :  { %v350_v27 = vmax.f32 %v338_v26, 0.0  ;;  %v354_v28 = vpack.c.bf16 %v352_v25, %v351_v23 }
 0x18b   :  { %8788 = vmatpush3.bf16.msra.mxu1 %v354_v28  ;;  %v353_v30 = vpack.c.bf16 %v350_v27, %v349_v29 }
 0x18c   :  { %8789 = vmatprep.subr.bf16.mxu1 %v9731_v6 }
 0x18f   :  { %8790 = vmatpush3.bf16.msra.mxu1 %v353_v30 }
 0x190   :  { %8815 = vmatprep.subr.bf16.mxu1 %v9731_v6 }
 0x192   :  { %8792 = vmatmul.mubr.msk.bf16.vlgmr.msra.gmra.mxu1 %vm360_vm2, %v9946_v31 }
 0x193   :  { %8831 = vmatprep.mubr.msk.bf16.mxu1 %vm9732_vm1, %v9731_v6  ;;  %8816 = vmatpush3.bf16.msra.mxu1 %v8988_v34 }
 0x194   :  { %8817 = vmatprep.subr.bf16.mxu1 %v9731_v6 }
 0x197   :  { %8818 = vmatpush3.bf16.msra.mxu1 %v8989_v35 }
 0x198   :  { %8819 = vmatprep.subr.bf16.mxu1 %v9731_v6 }
 0x19b   :  { %8820 = vmatpush3.bf16.msra.mxu1 %v8990_v36  ;;  %v8996_v36 = vld [vmem:[#allocation13 + $0x78] sm:$0xff]  }
 0x19c   :  { %8821 = vmatprep.subr.bf16.mxu1 %v9731_v6 }
 0x19f   :  { %8822 = vmatpush3.bf16.msra.mxu1 %v8991_v37  ;;  %v8997_v37 = vld [vmem:[#allocation13 + $0x70] sm:$0xff]  }
 0x1a0   :  { %8823 = vmatprep.subr.bf16.mxu1 %v9731_v6 }
 0x1a3   :  { %8824 = vmatpush3.bf16.msra.mxu1 %v8992_v38  ;;  %v8998_v38 = vld [vmem:[#allocation13 + $0x68] sm:$0xff]  }
 0x1a4   :  { %8825 = vmatprep.subr.bf16.mxu1 %v9731_v6 }
 0x1a7   :  { %8826 = vmatpush3.bf16.msra.mxu1 %v8993_v49 }
 0x1a8   :  { %8827 = vmatprep.subr.bf16.mxu1 %v9731_v6 }
 0x1ab   :  { %8828 = vmatpush3.bf16.msra.mxu1 %v8994_v50 }
 0x1ac   :  { %8829 = vmatprep.subr.bf16.mxu1 %v9731_v6 }
 0x1af   :  { %8830 = vmatpush3.bf16.msra.mxu1 %v8995_v51  ;;  %v9396_v51 = vld [vmem:[%s10540_s3] sm:$0xff]  }
 0x1b0   :  { %8841 = vmatprep.subr.bf16.mxu1 %v9731_v6 }
 0x252   :  { %v398_v40 = vpop.f32.mrf.mxu1 }
 0x253   :  { %v410_v45 = vadd.f32 %v408_v41, %v398_v40  ;;  %v9000_v40 = vld [vmem:[#allocation13 + $0x58] sm:$0xff]  }
 0x254   :  { %v8793_v43 = vpop.f32.mrf.mxu1 }
 0x256   :  { %v401_v44 = vpop.f32.mrf.mxu1 }
 0x257   :  { %v411_v46 = vadd.f32 %v409_v42, %v401_v44  ;;  %v731_v42 = vstv %s730_s6 }
 0x258   :  { %v8794_v47 = vpop.f32.mrf.mxu1 }
 0x259   :  { %v412_v48 = vpack.c.bf16 %v411_v46, %v410_v45 }
 0x25b   :  { %8812 = vmatmul.mubr.bf16.vlgmr.msra.gmra.mxu0 %v412_v48 }
 0x25c   :  { %8837 = vmatprep.mubr.msk.bf16.mxu0 %vm293_vm0, %v9904_v4 }
 0x31b   :  { %v501_v53 = vpop.f32.mrf.mxu0 }
 0x31c   :  { %v502_v55 = vadd.f32 %v9972_v52, %v501_v53  ;;  %v9001_v53 = vld [vmem:[#allocation13 + $0x50] sm:$0xff]  }
 0x31d   :  { %v8813_v54 = vpop.f32.mrf.mxu0 }
 0x31e   :  { %v508_v59 = vmax.f32 %v502_v55, 0.0  ;;  %v9002_v54 = vld [vmem:[#allocation13 + $0x48] sm:$0xff]   ;;  %v9003_v55 = vld [vmem:[#allocation13 + $0x40] sm:$0xff]  }
 0x31f   :  { %v504_v56 = vpop.f32.mrf.mxu0 }
 0x320   :  { %v505_v57 = vadd.f32 %v9972_v52, %v504_v56 }
 0x321   :  { %v8814_v58 = vpop.f32.mrf.mxu0 }
 0x322   :  { %v509_v60 = vmax.f32 %v505_v57, 0.0 }
 0x324   :  { %v510_v61 = vpack.c.bf16 %v509_v60, %v508_v59 }
 0x326   :  { %8832 = vmatmul.mubr.bf16.vlgmr.msra.gmra.mxu1 %v510_v61 }
 0x327   :  { %8845 = vmatprep.mubr.msk.bf16.mxu1 %vm9732_vm1, %v9731_v6 }
 0x3e6   :  { %v616_v63 = vpop.f32.mrf.mxu1 }
 0x3e7   :  { %v617_v1 = vadd.f32 %v7767_v62, %v616_v63 }
 0x3e8   :  { %v8833_v0 = vpop.f32.mrf.mxu1 }
 0x3e9   :  { %v9978_v13 = vmax.f32 %v617_v1, 0.0  ;;  %v7780_v1 = vld [vmem:[#allocation15 + $0x1] ss:$0 sm:$0xff] }
 0x3ea   :  { %v619_v2 = vpop.f32.mrf.mxu1 }
 0x3eb   :  { %v620_v3 = vadd.f32 %v7767_v62, %v619_v2  ;;  %v732_v44 = vmul.f32 %v731_v42, %v9978_v13 }
 0x3ec   :  { %v8834_v4 = vpop.f32.mrf.mxu1 }
 0x3ed   :  { %v9980_v14 = vmax.f32 %v620_v3, 0.0 }
 0x3ef   :  { %v627_v15 = vpack.c.bf16 %v9980_v14, %v9978_v13  ;;  %v733_v45 = vmul.f32 %v731_v42, %v9980_v14  ;;  %v9008_v42 = vld [vmem:[#allocation13 + $0x98] sm:$0xff]  }
 0x3f1   :  { %8835 = vmatprep.subr.bf16.mxu0 %v627_v15 }
 0x3f2   :  { %8836 = vmatpush3.bf16.msra.mxu0 %v627_v15  ;;  %v9397_v15 = vld [vmem:[#allocation6] sm:$0xff] }
 0x3f3   :  { %8849 = vmatprep.subr.bf16.mxu0 %v9731_v6 }
 0x3f5   :  { %8838 = vmatmul.mubr.msk.bf16.vlgmr.msra.gmra.mxu0 %vm293_vm0, %v9909_v5  ;;  %v631_v5 = vld [vmem:[#allocation7 + $0x30] sm:$0xff] }
 0x3f6   :  { %8850 = vmatpush3.bf16.msra.mxu0 %v9921_v7  ;;  %8865 = vmatprep.mubr.msk.bf16.mxu0 %vm9732_vm1, %v9731_v6 }
 0x3f7   :  { %8851 = vmatprep.subr.bf16.mxu0 %v9731_v6 }
 0x3fa   :  { %8852 = vmatpush3.bf16.msra.mxu0 %v9923_v8 }
 0x3fb   :  { %8853 = vmatprep.subr.bf16.mxu0 %v9731_v6 }
 0x3fe   :  { %8854 = vmatpush3.bf16.msra.mxu0 %v9927_v9 }
 0x3ff   :  { %8855 = vmatprep.subr.bf16.mxu0 %v9731_v6 }
 0x402   :  { %8856 = vmatpush3.bf16.msra.mxu0 %v9931_v10 }
 0x403   :  { %8857 = vmatprep.subr.bf16.mxu0 %v9731_v6 }
 0x406   :  { %8858 = vmatpush3.bf16.msra.mxu0 %v9935_v11 }
 0x407   :  { %8859 = vmatprep.subr.bf16.mxu0 %v9731_v6 }
 0x40a   :  { %8860 = vmatpush3.bf16.msra.mxu0 %v9939_v12 }
 0x40b   :  { %8861 = vmatprep.subr.bf16.mxu0 %v9731_v6 }
 0x40e   :  { %8862 = vmatpush3.bf16.msra.mxu0 %v9953_v32 }
 0x40f   :  { %8863 = vmatprep.subr.bf16.mxu0 %v9731_v6 }
 0x412   :  { %8864 = vmatpush3.bf16.msra.mxu0 %v9957_v33 }
 0x4b5   :  { %v8839_v16 = vpop.f32.mrf.mxu0 }
 0x4b6   :  { %v676_v19 = vadd.f32 %v8839_v16, %v631_v5  ;;  %v625_v5 = vadd.f32 %v9397_v15, %v9978_v13  ;;  %v9399_v13 = vld [vmem:[%s10540_s3 + $0x8] sm:$0xff]   ;;  %s7792_s3 = sld [smem:[#allocation3 + $0x2]] }
 0x4b7   :  { %v667_v17 = vpop.f32.mrf.mxu0  ;;  %v1292_v15 = vld [vmem:[#allocation18 + $0x180] sm:$0xff] }
 0x4b8   :  { %v684_v25 = vmax.f32 %v676_v19, 0.0  ;;  %v668_v26 = vadd.f32 %v667_v17, %v629_v20 }
 0x4b9   :  { %v8840_v21 = vpop.f32.mrf.mxu0 }
 0x4ba   :  { %v679_v23 = vadd.f32 %v8840_v21, %v632_v18  ;;  %v682_v34 = vmax.f32 %v668_v26, 0.0  ;;  %v9398_v21 = vld [vmem:[#allocation6 + $0x8] sm:$0xff] }
 0x4bb   :  { %v670_v24 = vpop.f32.mrf.mxu0 }
 0x4bc   :  { %v685_v27 = vmax.f32 %v679_v23, 0.0  ;;  %v671_v28 = vadd.f32 %v670_v24, %v630_v22  ;;  %v626_v22 = vadd.f32 %v9398_v21, %v9980_v14  ;;  %s1002_s30 = sadd.f32 1.0, %s7792_s3 }
 0x4be   :  { %v687_v29 = vpack.c.bf16 %v685_v27, %v684_v25  ;;  %v683_v30 = vmax.f32 %v671_v28, 0.0  ;;  %v902_v27 = vld [vmem:[#allocation7 + $0x48] sm:$0xff] }
 0x4c0   :  { %8842 = vmatpush3.bf16.msra.mxu1 %v687_v29  ;;  %v686_v35 = vpack.c.bf16 %v683_v30, %v682_v34 }
 0x4c1   :  { %8843 = vmatprep.subr.bf16.mxu1 %v9731_v6 }
 0x4c4   :  { %8844 = vmatpush3.bf16.msra.mxu1 %v686_v35 }
 0x4c5   :  { %8869 = vmatprep.subr.bf16.mxu1 %v9731_v6 }
 0x4c7   :  { %8846 = vmatmul.mubr.msk.bf16.vlgmr.msra.gmra.mxu1 %vm360_vm2, %v9946_v31 }
 0x4c8   :  { %8885 = vmatprep.mubr.msk.bf16.mxu1 %vm9732_vm1, %v9731_v6  ;;  %8870 = vmatpush3.bf16.msra.mxu1 %v8996_v36 }
 0x4c9   :  { %8871 = vmatprep.subr.bf16.mxu1 %v9731_v6 }
 0x4cc   :  { %8872 = vmatpush3.bf16.msra.mxu1 %v8997_v37 }
 0x4cd   :  { %8873 = vmatprep.subr.bf16.mxu1 %v9731_v6 }
 0x4d0   :  { %8874 = vmatpush3.bf16.msra.mxu1 %v8998_v38  ;;  %v9004_v38 = vld [vmem:[#allocation13 + $0xb8] sm:$0xff]  }
 0x4d1   :  { %8875 = vmatprep.subr.bf16.mxu1 %v9731_v6 }
 0x4d4   :  { %8876 = vmatpush3.bf16.msra.mxu1 %v8999_v39  ;;  %v9005_v39 = vld [vmem:[#allocation13 + $0xb0] sm:$0xff]  }
 0x4d5   :  { %8877 = vmatprep.subr.bf16.mxu1 %v9731_v6 }
 0x4d8   :  { %8878 = vmatpush3.bf16.msra.mxu1 %v9000_v40  ;;  %v9006_v40 = vld [vmem:[#allocation13 + $0xa8] sm:$0xff]  }
 0x4d9   :  { %8879 = vmatprep.subr.bf16.mxu1 %v9731_v6 }
 0x4dc   :  { %8880 = vmatpush3.bf16.msra.mxu1 %v9001_v53  ;;  %v9009_v53 = vld [vmem:[#allocation13 + $0x90] sm:$0xff]  }
 0x4dd   :  { %8881 = vmatprep.subr.bf16.mxu1 %v9731_v6 }
 0x4e0   :  { %8882 = vmatpush3.bf16.msra.mxu1 %v9002_v54  ;;  %v9010_v54 = vld [vmem:[#allocation13 + $0x88] sm:$0xff]  }
 0x4e1   :  { %8883 = vmatprep.subr.bf16.mxu1 %v9731_v6 }
 0x4e4   :  { %8884 = vmatpush3.bf16.msra.mxu1 %v9003_v55  ;;  %v9011_v55 = vld [vmem:[#allocation13 + $0x80] sm:$0xff]  }
 0x4e5   :  { %8895 = vmatprep.subr.bf16.mxu1 %v9731_v6 }
 0x587   :  { %v722_v41 = vpop.f32.mrf.mxu1 }
 0x588   :  { %v734_v47 = vadd.f32 %v732_v44, %v722_v41  ;;  %v9007_v41 = vld [vmem:[#allocation13 + $0xa0] sm:$0xff]  }
 0x589   :  { %v8847_v43 = vpop.f32.mrf.mxu1 }
 0x58a   :  { %v1003_v43 = vstv %s1002_s30 }
 0x58b   :  { %v725_v46 = vpop.f32.mrf.mxu1 }
 0x58c   :  { %v735_v48 = vadd.f32 %v733_v45, %v725_v46 }
 0x58d   :  { %v8848_v49 = vpop.f32.mrf.mxu1 }
 0x58e   :  { %v736_v50 = vpack.c.bf16 %v735_v48, %v734_v47 }
 0x590   :  { %8866 = vmatmul.mubr.bf16.vlgmr.msra.gmra.mxu0 %v736_v50 }
 0x591   :  { %8891 = vmatprep.mubr.msk.bf16.mxu0 %vm293_vm0, %v9396_v51 }
 0x650   :  { %v771_v56 = vpop.f32.mrf.mxu0 }
 0x651   :  { %v772_v58 = vadd.f32 %v9972_v52, %v771_v56 }
 0x652   :  { %v8867_v57 = vpop.f32.mrf.mxu0 }
 0x653   :  { %v778_v62 = vmax.f32 %v772_v58, 0.0 }
 0x654   :  { %v774_v59 = vpop.f32.mrf.mxu0 }
 0x655   :  { %v775_v60 = vadd.f32 %v9972_v52, %v774_v59 }
 0x656   :  { %v8868_v61 = vpop.f32.mrf.mxu0 }
 0x657   :  { %v779_v63 = vmax.f32 %v775_v60, 0.0 }
 0x659   :  { %v780_v0 = vpack.c.bf16 %v779_v63, %v778_v62 }
 0x65b   :  { %8886 = vmatmul.mubr.bf16.vlgmr.msra.gmra.mxu1 %v780_v0 }
 0x65c   :  { %8899 = vmatprep.mubr.msk.bf16.mxu1 %vm9732_vm1, %v9731_v6 }
 0x71b   :  { %v888_v2 = vpop.f32.mrf.mxu1 }
 0x71c   :  { %v889_v3 = vadd.f32 %v7780_v1, %v888_v2  ;;  %v1304_v2 = vld [vmem:[#allocation18 + $0x1e0] sm:$0xff] }
 0x71d   :  { %v8887_v4 = vpop.f32.mrf.mxu1 }
 0x71e   :  { %v10029_v16 = vmax.f32 %v889_v3, 0.0 }
 0x71f   :  { %v891_v17 = vpop.f32.mrf.mxu1 }
 0x720   :  { %v892_v18 = vadd.f32 %v7780_v1, %v891_v17  ;;  %v10032_v19 = vadd.f32 %v10029_v16, %v625_v5  ;;  %v1004_v45 = vmul.f32 %v1003_v43, %v10029_v16  ;;  %v1300_v1 = vld [vmem:[#allocation18 + $0x1c0] sm:$0xff] }
 0x721   :  { %v8888_v20 = vpop.f32.mrf.mxu1  ;;  %v7859_v3 = vcombine.low %v1300_v1, %v1304_v2  ;;  %v7860_v4 = vcombine.high %v1300_v1, %v1304_v2  ;;  %v1296_v5 = vld [vmem:[#allocation18 + $0x1a0] sm:$0xff]  ;;  %v1253_v2 = vld [vmem:[#allocation18 + $0x48] sm:$0xff] }
 0x722   :  { %v10035_v23 = vmax.f32 %v892_v18, 0.0  ;;  %v7851_v17 = vcombine.low %v1292_v15, %v1296_v5  ;;  %v1284_v18 = vld [vmem:[#allocation18 + $0x140] sm:$0xff] }
 0x723   :  { %v1288_v20 = vld [vmem:[#allocation18 + $0x160] sm:$0xff] }
 0x724   :  { %v899_v24 = vpack.c.bf16 %v10035_v23, %v10029_v16  ;;  %v10040_v25 = vadd.f32 %v10035_v23, %v626_v22  ;;  %v1005_v46 = vmul.f32 %v1003_v43, %v10035_v23  ;;  %v7852_v16 = vcombine.high %v1292_v15, %v1296_v5  ;;  %v1276_v22 = vld [vmem:[#allocation18 + $0x100] sm:$0xff]  ;;  %v1245_v5 = vld [vmem:[#allocation18 + $0x8] sm:$0xff] }
 0x725   :  { %v7844_v21 = vcombine.high %v1284_v18, %v1288_v20  ;;  %v1280_v23 = vld [vmem:[#allocation18 + $0x120] sm:$0xff] }
 0x726   :  { %8889 = vmatprep.subr.bf16.mxu0 %v899_v24 }
 0x727   :  { %8890 = vmatpush3.bf16.msra.mxu0 %v899_v24  ;;  %v7836_v24 = vcombine.high %v1276_v22, %v1280_v23 }
 0x728   :  { %8903 = vmatprep.subr.bf16.mxu0 %v9731_v6 }
 0x72a   :  { %8892 = vmatmul.mubr.msk.bf16.vlgmr.msra.gmra.mxu0 %vm293_vm0, %v9399_v13  ;;  %v7835_v13 = vcombine.low %v1276_v22, %v1280_v23  ;;  %v1303_v22 = vld [vmem:[#allocation18 + $0x1d8] sm:$0xff] }
 0x72b   :  { %8904 = vmatpush3.bf16.msra.mxu0 %v9921_v7  ;;  %8919 = vmatprep.mubr.msk.bf16.mxu0 %vm9732_vm1, %v9731_v6  ;;  %v903_v7 = vld [vmem:[#allocation7 + $0x50] sm:$0xff] }
 0x72c   :  { %8905 = vmatprep.subr.bf16.mxu0 %v9731_v6 }
 0x72f   :  { %8906 = vmatpush3.bf16.msra.mxu0 %v9923_v8 }
 0x730   :  { %8907 = vmatprep.subr.bf16.mxu0 %v9731_v6 }
 0x733   :  { %8908 = vmatpush3.bf16.msra.mxu0 %v9927_v9 }
 0x734   :  { %8909 = vmatprep.subr.bf16.mxu0 %v9731_v6 }
 0x737   :  { %8910 = vmatpush3.bf16.msra.mxu0 %v9931_v10  ;;  %v904_v10 = vld [vmem:[#allocation7 + $0x58] sm:$0xff] }
 0x738   :  { %8911 = vmatprep.subr.bf16.mxu0 %v9731_v6 }
 0x73b   :  { %8912 = vmatpush3.bf16.msra.mxu0 %v9935_v11  ;;  %v901_v11 = vld [vmem:[#allocation7 + $0x40] sm:$0xff] }
 0x73c   :  { %8913 = vmatprep.subr.bf16.mxu0 %v9731_v6 }
 0x73f   :  { %8914 = vmatpush3.bf16.msra.mxu0 %v9939_v12 }
 0x740   :  { %8915 = vmatprep.subr.bf16.mxu0 %v9731_v6 }
 0x743   :  { %8916 = vmatpush3.bf16.msra.mxu0 %v9953_v32 }
 0x744   :  { %8917 = vmatprep.subr.bf16.mxu0 %v9731_v6 }
 0x747   :  { %8918 = vmatpush3.bf16.msra.mxu0 %v9957_v33 }
 0x748   :  { %8943 = vmatprep.subr.mxu0 %v9731_v6 }
 0x7ea   :  { %v8893_v8 = vpop.f32.mrf.mxu0 }
 0x7eb   :  { %v948_v14 = vadd.f32 %v8893_v8, %v903_v7  ;;  %v1268_v7 = vld [vmem:[#allocation18 + $0xc0] sm:$0xff] }
 0x7ec   :  { %v939_v9 = vpop.f32.mrf.mxu0  ;;  %v1272_v8 = vld [vmem:[#allocation18 + $0xe0] sm:$0xff] }
 0x7ed   :  { %v956_v29 = vmax.f32 %v948_v14, 0.0  ;;  %v940_v30 = vadd.f32 %v939_v9, %v901_v11  ;;  %v7828_v9 = vcombine.high %v1268_v7, %v1272_v8  ;;  %v1260_v14 = vld [vmem:[#allocation18 + $0x80] sm:$0xff] }
 0x7ee   :  { %v8894_v26 = vpop.f32.mrf.mxu0  ;;  %v1264_v11 = vld [vmem:[#allocation18 + $0xa0] sm:$0xff] }
 0x7ef   :  { %v951_v28 = vadd.f32 %v8894_v26, %v904_v10  ;;  %v954_v37 = vmax.f32 %v940_v30, 0.0  ;;  %v7827_v10 = vcombine.low %v1268_v7, %v1272_v8  ;;  %v7820_v26 = vcombine.high %v1260_v14, %v1264_v11 }
 0x7f0   :  { %v942_v12 = vpop.f32.mrf.mxu0 }
 0x7f1   :  { %v957_v34 = vmax.f32 %v951_v28, 0.0  ;;  %v943_v32 = vadd.f32 %v942_v12, %v902_v27  ;;  %v7819_v27 = vcombine.low %v1260_v14, %v1264_v11  ;;  %v1252_v28 = vld [vmem:[#allocation18 + $0x40] sm:$0xff]  ;;  %v1298_v14 = vld [vmem:[#allocation18 + $0x1b0] sm:$0xff]  ;;  %v1295_v11 = vld [vmem:[#allocation18 + $0x198] sm:$0xff] }
 0x7f2   :  { %v1256_v12 = vld [vmem:[#allocation18 + $0x60] sm:$0xff] }
 0x7f3   :  { %v959_v35 = vpack.c.bf16 %v957_v34, %v956_v29  ;;  %v955_v36 = vmax.f32 %v943_v32, 0.0  ;;  %v7812_v29 = vcombine.high %v1252_v28, %v1256_v12  ;;  %v7811_v30 = vcombine.low %v1252_v28, %v1256_v12  ;;  %v1244_v34 = vld [vmem:[#allocation18] sm:$0xff] }
 0x7f4   :  { %v1248_v32 = vld [vmem:[#allocation18 + $0x20] sm:$0xff] }
 0x7f5   :  { %8896 = vmatpush3.bf16.msra.mxu1 %v959_v35  ;;  %v958_v33 = vpack.c.bf16 %v955_v36, %v954_v37  ;;  %v7804_v35 = vcombine.high %v1244_v34, %v1248_v32  ;;  %v7803_v36 = vcombine.low %v1244_v34, %v1248_v32  ;;  %v1290_v32 = vld [vmem:[#allocation18 + $0x170] sm:$0xff] }
 0x7f6   :  { %8897 = vmatprep.subr.bf16.mxu1 %v9731_v6 }
 0x7f9   :  { %8898 = vmatpush3.bf16.msra.mxu1 %v958_v33  ;;  %v7793_v33 = vld [vmem:[#allocation15 + $0x2] ss:$0 sm:$0xff] }
 0x7fa   :  { %8923 = vmatprep.subr.bf16.mxu1 %v9731_v6 }
 0x7fc   :  { %8900 = vmatmul.mubr.msk.bf16.vlgmr.msra.gmra.mxu1 %vm360_vm2, %v9946_v31 }
 0x7fd   :  { %8939 = vmatprep.mubr.msk.bf16.mxu1 %vm9732_vm1, %v9731_v6  ;;  %8924 = vmatpush3.bf16.msra.mxu1 %v9004_v38 }
 0x7fe   :  { %8925 = vmatprep.subr.bf16.mxu1 %v9731_v6 }
 0x801   :  { %8926 = vmatpush3.bf16.msra.mxu1 %v9005_v39 }
 0x802   :  { %8927 = vmatprep.subr.bf16.mxu1 %v9731_v6 }
 0x805   :  { %8928 = vmatpush3.bf16.msra.mxu1 %v9006_v40 }
 0x806   :  { %8929 = vmatprep.subr.bf16.mxu1 %v9731_v6 }
 0x809   :  { %8930 = vmatpush3.bf16.msra.mxu1 %v9007_v41 }
 0x80a   :  { %8931 = vmatprep.subr.bf16.mxu1 %v9731_v6 }
 0x80d   :  { %8932 = vmatpush3.bf16.msra.mxu1 %v9008_v42  ;;  %v1301_v42 = vld [vmem:[#allocation18 + $0x1c8] sm:$0xff] }
 0x80e   :  { %8933 = vmatprep.subr.bf16.mxu1 %v9731_v6 }
 0x811   :  { %8934 = vmatpush3.bf16.msra.mxu1 %v9009_v53  ;;  %v1285_v53 = vld [vmem:[#allocation18 + $0x148] sm:$0xff] }
 0x812   :  { %8935 = vmatprep.subr.bf16.mxu1 %v9731_v6 }
 0x815   :  { %8936 = vmatpush3.bf16.msra.mxu1 %v9010_v54  ;;  %v1289_v54 = vld [vmem:[#allocation18 + $0x168] sm:$0xff] }
 0x816   :  { %8937 = vmatprep.subr.bf16.mxu1 %v9731_v6 }
 0x819   :  { %8938 = vmatpush3.bf16.msra.mxu1 %v9011_v55 }
 0x81a   :  { %1670 = vmatprep.subr.bf16.mxu1 %v7860_v4 }
 0x8bc   :  { %v994_v31 = vpop.f32.mrf.mxu1 }
 0x8bd   :  { %v1006_v48 = vadd.f32 %v1004_v45, %v994_v31  ;;  %v1305_v31 = vld [vmem:[#allocation18 + $0x1e8] sm:$0xff] }
 0x8be   :  { %v8901_v44 = vpop.f32.mrf.mxu1  ;;  %v1293_v45 = vld [vmem:[#allocation18 + $0x188] sm:$0xff] }
 0x8c0   :  { %v997_v47 = vpop.f32.mrf.mxu1 }
 0x8c1   :  { %v1007_v49 = vadd.f32 %v1005_v46, %v997_v47  ;;  %v1297_v46 = vld [vmem:[#allocation18 + $0x1a8] sm:$0xff]  ;;  %v7862_v47 = vcombine.high %v1301_v42, %v1305_v31 }
 0x8c2   :  { %v8902_v50 = vpop.f32.mrf.mxu1  ;;  %v7853_v55 = vcombine.low %v1293_v45, %v1297_v46 }
 0x8c3   :  { %v1008_v51 = vpack.c.bf16 %v1007_v49, %v1006_v48  ;;  %v1169_v49 = vld [vmem:[#allocation16] sm:$0x3]  ;;  %v7861_v50 = vcombine.low %v1301_v42, %v1305_v31 }
 0x8c4   :  { %v1279_v42 = vld [vmem:[#allocation18 + $0x118] sm:$0xff] }
 0x8c5   :  { %8920 = vmatmul.mubr.bf16.vlgmr.msra.gmra.mxu0 %v1008_v51  ;;  %v7854_v51 = vcombine.high %v1293_v45, %v1297_v46  ;;  %v1283_v31 = vld [vmem:[#allocation18 + $0x138] sm:$0xff] }
 0x8c6   :  { %8947 = vmatprep.mubr.msk.f32.mxu0 %vm9732_vm1, %v9731_v6  ;;  %v7842_v46 = vcombine.high %v1279_v42, %v1283_v31 }
 0x985   :  { %v1043_v56 = vpop.f32.mrf.mxu0 }
 0x986   :  { %v1044_v58 = vadd.f32 %v9972_v52, %v1043_v56  ;;  %v1277_v56 = vld [vmem:[#allocation18 + $0x108] sm:$0xff] }
 0x987   :  { %v8921_v57 = vpop.f32.mrf.mxu0 }
 0x988   :  { %v1050_v62 = vmax.f32 %v1044_v58, 0.0  ;;  %v1281_v57 = vld [vmem:[#allocation18 + $0x128] sm:$0xff] }
 0x989   :  { %v1046_v59 = vpop.f32.mrf.mxu0  ;;  %v7838_v58 = vcombine.high %v1277_v56, %v1281_v57 }
 0x98a   :  { %v1047_v60 = vadd.f32 %v9972_v52, %v1046_v59  ;;  %v7843_v52 = vcombine.low %v1284_v18, %v1288_v20  ;;  %v1269_v59 = vld [vmem:[#allocation18 + $0xc8] sm:$0xff] }
 0x98b   :  { %v8922_v61 = vpop.f32.mrf.mxu0 }
 0x98c   :  { %v1051_v63 = vmax.f32 %v1047_v60, 0.0  ;;  %v1273_v60 = vld [vmem:[#allocation18 + $0xe8] sm:$0xff] }
 0x98d   :  { %v7830_v61 = vcombine.high %v1269_v59, %v1273_v60 }
 0x98e   :  { %v1052_v0 = vpack.c.bf16 %v1051_v63, %v1050_v62  ;;  %v1261_v62 = vld [vmem:[#allocation18 + $0x88] sm:$0xff] }
 0x98f   :  { %v1265_v63 = vld [vmem:[#allocation18 + $0xa8] sm:$0xff] }
 0x990   :  { %8940 = vmatmul.mubr.bf16.vlgmr.msra.gmra.mxu1 %v1052_v0  ;;  %v7829_v0 = vcombine.low %v1269_v59, %v1273_v60  ;;  %v7822_v1 = vcombine.high %v1261_v62, %v1265_v63  ;;  %v7821_v4 = vcombine.low %v1261_v62, %v1265_v63  ;;  %v1258_v62 = vld [vmem:[#allocation18 + $0x70] sm:$0xff]  ;;  %v1255_v63 = vld [vmem:[#allocation18 + $0x58] sm:$0xff] }
 0x991   :  { %1671 = vmatpush1.bf16.msra.mxu1 %v7859_v3  ;;  %v1257_v3 = vld [vmem:[#allocation18 + $0x68] sm:$0xff] }
 0x992   :  { %1672 = vmatprep.subr.bf16.mxu1 %v7852_v16  ;;  %v7814_v15 = vcombine.high %v1253_v2, %v1257_v3  ;;  %v1249_v16 = vld [vmem:[#allocation18 + $0x28] sm:$0xff] }
 0x993   :  { %v7806_v18 = vcombine.high %v1245_v5, %v1249_v16  ;;  %v7805_v20 = vcombine.low %v1245_v5, %v1249_v16  ;;  %v1250_v5 = vld [vmem:[#allocation18 + $0x30] sm:$0xff]  ;;  %v1247_v16 = vld [vmem:[#allocation18 + $0x18] sm:$0xff] }
 0x995   :  { %1673 = vmatpush1.bf16.msra.mxu1 %v7851_v17  ;;  %v7813_v17 = vcombine.low %v1253_v2, %v1257_v3 }
 0x996   :  { %1674 = vmatprep.subr.bf16.mxu1 %v7844_v21  ;;  %v1302_v21 = vld [vmem:[#allocation18 + $0x1d0] sm:$0xff] }
 0x999   :  { %1675 = vmatpush1.bf16.msra.mxu1 %v7843_v52  ;;  %v1306_v52 = vld [vmem:[#allocation18 + $0x1f0] sm:$0xff] }
 0x99a   :  { %1676 = vmatprep.subr.bf16.mxu1 %v7836_v24  ;;  %v7864_v23 = vcombine.high %v1302_v21, %v1306_v52  ;;  %v1307_v24 = vld [vmem:[#allocation18 + $0x1f8] sm:$0xff] }
 0x99b   :  { %v7865_v7 = vcombine.low %v1303_v22, %v1307_v24  ;;  %v7866_v8 = vcombine.high %v1303_v22, %v1307_v24  ;;  %v1906_v22 = vld [vmem:[#allocation21 + $0x1c0] sm:$0xff] }
 0x99c   :  { %v2034_v24 = vld [vmem:[#allocation21 + $0x5c0] sm:$0xff] }
 0x99d   :  { %1677 = vmatpush1.bf16.msra.mxu1 %v7835_v13  ;;  %v7863_v13 = vcombine.low %v1302_v21, %v1306_v52 }
 0x99e   :  { %1678 = vmatprep.subr.bf16.mxu1 %v7828_v9  ;;  %v9733_v9 = vmov 0  }
 0x99f   :  { %1702 = vmatprep.mubr.bf16.mxu1 %v9733_v9 }
 0x9a1   :  { %1679 = vmatpush1.bf16.msra.mxu1 %v7827_v10  ;;  %v1294_v10 = vld [vmem:[#allocation18 + $0x190] sm:$0xff] }
 0x9a2   :  { %1680 = vmatprep.subr.bf16.mxu1 %v7820_v26  ;;  %v1299_v26 = vld [vmem:[#allocation18 + $0x1b8] sm:$0xff]  ;;  %v7856_v12 = vcombine.high %v1294_v10, %v1298_v14 }
 0x9a5   :  { %1681 = vmatpush1.bf16.msra.mxu1 %v7819_v27 }
 0x9a6   :  { %1682 = vmatprep.subr.bf16.mxu1 %v7812_v29  ;;  %v7858_v29 = vcombine.high %v1295_v11, %v1299_v26 }
 0x9a9   :  { %1683 = vmatpush1.bf16.msra.mxu1 %v7811_v30  ;;  %v1286_v30 = vld [vmem:[#allocation18 + $0x150] sm:$0xff] }
 0x9aa   :  { %1684 = vmatprep.subr.bf16.mxu1 %v7804_v35  ;;  %v1287_v35 = vld [vmem:[#allocation18 + $0x158] sm:$0xff] }
 0x9ad   :  { %1685 = vmatpush1.bf16.msra.mxu1 %v7803_v36  ;;  %v1291_v36 = vld [vmem:[#allocation18 + $0x178] sm:$0xff] }
 0x9ae   :  { %1752 = vmatprep.subr.bf16.mxu1 %v7864_v23  ;;  %v1910_v23 = vld [vmem:[#allocation21 + $0x1e0] sm:$0xff] }
 0xa50   :  { %v1160_v37 = vpop.f32.mrf.mxu1 }
 0xa51   :  { %v1161_v40 = vadd.f32 %v7793_v33, %v1160_v37  ;;  %v7855_v37 = vcombine.low %v1294_v10, %v1298_v14  ;;  %v1898_v14 = vld [vmem:[#allocation21 + $0x180] sm:$0xff] }
 0xa52   :  { %v8941_v38 = vpop.f32.mrf.mxu1 }
 0xa53   :  { %v1167_v48 = vadd.f32 %v1161_v40, %v10032_v19  ;;  %v7845_v19 = vcombine.low %v1285_v53, %v1289_v54  ;;  %v7848_v38 = vcombine.high %v1286_v30, %v1290_v32  ;;  %v1278_v40 = vld [vmem:[#allocation18 + $0x110] sm:$0xff] }
 0xa54   :  { %v1163_v39 = vpop.f32.mrf.mxu1 }
 0xa55   :  { %v1164_v41 = vadd.f32 %v7793_v33, %v1163_v39  ;;  %v7857_v33 = vcombine.low %v1295_v11, %v1299_v26  ;;  %v7850_v39 = vcombine.high %v1287_v35, %v1291_v36  ;;  %v1902_v11 = vld [vmem:[#allocation21 + $0x1a0] sm:$0xff] }
 0xa56   :  { %v8942_v43 = vpop.f32.mrf.mxu1  ;;  %v2026_v26 = vld [vmem:[#allocation21 + $0x580] sm:$0xff] }
 0xa57   :  { %v1168_v44 = vadd.f32 %v1164_v41, %v10040_v25  ;;  %v7846_v25 = vcombine.high %v1285_v53, %v1289_v54  ;;  %v1282_v41 = vld [vmem:[#allocation18 + $0x130] sm:$0xff]  ;;  %v7847_v43 = vcombine.low %v1286_v30, %v1290_v32  ;;  %v7841_v53 = vcombine.low %v1279_v42, %v1283_v31  ;;  %v1890_v32 = vld [vmem:[#allocation21 + $0x140] sm:$0xff] }
 0xa58   :  { %v7840_v45 = vcombine.high %v1278_v40, %v1282_v41  ;;  %v7916_v30 = vcombine.high %v1898_v14, %v1902_v11  ;;  %v1886_v42 = vld [vmem:[#allocation21 + $0x120] sm:$0xff] }
 0xa59   :  { %8944 = vmatpush3.msra.mxu0 %v1168_v44  ;;  %v7849_v44 = vcombine.low %v1287_v35, %v1291_v36  ;;  %v1894_v35 = vld [vmem:[#allocation21 + $0x160] sm:$0xff] }
 0xa5a   :  { %8945 = vmatprep.subr.mxu0 %v9731_v6  ;;  %v7837_v6 = vcombine.low %v1277_v56, %v1281_v57  ;;  %v1266_v56 = vld [vmem:[#allocation18 + $0xb0] sm:$0xff]  ;;  %v1263_v57 = vld [vmem:[#allocation18 + $0x98] sm:$0xff]  ;;  %v2018_v36 = vld [vmem:[#allocation21 + $0x540] sm:$0xff] }
 0xa5b   :  { %8946 = vmatpush3.msra.mxu0 %v1167_v48  ;;  %v1274_v48 = vld [vmem:[#allocation18 + $0xf0] sm:$0xff]  ;;  %v2010_v31 = vld [vmem:[#allocation21 + $0x500] sm:$0xff] }
 0xa5c   :  { %8948 = vmatmul.mubr.msk.f32.vlgmr.msra.gmra.mxu0 %vm293_vm0, %v1169_v49  ;;  %1711 = vmatprep.subr.bf16.mxu0 %v7862_v47  ;;  %v1270_v47 = vld [vmem:[#allocation18 + $0xd0] sm:$0xff]  ;;  %v1271_v49 = vld [vmem:[#allocation18 + $0xd8] sm:$0xff] }
 0xa5d   :  { %1712 = vmatpush1.bf16.msra.mxu0 %v7861_v50  ;;  %1743 = vmatprep.mubr.bf16.mxu0 %v9733_v9  ;;  %v1275_v50 = vld [vmem:[#allocation18 + $0xf8] sm:$0xff]  ;;  %v7832_v54 = vcombine.high %v1270_v47, %v1274_v48 }
 0xa5e   :  { %1713 = vmatprep.subr.bf16.mxu0 %v7854_v51  ;;  %v7839_v51 = vcombine.low %v1278_v40, %v1282_v41  ;;  %v7833_v59 = vcombine.low %v1271_v49, %v1275_v50  ;;  %v1882_v41 = vld [vmem:[#allocation21 + $0x100] sm:$0xff] }
 0xa61   :  { %1714 = vmatpush1.bf16.msra.mxu0 %v7853_v55  ;;  %v7834_v55 = vcombine.high %v1271_v49, %v1275_v50  ;;  %v2002_v49 = vld [vmem:[#allocation21 + $0x4c0] sm:$0xff] }
 0xa62   :  { %1715 = vmatprep.subr.bf16.mxu0 %v7846_v25  ;;  %v1262_v25 = vld [vmem:[#allocation18 + $0x90] sm:$0xff]  ;;  %v2006_v50 = vld [vmem:[#allocation21 + $0x4e0] sm:$0xff] }
 0xa63   :  { %v7824_v60 = vcombine.high %v1262_v25, %v1266_v56 }
 0xa65   :  { %1716 = vmatpush1.bf16.msra.mxu0 %v7845_v19  ;;  %v1267_v19 = vld [vmem:[#allocation18 + $0xb8] sm:$0xff] }
 0xa66   :  { %1717 = vmatprep.subr.bf16.mxu0 %v7838_v58  ;;  %v7831_v58 = vcombine.low %v1270_v47, %v1274_v48  ;;  %v7825_v2 = vcombine.low %v1263_v57, %v1267_v19  ;;  %v1874_v47 = vld [vmem:[#allocation21 + $0xc0] sm:$0xff] }
 0xa67   :  { %v1878_v48 = vld [vmem:[#allocation21 + $0xe0] sm:$0xff] }
 0xa69   :  { %1718 = vmatpush1.bf16.msra.mxu0 %v7837_v6  ;;  %v7826_v6 = vcombine.high %v1263_v57, %v1267_v19  ;;  %v1994_v57 = vld [vmem:[#allocation21 + $0x480] sm:$0xff] }
 0xa6a   :  { %1719 = vmatprep.subr.bf16.mxu0 %v7830_v61  ;;  %v1254_v61 = vld [vmem:[#allocation18 + $0x50] sm:$0xff]  ;;  %v1998_v19 = vld [vmem:[#allocation21 + $0x4a0] sm:$0xff] }
 0xa6b   :  { %v7816_v3 = vcombine.high %v1254_v61, %v1258_v62 }
 0xa6d   :  { %1720 = vmatpush1.bf16.msra.mxu0 %v7829_v0  ;;  %v1259_v0 = vld [vmem:[#allocation18 + $0x78] sm:$0xff] }
 0xa6e   :  { %1721 = vmatprep.subr.bf16.mxu0 %v7822_v1  ;;  %v7823_v1 = vcombine.low %v1262_v25, %v1266_v56  ;;  %v1866_v25 = vld [vmem:[#allocation21 + $0x80] sm:$0xff] }
 0xa6f   :  { %v1870_v56 = vld [vmem:[#allocation21 + $0xa0] sm:$0xff] }
 0xa71   :  { %1722 = vmatpush1.bf16.msra.mxu0 %v7821_v4  ;;  %v7818_v4 = vcombine.high %v1255_v63, %v1259_v0 }
 0xa72   :  { %1723 = vmatprep.subr.bf16.mxu0 %v7814_v15  ;;  %v1246_v15 = vld [vmem:[#allocation18 + $0x10] sm:$0xff] }
 0xa73   :  { %v7808_v21 = vcombine.high %v1246_v15, %v1250_v5 }
 0xa75   :  { %1724 = vmatpush1.bf16.msra.mxu0 %v7813_v17  ;;  %v1251_v17 = vld [vmem:[#allocation18 + $0x38] sm:$0xff] }
 0xa76   :  { %1725 = vmatprep.subr.bf16.mxu0 %v7806_v18  ;;  %v7815_v18 = vcombine.low %v1254_v61, %v1258_v62  ;;  %v7810_v52 = vcombine.high %v1247_v16, %v1251_v17  ;;  %v1858_v61 = vld [vmem:[#allocation21 + $0x40] sm:$0xff] }
 0xa77   :  { %v1862_v62 = vld [vmem:[#allocation21 + $0x60] sm:$0xff] }
 0xa79   :  { %1726 = vmatpush1.bf16.msra.mxu0 %v7805_v20  ;;  %v7817_v20 = vcombine.low %v1255_v63, %v1259_v0  ;;  %v1986_v63 = vld [vmem:[#allocation21 + $0x440] sm:$0xff] }
 0xa7a   :  { %1793 = vmatprep.subr.bf16.mxu0 %v7866_v8  ;;  %v7809_v8 = vcombine.low %v1247_v16, %v1251_v17  ;;  %v1990_v0 = vld [vmem:[#allocation21 + $0x460] sm:$0xff] }
 0xa7b   :  { %v1978_v16 = vld [vmem:[#allocation21 + $0x400] sm:$0xff] }
 0xa7c   :  { %v1982_v17 = vld [vmem:[#allocation21 + $0x420] sm:$0xff] }
 0xb1c   :  { %v1239_v27 = vpop.f32.mrf.mxu0 }
 0xb1d   :  { %v10088_v28 = vpack.c.bf16 %v1239_v27, %v1239_v27  ;;  %v2030_v27 = vld [vmem:[#allocation21 + $0x5a0] sm:$0xff] }
 0xb1e   :  { %v8949_v34 = vpop.f32.mrf.mxu0 }
 0xb1f   :  { %1703 = vmatmul.mubr.bf16.vlgmr.msra.gmra.mxu1 %v10088_v28  ;;  %1744 = vmatmul.mubr.bf16.vlgmr.msra.gmra.mxu0 %v10088_v28  ;;  %v8044_v34 = vcombine.high %v2026_v26, %v2030_v27 }
 0xb20   :  { %1753 = vmatpush1.bf16.msra.mxu1 %v7863_v13  ;;  %1794 = vmatpush1.bf16.msra.mxu0 %v7865_v7  ;;  %v2038_v13 = vld [vmem:[#allocation21 + $0x5e0] sm:$0xff]  ;;  %v7807_v7 = vcombine.low %v1246_v15, %v1250_v5 }
 0xb21   :  { %1754 = vmatprep.subr.bf16.mxu1 %v7856_v12  ;;  %1795 = vmatprep.subr.bf16.mxu0 %v7858_v29  ;;  %v8052_v10 = vcombine.high %v2034_v24, %v2038_v13  ;;  %v7923_v12 = vcombine.low %v1906_v22, %v1910_v23  ;;  %v8051_v29 = vcombine.low %v2034_v24, %v2038_v13  ;;  %v1850_v15 = vld [vmem:[#allocation21] sm:$0xff] }
 0xb22   :  { %1784 = vmatprep.mubr.bf16.mxu1 %v9733_v9  ;;  %1825 = vmatprep.mubr.bf16.mxu0 %v9733_v9  ;;  %v7924_v9 = vcombine.high %v1906_v22, %v1910_v23  ;;  %v1854_v5 = vld [vmem:[#allocation21 + $0x20] sm:$0xff] }
 0xb23   :  { %v1970_v22 = vld [vmem:[#allocation21 + $0x3c0] sm:$0xff] }
 0xb24   :  { %1755 = vmatpush1.bf16.msra.mxu1 %v7855_v37  ;;  %1796 = vmatpush1.bf16.msra.mxu0 %v7857_v33  ;;  %v2022_v37 = vld [vmem:[#allocation21 + $0x560] sm:$0xff]  ;;  %v7915_v33 = vcombine.low %v1898_v14, %v1902_v11 }
 0xb25   :  { %1756 = vmatprep.subr.bf16.mxu1 %v7848_v38  ;;  %1797 = vmatprep.subr.bf16.mxu0 %v7850_v39  ;;  %v8043_v38 = vcombine.low %v2026_v26, %v2030_v27  ;;  %v7908_v39 = vcombine.high %v1890_v32, %v1894_v35  ;;  %v8036_v40 = vcombine.high %v2018_v36, %v2022_v37  ;;  %v1974_v23 = vld [vmem:[#allocation21 + $0x3e0] sm:$0xff] }
 0xb26   :  { %v2098_v24 = vld [vmem:[#allocation21 + $0x7c0] sm:$0xff] }
 0xb27   :  { %v2102_v13 = vld [vmem:[#allocation21 + $0x7e0] sm:$0xff] }
 0xb28   :  { %1757 = vmatpush1.bf16.msra.mxu1 %v7847_v43  ;;  %1798 = vmatpush1.bf16.msra.mxu0 %v7849_v44  ;;  %v2014_v43 = vld [vmem:[#allocation21 + $0x520] sm:$0xff]  ;;  %v7907_v44 = vcombine.low %v1890_v32, %v1894_v35 }
 0xb29   :  { %1758 = vmatprep.subr.bf16.mxu1 %v7840_v45  ;;  %1799 = vmatprep.subr.bf16.mxu0 %v7842_v46  ;;  %v8035_v45 = vcombine.low %v2018_v36, %v2022_v37  ;;  %v7900_v46 = vcombine.high %v1882_v41, %v1886_v42  ;;  %v1962_v14 = vld [vmem:[#allocation21 + $0x380] sm:$0xff] }
 0xb2a   :  { %v1966_v11 = vld [vmem:[#allocation21 + $0x3a0] sm:$0xff] }
 0xb2b   :  { %v2090_v26 = vld [vmem:[#allocation21 + $0x780] sm:$0xff] }
 0xb2c   :  { %1759 = vmatpush1.bf16.msra.mxu1 %v7839_v51  ;;  %1800 = vmatpush1.bf16.msra.mxu0 %v7841_v53  ;;  %v7899_v51 = vcombine.low %v1882_v41, %v1886_v42  ;;  %v8027_v53 = vcombine.low %v2010_v31, %v2014_v43  ;;  %v2094_v27 = vld [vmem:[#allocation21 + $0x7a0] sm:$0xff] }
 0xb2d   :  { %1760 = vmatprep.subr.bf16.mxu1 %v7832_v54  ;;  %1801 = vmatprep.subr.bf16.mxu0 %v7834_v55  ;;  %v7892_v54 = vcombine.high %v1874_v47, %v1878_v48  ;;  %v8020_v55 = vcombine.high %v2002_v49, %v2006_v50  ;;  %v1954_v32 = vld [vmem:[#allocation21 + $0x340] sm:$0xff] }
 0xb2e   :  { %v1958_v35 = vld [vmem:[#allocation21 + $0x360] sm:$0xff] }
 0xb2f   :  { %v2082_v36 = vld [vmem:[#allocation21 + $0x740] sm:$0xff] }
 0xb30   :  { %1761 = vmatpush1.bf16.msra.mxu1 %v7831_v58  ;;  %1802 = vmatpush1.bf16.msra.mxu0 %v7833_v59  ;;  %v7891_v58 = vcombine.low %v1874_v47, %v1878_v48  ;;  %v8019_v59 = vcombine.low %v2002_v49, %v2006_v50  ;;  %v2086_v37 = vld [vmem:[#allocation21 + $0x760] sm:$0xff] }
 0xb31   :  { %1762 = vmatprep.subr.bf16.mxu1 %v7824_v60  ;;  %1803 = vmatprep.subr.bf16.mxu0 %v7826_v6  ;;  %v7884_v60 = vcombine.high %v1866_v25, %v1870_v56  ;;  %v8012_v6 = vcombine.high %v1994_v57, %v1998_v19  ;;  %v1946_v41 = vld [vmem:[#allocation21 + $0x300] sm:$0xff] }
 0xb32   :  { %v1950_v42 = vld [vmem:[#allocation21 + $0x320] sm:$0xff] }
 0xb33   :  { %v1942_v48 = vld [vmem:[#allocation21 + $0x2e0] sm:$0xff] }
 0xb34   :  { %1763 = vmatpush1.bf16.msra.mxu1 %v7823_v1  ;;  %1804 = vmatpush1.bf16.msra.mxu0 %v7825_v2  ;;  %v7883_v1 = vcombine.low %v1866_v25, %v1870_v56  ;;  %v8011_v2 = vcombine.low %v1994_v57, %v1998_v19  ;;  %v2066_v49 = vld [vmem:[#allocation21 + $0x6c0] sm:$0xff] }
 0xb35   :  { %1764 = vmatprep.subr.bf16.mxu1 %v7816_v3  ;;  %1805 = vmatprep.subr.bf16.mxu0 %v7818_v4  ;;  %v7876_v3 = vcombine.high %v1858_v61, %v1862_v62  ;;  %v8004_v4 = vcombine.high %v1986_v63, %v1990_v0  ;;  %v2070_v50 = vld [vmem:[#allocation21 + $0x6e0] sm:$0xff] }
 0xb36   :  { %v10100_v25 = vld [vmem:[#allocation21 + $0xde0] sm:$0xff] }
 0xb38   :  { %1765 = vmatpush1.bf16.msra.mxu1 %v7815_v18  ;;  %1806 = vmatpush1.bf16.msra.mxu0 %v7817_v20  ;;  %v7875_v18 = vcombine.low %v1858_v61, %v1862_v62  ;;  %v8003_v20 = vcombine.low %v1986_v63, %v1990_v0  ;;  %v2058_v61 = vld [vmem:[#allocation21 + $0x680] sm:$0xff]  ;;  %v8083_v0 = vcombine.low %v2066_v49, %v2070_v50 }
 0xb39   :  { %1766 = vmatprep.subr.bf16.mxu1 %v7808_v21  ;;  %1807 = vmatprep.subr.bf16.mxu0 %v7810_v52  ;;  %v7868_v21 = vcombine.high %v1850_v15, %v1854_v5  ;;  %v7996_v52 = vcombine.high %v1978_v16, %v1982_v17  ;;  %v2062_v62 = vld [vmem:[#allocation21 + $0x6a0] sm:$0xff] }
 0xb3c   :  { %1767 = vmatpush1.bf16.msra.mxu1 %v7807_v7  ;;  %1808 = vmatpush1.bf16.msra.mxu0 %v7809_v8  ;;  %v7867_v7 = vcombine.low %v1850_v15, %v1854_v5  ;;  %v7995_v8 = vcombine.low %v1978_v16, %v1982_v17  ;;  %v2050_v15 = vld [vmem:[#allocation21 + $0x640] sm:$0xff]  ;;  %v8075_v17 = vcombine.low %v2058_v61, %v2062_v62 }
 0xb3d   :  { %4964 = vmatprep.subr.bf16.mxu1 %v7924_v9  ;;  %5005 = vmatprep.subr.bf16.mxu0 %v8052_v10  ;;  %v7988_v9 = vcombine.high %v1970_v22, %v1974_v23  ;;  %v8116_v10 = vcombine.high %v2098_v24, %v2102_v13  ;;  %v2054_v5 = vld [vmem:[#allocation21 + $0x660] sm:$0xff] }
 0xb3f   :  { %1785 = vmatmul.mubr.bf16.vlgmr.msra.gmra.mxu1 %v10088_v28  ;;  %1826 = vmatmul.mubr.bf16.vlgmr.msra.gmra.mxu0 %v10088_v28  ;;  %v8028_v28 = vcombine.high %v2010_v31, %v2014_v43  ;;  %v2074_v31 = vld [vmem:[#allocation21 + $0x700] sm:$0xff] }
 0xb40   :  { %4965 = vmatpush1.bf16.msra.mxu1 %v7923_v12  ;;  %5006 = vmatpush1.bf16.msra.mxu0 %v8051_v29  ;;  %v7987_v12 = vcombine.low %v1970_v22, %v1974_v23  ;;  %v8115_v29 = vcombine.low %v2098_v24, %v2102_v13  ;;  %v2078_v43 = vld [vmem:[#allocation21 + $0x720] sm:$0xff]  ;;  %v8067_v13 = vcombine.low %v2050_v15, %v2054_v5 }
 0xb41   :  { %4966 = vmatprep.subr.bf16.mxu1 %v7916_v30  ;;  %5007 = vmatprep.subr.bf16.mxu0 %v8044_v34  ;;  %v7980_v30 = vcombine.high %v1962_v14, %v1966_v11  ;;  %v8108_v34 = vcombine.high %v2090_v26, %v2094_v27  ;;  %v8092_v47 = vcombine.high %v2074_v31, %v2078_v43  ;;  %v2042_v22 = vld [vmem:[#allocation21 + $0x600] sm:$0xff] }
 0xb42   :  { %v8091_v56 = vcombine.low %v2074_v31, %v2078_v43  ;;  %v2046_v23 = vld [vmem:[#allocation21 + $0x620] sm:$0xff] }
 0xb44   :  { %4967 = vmatpush1.bf16.msra.mxu1 %v7915_v33  ;;  %5008 = vmatpush1.bf16.msra.mxu0 %v8043_v38  ;;  %v7979_v33 = vcombine.low %v1962_v14, %v1966_v11  ;;  %v8107_v38 = vcombine.low %v2090_v26, %v2094_v27  ;;  %v1310_v26 = vlaneseq }
 0xb45   :  { %4968 = vmatprep.subr.bf16.mxu1 %v7908_v39  ;;  %5009 = vmatprep.subr.bf16.mxu0 %v8036_v40  ;;  %v7972_v39 = vcombine.high %v1954_v32, %v1958_v35  ;;  %v8100_v40 = vcombine.high %v2082_v36, %v2086_v37 }
 0xb46   :  { %v10110_v27 = vshrl.u32 %v1310_v26, 7  ;;  %v2254_v26 = vld [vmem:[#allocation21 + $0xca0] sm:$0xff] }
 0xb48   :  { %4969 = vmatpush1.bf16.msra.mxu1 %v7907_v44  ;;  %5010 = vmatpush1.bf16.msra.mxu0 %v8035_v45  ;;  %v7971_v44 = vcombine.low %v1954_v32, %v1958_v35  ;;  %v8099_v45 = vcombine.low %v2082_v36, %v2086_v37  ;;  %v10124_v32 = vsub.s32 3, %v10110_v27 }
 0xb49   :  { %4970 = vmatprep.subr.bf16.mxu1 %v7900_v46  ;;  %5011 = vmatprep.subr.bf16.mxu0 %v8028_v28  ;;  %v1938_v46 = vld [vmem:[#allocation21 + $0x2c0] sm:$0xff]  ;;  %v7964_v28 = vcombine.high %v1946_v41, %v1950_v42 }
 0xb4a   :  { %v7955_v63 = vcombine.low %v1938_v46, %v1942_v48 }
 0xb4c   :  { %4971 = vmatpush1.bf16.msra.mxu1 %v7899_v51  ;;  %5012 = vmatpush1.bf16.msra.mxu0 %v8027_v53  ;;  %v10094_v51 = vld [vmem:[#allocation21 + $0x9c0] sm:$0xff] }
 0xb4d   :  { %4972 = vmatprep.subr.bf16.mxu1 %v7892_v54  ;;  %5013 = vmatprep.subr.bf16.mxu0 %v8020_v55  ;;  %v10096_v53 = vld [vmem:[#allocation21 + $0x9e0] sm:$0xff]  ;;  %v7963_v55 = vcombine.low %v1946_v41, %v1950_v42 }
 0xb4e   :  { %v10098_v54 = vld [vmem:[#allocation21 + $0xdc0] sm:$0xff]  ;;  %v8179_v57 = vcombine.low %v10094_v51, %v10096_v53  ;;  %v8180_v14 = vcombine.high %v10094_v51, %v10096_v53 }
 0xb4f   :  { %v8307_v19 = vcombine.low %v10098_v54, %v10100_v25  ;;  %v8308_v11 = vcombine.high %v10098_v54, %v10100_v25  ;;  %v2130_v54 = vld [vmem:[#allocation21 + $0x8c0] sm:$0xff] }
 0xb50   :  { %4973 = vmatpush1.bf16.msra.mxu1 %v7891_v58  ;;  %5014 = vmatpush1.bf16.msra.mxu0 %v8019_v59  ;;  %v7956_v58 = vcombine.high %v1938_v46, %v1942_v48  ;;  %v8084_v59 = vcombine.high %v2066_v49, %v2070_v50  ;;  %v2154_v48 = vld [vmem:[#allocation21 + $0x980] sm:$0xff] }
 0xb51   :  { %4974 = vmatprep.subr.bf16.mxu1 %v7884_v60  ;;  %5015 = vmatprep.subr.bf16.mxu0 %v8012_v6  ;;  %v1930_v60 = vld [vmem:[#allocation21 + $0x280] sm:$0xff] }
 0xb52   :  { %v1934_v6 = vld [vmem:[#allocation21 + $0x2a0] sm:$0xff] }
 0xb53   :  { %v7947_v16 = vcombine.low %v1930_v60, %v1934_v6  ;;  %v2134_v25 = vld [vmem:[#allocation21 + $0x8e0] sm:$0xff] }
 0xb54   :  { %4975 = vmatpush1.bf16.msra.mxu1 %v7883_v1  ;;  %5016 = vmatpush1.bf16.msra.mxu0 %v8011_v2  ;;  %v7948_v1 = vcombine.high %v1930_v60, %v1934_v6  ;;  %v8076_v2 = vcombine.high %v2058_v61, %v2062_v62 }
 0xb55   :  { %4976 = vmatprep.subr.bf16.mxu1 %v7876_v3  ;;  %5017 = vmatprep.subr.bf16.mxu0 %v8004_v4  ;;  %v1922_v3 = vld [vmem:[#allocation21 + $0x240] sm:$0xff] }
 0xb56   :  { %v1926_v4 = vld [vmem:[#allocation21 + $0x260] sm:$0xff] }
 0xb57   :  { %v7939_v24 = vcombine.low %v1922_v3, %v1926_v4 }
 0xb58   :  { %4977 = vmatpush1.bf16.msra.mxu1 %v7875_v18  ;;  %5018 = vmatpush1.bf16.msra.mxu0 %v8003_v20  ;;  %v7940_v18 = vcombine.high %v1922_v3, %v1926_v4  ;;  %v8068_v20 = vcombine.high %v2050_v15, %v2054_v5  ;;  %v2150_v3 = vld [vmem:[#allocation21 + $0x960] sm:$0xff] }
 0xb59   :  { %4978 = vmatprep.subr.bf16.mxu1 %v7868_v21  ;;  %5019 = vmatprep.subr.bf16.mxu0 %v7996_v52  ;;  %v1914_v21 = vld [vmem:[#allocation21 + $0x200] sm:$0xff] }
 0xb5a   :  { %v1918_v52 = vld [vmem:[#allocation21 + $0x220] sm:$0xff] }
 0xb5b   :  { %v2274_v4 = vld [vmem:[#allocation21 + $0xd40] sm:$0xff] }
 0xb5c   :  { %4979 = vmatpush1.bf16.msra.mxu1 %v7867_v7  ;;  %5020 = vmatpush1.bf16.msra.mxu0 %v7995_v8  ;;  %v7932_v7 = vcombine.high %v1914_v21, %v1918_v52  ;;  %v8060_v8 = vcombine.high %v2042_v22, %v2046_v23  ;;  %v2278_v15 = vld [vmem:[#allocation21 + $0xd60] sm:$0xff] }
 0xb5d   :  { %4980 = vmatprep.subr.bf16.mxu1 %v7988_v9  ;;  %5021 = vmatprep.subr.bf16.mxu0 %v8116_v10  ;;  %v7931_v9 = vcombine.low %v1914_v21, %v1918_v52  ;;  %v8059_v10 = vcombine.low %v2042_v22, %v2046_v23  ;;  %v2142_v21 = vld [vmem:[#allocation21 + $0x920] sm:$0xff] }
 0xb5e   :  { %v2266_v52 = vld [vmem:[#allocation21 + $0xd00] sm:$0xff] }
 0xb5f   :  { %v2270_v22 = vld [vmem:[#allocation21 + $0xd20] sm:$0xff] }
 0xb60   :  { %4981 = vmatpush2.bf16.msra.mxu1 %v7987_v12  ;;  %5022 = vmatpush2.bf16.msra.mxu0 %v8115_v29  ;;  %v10113_v12 = vsub.s32 0, %v10110_v27  ;;  %v10116_v29 = vsub.s32 2, %v10110_v27  ;;  %v8284_v53 = vcombine.high %v2266_v52, %v2270_v22 }
 0xb61   :  { %4982 = vmatprep.subr.bf16.mxu1 %v7980_v30  ;;  %5023 = vmatprep.subr.bf16.mxu0 %v8108_v34  ;;  %v10118_v30 = vld [vmem:[#allocation19] sm:$0xff]  ;;  %v10121_v34 = vsub.s32 1, %v10110_v27 }
 0xb62   :  { %v1313_v35 = vrot.slane %v10118_v30, %v10113_v12  ;;  %v1321_v36 = vrot.slane %v10118_v30, %v10116_v29 }
 0xb63   :  { %v1317_v37 = vrot.slane %v10118_v30, %v10121_v34 }
 0xb64   :  { %4983 = vmatpush2.bf16.msra.mxu1 %v7979_v33  ;;  %5024 = vmatpush2.bf16.msra.mxu0 %v8107_v38  ;;  %v1325_v33 = vrot.slane %v10118_v30, %v10124_v32 }
 0xb65   :  { %4984 = vmatprep.subr.bf16.mxu1 %v7972_v39  ;;  %5025 = vmatprep.subr.bf16.mxu0 %v8100_v40 }
 0xb68   :  { %4985 = vmatpush2.bf16.msra.mxu1 %v7971_v44  ;;  %5026 = vmatpush2.bf16.msra.mxu0 %v8099_v45 }
 0xb69   :  { %4986 = vmatprep.subr.bf16.mxu1 %v7964_v28  ;;  %5027 = vmatprep.subr.bf16.mxu0 %v8092_v47 }
 0xb6c   :  { %4987 = vmatpush2.bf16.msra.mxu1 %v7963_v55  ;;  %5028 = vmatpush2.bf16.msra.mxu0 %v8091_v56  ;;  %v2158_v55 = vld [vmem:[#allocation21 + $0x9a0] sm:$0xff] }
 0xb6d   :  { %4988 = vmatprep.subr.bf16.mxu1 %v7956_v58  ;;  %5029 = vmatprep.subr.bf16.mxu0 %v8084_v59  ;;  %v2282_v56 = vld [vmem:[#allocation21 + $0xd80] sm:$0xff]  ;;  %v8171_v5 = vcombine.low %v2154_v48, %v2158_v55 }
 0xb6e   :  { %v2286_v58 = vld [vmem:[#allocation21 + $0xda0] sm:$0xff] }
 0xb70   :  { %4989 = vmatpush2.bf16.msra.mxu1 %v7955_v63  ;;  %5030 = vmatpush2.bf16.msra.mxu0 %v8083_v0  ;;  %v8172_v0 = vcombine.high %v2154_v48, %v2158_v55  ;;  %v2234_v48 = vld [vmem:[#allocation21 + $0xc00] sm:$0xff] }
 0xb71   :  { %4990 = vmatprep.subr.bf16.mxu1 %v7948_v1  ;;  %5031 = vmatprep.subr.bf16.mxu0 %v8076_v2  ;;  %v8300_v1 = vcombine.high %v2282_v56, %v2286_v58  ;;  %v2146_v2 = vld [vmem:[#allocation21 + $0x940] sm:$0xff] }
 0xb72   :  { %v8163_v23 = vcombine.low %v2146_v2, %v2150_v3 }
 0xb74   :  { %4991 = vmatpush2.bf16.msra.mxu1 %v7947_v16  ;;  %5032 = vmatpush2.bf16.msra.mxu0 %v8075_v17  ;;  %v8299_v16 = vcombine.low %v2282_v56, %v2286_v58  ;;  %v8164_v17 = vcombine.high %v2146_v2, %v2150_v3  ;;  %v2226_v2 = vld [vmem:[#allocation21 + $0xbc0] sm:$0xff] }
 0xb75   :  { %4992 = vmatprep.subr.bf16.mxu1 %v7940_v18  ;;  %5033 = vmatprep.subr.bf16.mxu0 %v8068_v20  ;;  %v8292_v18 = vcombine.high %v2274_v4, %v2278_v15  ;;  %v2138_v20 = vld [vmem:[#allocation21 + $0x900] sm:$0xff] }
 0xb76   :  { %v8156_v51 = vcombine.high %v2138_v20, %v2142_v21  ;;  %v2230_v3 = vld [vmem:[#allocation21 + $0xbe0] sm:$0xff] }
 0xb78   :  { %4993 = vmatpush2.bf16.msra.mxu1 %v7939_v24  ;;  %5034 = vmatpush2.bf16.msra.mxu0 %v8067_v13  ;;  %v8291_v24 = vcombine.low %v2274_v4, %v2278_v15  ;;  %v8155_v13 = vcombine.low %v2138_v20, %v2142_v21  ;;  %v2354_v4 = vld [vmem:[#allocation21 + $0xfc0] sm:$0xff] }
 0xb79   :  { %4994 = vmatprep.subr.bf16.mxu1 %v7932_v7  ;;  %5035 = vmatprep.subr.bf16.mxu0 %v8060_v8  ;;  %v8283_v7 = vcombine.low %v2266_v52, %v2270_v22  ;;  %v8148_v8 = vcombine.high %v2130_v54, %v2134_v25  ;;  %v2358_v15 = vld [vmem:[#allocation21 + $0xfe0] sm:$0xff] }
 0xb7c   :  { %4995 = vmatpush2.bf16.msra.mxu1 %v7931_v9  ;;  %5036 = vmatpush2.bf16.msra.mxu0 %v8059_v10  ;;  %v2122_v10 = vld [vmem:[#allocation21 + $0x880] sm:$0xff] }
 0xb7d   :  { %5046 = vmatprep.subr.bf16.mxu1 %v8180_v14  ;;  %5087 = vmatprep.subr.bf16.mxu0 %v8308_v11  ;;  %v2126_v14 = vld [vmem:[#allocation21 + $0x8a0] sm:$0xff] }
 0xb7e   :  { %v2250_v11 = vld [vmem:[#allocation21 + $0xc80] sm:$0xff] }
 0xbdf   :  { %v1704_v38 = vpop.f32.mrf.mxu1  ;;  %v1745_v39 = vpop.f32.mrf.mxu0 }
 0xbe0   :  { %v1705_v40 = vadd.f32 %v1704_v38, %v1313_v35  ;;  %v1746_v41 = vadd.f32 %v1745_v39, %v1321_v36  ;;  %v8147_v35 = vcombine.low %v2130_v54, %v2134_v25  ;;  %v2114_v38 = vld [vmem:[#allocation21 + $0x840] sm:$0xff] }
 0xbe1   :  { %v1706_v42 = vpop.f32.mrf.mxu1  ;;  %v1747_v31 = vpop.f32.mrf.mxu0  ;;  %v2118_v39 = vld [vmem:[#allocation21 + $0x860] sm:$0xff] }
 0xbe2   :  { %v1707_v43 = vadd.f32 %v1706_v42, %v1317_v37  ;;  %v1748_v44 = vadd.f32 %v1747_v31, %v1325_v33  ;;  %v1834_v45 = vmax.f32 %v1705_v40, 0.0  ;;  %v1836_v46 = vmax.f32 %v1746_v41, 0.0  ;;  %v2242_v40 = vld [vmem:[#allocation21 + $0xc40] sm:$0xff] }
 0xbe3   :  { %v1708_v28 = vpop.f32.mrf.mxu1  ;;  %v1749_v47 = vpop.f32.mrf.mxu0  ;;  %v8140_v37 = vcombine.high %v2122_v10, %v2126_v14  ;;  %v8268_v33 = vcombine.high %v2250_v11, %v2254_v26  ;;  %v2246_v41 = vld [vmem:[#allocation21 + $0xc60] sm:$0xff]  ;;  %v1332_v42 = vsub.s32 5, %v10110_v27  ;;  %v8139_v31 = vcombine.low %v2122_v10, %v2126_v14 }
 0xbe4   :  { %v1835_v49 = vmax.f32 %v1707_v43, 0.0  ;;  %v1837_v50 = vmax.f32 %v1748_v44, 0.0  ;;  %v10138_v62 = vpack.c.bf16 %v1834_v45, %v1834_v45  ;;  %v10140_v63 = vpack.c.bf16 %v1836_v46, %v1836_v46  ;;  %v2106_v28 = vld [vmem:[#allocation21 + $0x800] sm:$0xff] }
 0xbe5   :  { %v1709_v59 = vpop.f32.mrf.mxu1  ;;  %v1750_v60 = vpop.f32.mrf.mxu0  ;;  %v8267_v43 = vcombine.low %v2250_v11, %v2254_v26  ;;  %v1340_v44 = vsub.s32 7, %v10110_v27  ;;  %v8132_v45 = vcombine.high %v2114_v38, %v2118_v39  ;;  %v8260_v46 = vcombine.high %v2242_v40, %v2246_v41  ;;  %v2110_v47 = vld [vmem:[#allocation21 + $0x820] sm:$0xff] }
 0xbe6   :  { %v10134_v6 = vpack.c.bf16 %v1835_v49, %v1835_v49  ;;  %v10136_v61 = vpack.c.bf16 %v1837_v50, %v1837_v50  ;;  %v2238_v49 = vld [vmem:[#allocation21 + $0xc20] sm:$0xff]  ;;  %v1333_v50 = vrot.slane %v10118_v30, %v1332_v42  ;;  %v8131_v56 = vcombine.low %v2114_v38, %v2118_v39 }
 0xbe7   :  { %v1341_v55 = vrot.slane %v10118_v30, %v1340_v44  ;;  %v8259_v58 = vcombine.low %v2242_v40, %v2246_v41  ;;  %v8251_v21 = vcombine.low %v2234_v48, %v2238_v49  ;;  %v2222_v25 = vld [vmem:[#allocation21 + $0xba0] sm:$0xff]  ;;  %v8371_v14 = vcombine.low %v2354_v4, %v2358_v15 }
 0xbe8   :  { %4996 = vmatprep.mubr.bf16.mxu1 %v10134_v6  ;;  %5037 = vmatprep.mubr.bf16.mxu0 %v10136_v61 }
 0xbe9   :  { %4997 = vmatmul.mubr.bf16.vlgmr.msra.gmra.mxu1 %v10138_v62  ;;  %5038 = vmatmul.mubr.bf16.vlgmr.msra.gmra.mxu0 %v10140_v63 }
 0xbea   :  { %5047 = vmatpush1.bf16.msra.mxu1 %v8179_v57  ;;  %5088 = vmatpush1.bf16.msra.mxu0 %v8307_v19  ;;  %v2258_v57 = vld [vmem:[#allocation21 + $0xcc0] sm:$0xff] }
 0xbeb   :  { %5048 = vmatprep.subr.bf16.mxu1 %v8172_v0  ;;  %5089 = vmatprep.subr.bf16.mxu0 %v8300_v1  ;;  %v2262_v19 = vld [vmem:[#allocation21 + $0xce0] sm:$0xff]  ;;  %v8124_v0 = vcombine.high %v2106_v28, %v2110_v47  ;;  %v8252_v1 = vcombine.high %v2234_v48, %v2238_v49 }
 0xbec   :  { %v8276_v9 = vcombine.high %v2258_v57, %v2262_v19  ;;  %v8275_v36 = vcombine.low %v2258_v57, %v2262_v19  ;;  %v2346_v57 = vld [vmem:[#allocation21 + $0xf80] sm:$0xff] }
 0xbed   :  { %v2350_v19 = vld [vmem:[#allocation21 + $0xfa0] sm:$0xff] }
 0xbee   :  { %5049 = vmatpush1.bf16.msra.mxu1 %v8171_v5  ;;  %5090 = vmatpush1.bf16.msra.mxu0 %v8299_v16  ;;  %v8364_v26 = vcombine.high %v2346_v57, %v2350_v19  ;;  %v8363_v39 = vcombine.low %v2346_v57, %v2350_v19 }
 0xbef   :  { %5050 = vmatprep.subr.bf16.mxu1 %v8164_v17  ;;  %5091 = vmatprep.subr.bf16.mxu0 %v8292_v18  ;;  %v8123_v17 = vcombine.low %v2106_v28, %v2110_v47 }
 0xbf2   :  { %5051 = vmatpush1.bf16.msra.mxu1 %v8163_v23  ;;  %5092 = vmatpush1.bf16.msra.mxu0 %v8291_v24  ;;  %v8244_v23 = vcombine.high %v2226_v2, %v2230_v3  ;;  %v8372_v24 = vcombine.high %v2354_v4, %v2358_v15  ;;  %v2186_v4 = vld [vmem:[#allocation21 + $0xa80] sm:$0xff] }
 0xbf3   :  { %5052 = vmatprep.subr.bf16.mxu1 %v8156_v51  ;;  %5093 = vmatprep.subr.bf16.mxu0 %v8284_v53  ;;  %v2218_v51 = vld [vmem:[#allocation21 + $0xb80] sm:$0xff] }
 0xbf4   :  { %v8236_v11 = vcombine.high %v2218_v51, %v2222_v25  ;;  %v8235_v38 = vcombine.low %v2218_v51, %v2222_v25  ;;  %v2190_v15 = vld [vmem:[#allocation21 + $0xaa0] sm:$0xff] }
 0xbf5   :  { %v2306_v51 = vld [vmem:[#allocation21 + $0xe40] sm:$0xff]  ;;  %v8203_v25 = vcombine.low %v2186_v4, %v2190_v15 }
 0xbf6   :  { %5053 = vmatpush1.bf16.msra.mxu1 %v8155_v13  ;;  %5094 = vmatpush1.bf16.msra.mxu0 %v8283_v7 }
 0xbf7   :  { %5054 = vmatprep.subr.bf16.mxu1 %v8148_v8  ;;  %5095 = vmatprep.subr.bf16.mxu0 %v8276_v9  ;;  %v8243_v8 = vcombine.low %v2226_v2, %v2230_v3 }
 0xbfa   :  { %5055 = vmatpush1.bf16.msra.mxu1 %v8147_v35  ;;  %5096 = vmatpush1.bf16.msra.mxu0 %v8275_v36  ;;  %v2210_v35 = vld [vmem:[#allocation21 + $0xb40] sm:$0xff] }
 0xbfb   :  { %5056 = vmatprep.subr.bf16.mxu1 %v8140_v37  ;;  %5097 = vmatprep.subr.bf16.mxu0 %v8268_v33  ;;  %v2214_v36 = vld [vmem:[#allocation21 + $0xb60] sm:$0xff] }
 0xbfc   :  { %v2338_v37 = vld [vmem:[#allocation21 + $0xf40] sm:$0xff]  ;;  %v8228_v40 = vcombine.high %v2210_v35, %v2214_v36  ;;  %v8227_v28 = vcombine.low %v2210_v35, %v2214_v36 }
 0xbfd   :  { %v2342_v33 = vld [vmem:[#allocation21 + $0xf60] sm:$0xff] }
 0xbfe   :  { %5057 = vmatpush1.bf16.msra.mxu1 %v8139_v31  ;;  %5098 = vmatpush1.bf16.msra.mxu0 %v8267_v43  ;;  %v8356_v41 = vcombine.high %v2338_v37, %v2342_v33  ;;  %v2202_v31 = vld [vmem:[#allocation21 + $0xb00] sm:$0xff]  ;;  %v8355_v47 = vcombine.low %v2338_v37, %v2342_v33 }
 0xbff   :  { %v10160_v59 = vpop.f32.mrf.mxu1  ;;  %v10162_v60 = vpop.f32.mrf.mxu0  ;;  %5058 = vmatprep.subr.bf16.mxu1 %v8132_v45  ;;  %5099 = vmatprep.subr.bf16.mxu0 %v8260_v46  ;;  %v2206_v43 = vld [vmem:[#allocation21 + $0xb20] sm:$0xff] }
 0xc00   :  { %v2330_v45 = vld [vmem:[#allocation21 + $0xf00] sm:$0xff]  ;;  %v8220_v48 = vcombine.high %v2202_v31, %v2206_v43 }
 0xc01   :  { %v1788_v5 = vpop.f32.mrf.mxu1  ;;  %v1829_v16 = vpop.f32.mrf.mxu0  ;;  %v2334_v46 = vld [vmem:[#allocation21 + $0xf20] sm:$0xff] }
 0xc02   :  { %v1789_v18 = vadd.f32 %v1788_v5, %v1333_v50  ;;  %v1830_v20 = vadd.f32 %v1829_v16, %v1341_v55  ;;  %5059 = vmatpush1.bf16.msra.mxu1 %v8131_v56  ;;  %5100 = vmatpush1.bf16.msra.mxu0 %v8259_v58  ;;  %v8348_v49 = vcombine.high %v2330_v45, %v2334_v46  ;;  %v2194_v50 = vld [vmem:[#allocation21 + $0xac0] sm:$0xff] }
 0xc03   :  { %v1790_v52 = vpop.f32.mrf.mxu1  ;;  %v1831_v22 = vpop.f32.mrf.mxu0  ;;  %5060 = vmatprep.subr.bf16.mxu1 %v8124_v0  ;;  %5101 = vmatprep.subr.bf16.mxu0 %v8252_v1  ;;  %v2198_v55 = vld [vmem:[#allocation21 + $0xae0] sm:$0xff]  ;;  %v8219_v0 = vcombine.low %v2202_v31, %v2206_v43  ;;  %v8347_v1 = vcombine.low %v2330_v45, %v2334_v46  ;;  %v2039_v31 = vld [vmem:[#allocation21 + $0x5e8] sm:$0xff] }
 0xc04   :  { %v1839_v53 = vmax.f32 %v1789_v18, 0.0  ;;  %v1841_v54 = vmax.f32 %v1830_v20, 0.0  ;;  %v2322_v56 = vld [vmem:[#allocation21 + $0xec0] sm:$0xff]  ;;  %v8212_v2 = vcombine.high %v2194_v50, %v2198_v55  ;;  %v8211_v18 = vcombine.low %v2194_v50, %v2198_v55  ;;  %v2031_v50 = vld [vmem:[#allocation21 + $0x5a8] sm:$0xff] }
 0xc05   :  { %v1791_v13 = vpop.f32.mrf.mxu1  ;;  %v1832_v7 = vpop.f32.mrf.mxu0  ;;  %v2326_v58 = vld [vmem:[#allocation21 + $0xee0] sm:$0xff]  ;;  %v8204_v52 = vcombine.high %v2186_v4, %v2190_v15  ;;  %v1895_v4 = vld [vmem:[#allocation21 + $0x168] sm:$0xff] }
 0xc06   :  { %v10164_v9 = vpack.c.bf16 %v1839_v53, %v1839_v53  ;;  %v10166_v10 = vpack.c.bf16 %v1841_v54, %v1841_v54  ;;  %5061 = vmatpush1.bf16.msra.mxu1 %v8123_v17  ;;  %5102 = vmatpush1.bf16.msra.mxu0 %v8251_v21  ;;  %v8340_v3 = vcombine.high %v2322_v56, %v2326_v58  ;;  %v2314_v5 = vld [vmem:[#allocation21 + $0xe80] sm:$0xff]  ;;  %v1328_v17 = vsub.s32 4, %v10110_v27  ;;  %v2019_v15 = vld [vmem:[#allocation21 + $0x548] sm:$0xff] }
 0xc07   :  { %5062 = vmatprep.subr.bf16.mxu1 %v8244_v23  ;;  %5103 = vmatprep.subr.bf16.mxu0 %v8372_v24  ;;  %v2318_v16 = vld [vmem:[#allocation21 + $0xea0] sm:$0xff]  ;;  %v8339_v20 = vcombine.low %v2322_v56, %v2326_v58  ;;  %v1336_v21 = vsub.s32 6, %v10110_v27 }
 0xc08   :  { %5078 = vmatprep.mubr.bf16.mxu1 %v10164_v9  ;;  %5119 = vmatprep.mubr.bf16.mxu0 %v10166_v10  ;;  %v8332_v22 = vcombine.high %v2314_v5, %v2318_v16  ;;  %v2178_v23 = vld [vmem:[#allocation21 + $0xa40] sm:$0xff]  ;;  %v1329_v54 = vrot.slane %v10118_v30, %v1328_v17  ;;  %v8331_v57 = vcombine.low %v2314_v5, %v2318_v16  ;;  %v2023_v5 = vld [vmem:[#allocation21 + $0x568] sm:$0xff] }
 0xc09   :  { %v2182_v24 = vld [vmem:[#allocation21 + $0xa60] sm:$0xff]  ;;  %v1337_v19 = vrot.slane %v10118_v30, %v1336_v21 }
 0xc0a   :  { %5063 = vmatpush2.bf16.msra.mxu1 %v8243_v8  ;;  %5104 = vmatpush2.bf16.msra.mxu0 %v8371_v14  ;;  %v2310_v53 = vld [vmem:[#allocation21 + $0xe60] sm:$0xff]  ;;  %v8196_v13 = vcombine.high %v2178_v23, %v2182_v24  ;;  %v8195_v35 = vcombine.low %v2178_v23, %v2182_v24  ;;  %v1787_v33 = vadd.f32 %v10160_v59, %v1329_v54  ;;  %v1899_v59 = vld [vmem:[#allocation21 + $0x188] sm:$0xff] }
 0xc0b   :  { %5064 = vmatprep.subr.bf16.mxu1 %v8236_v11  ;;  %5105 = vmatprep.subr.bf16.mxu0 %v8364_v26  ;;  %v8324_v7 = vcombine.high %v2306_v51, %v2310_v53  ;;  %v2170_v8 = vld [vmem:[#allocation21 + $0xa00] sm:$0xff]  ;;  %v8323_v36 = vcombine.low %v2306_v51, %v2310_v53  ;;  %v1887_v23 = vld [vmem:[#allocation21 + $0x128] sm:$0xff]  ;;  %v8037_v54 = vcombine.low %v2019_v15, %v2023_v5 }
 0xc0c   :  { %v2174_v14 = vld [vmem:[#allocation21 + $0xa20] sm:$0xff]  ;;  %v1838_v46 = vmax.f32 %v1787_v33, 0.0  ;;  %v2011_v24 = vld [vmem:[#allocation21 + $0x508] sm:$0xff] }
 0xc0d   :  { %v2298_v11 = vld [vmem:[#allocation21 + $0xe00] sm:$0xff]  ;;  %v8188_v37 = vcombine.high %v2170_v8, %v2174_v14  ;;  %v8187_v43 = vcombine.low %v2170_v8, %v2174_v14  ;;  %v2015_v51 = vld [vmem:[#allocation21 + $0x528] sm:$0xff] }
 0xc0e   :  { %5065 = vmatpush2.bf16.msra.mxu1 %v8235_v38  ;;  %5106 = vmatpush2.bf16.msra.mxu0 %v8363_v39  ;;  %v2302_v26 = vld [vmem:[#allocation21 + $0xe20] sm:$0xff]  ;;  %v1828_v38 = vadd.f32 %v10162_v60, %v1337_v19  ;;  %v1907_v39 = vld [vmem:[#allocation21 + $0x1c8] sm:$0xff]  ;;  %v10180_v56 = vpack.c.bf16 %v1838_v46, %v1838_v46 }
 0xc0f   :  { %5066 = vmatprep.subr.bf16.mxu1 %v8228_v40  ;;  %5107 = vmatprep.subr.bf16.mxu0 %v8356_v41  ;;  %v8316_v30 = vcombine.high %v2298_v11, %v2302_v26  ;;  %v1911_v40 = vld [vmem:[#allocation21 + $0x1e8] sm:$0xff]  ;;  %v8315_v45 = vcombine.low %v2298_v11, %v2302_v26  ;;  %v8029_v11 = vcombine.low %v2011_v24, %v2015_v51 }
 0xc10   :  { %v2035_v41 = vld [vmem:[#allocation21 + $0x5c8] sm:$0xff]  ;;  %v7925_v55 = vcombine.low %v1907_v39, %v1911_v40 }
 0xc11   :  { %v2027_v60 = vld [vmem:[#allocation21 + $0x588] sm:$0xff] }
 0xc12   :  { %5067 = vmatpush2.bf16.msra.mxu1 %v8227_v28  ;;  %5108 = vmatpush2.bf16.msra.mxu0 %v8355_v47  ;;  %v1840_v28 = vmax.f32 %v1828_v38, 0.0  ;;  %v7926_v47 = vcombine.high %v1907_v39, %v1911_v40  ;;  %v1875_v19 = vld [vmem:[#allocation21 + $0xc8] sm:$0xff] }
 0xc13   :  { %5068 = vmatprep.subr.bf16.mxu1 %v8220_v48  ;;  %5109 = vmatprep.subr.bf16.mxu0 %v8348_v49  ;;  %v8054_v48 = vcombine.high %v2035_v41, %v2039_v31  ;;  %v1903_v49 = vld [vmem:[#allocation21 + $0x1a8] sm:$0xff] }
 0xc14   :  { %v10182_v58 = vpack.c.bf16 %v1840_v28, %v1840_v28  ;;  %v7917_v16 = vcombine.low %v1899_v59, %v1903_v49  ;;  %v2007_v8 = vld [vmem:[#allocation21 + $0x4e8] sm:$0xff] }
 0xc15   :  { %v1995_v33 = vld [vmem:[#allocation21 + $0x488] sm:$0xff] }
 0xc16   :  { %5069 = vmatpush2.bf16.msra.mxu1 %v8219_v0  ;;  %5110 = vmatpush2.bf16.msra.mxu0 %v8347_v1  ;;  %v8053_v0 = vcombine.low %v2035_v41, %v2039_v31  ;;  %v7918_v1 = vcombine.high %v1899_v59, %v1903_v49  ;;  %v1999_v38 = vld [vmem:[#allocation21 + $0x4a8] sm:$0xff] }
 0xc17   :  { %5070 = vmatprep.subr.bf16.mxu1 %v8212_v2  ;;  %5111 = vmatprep.subr.bf16.mxu0 %v8340_v3  ;;  %v8046_v2 = vcombine.high %v2027_v60, %v2031_v50  ;;  %v1891_v3 = vld [vmem:[#allocation21 + $0x148] sm:$0xff]  ;;  %v8014_v41 = vcombine.high %v1995_v33, %v1999_v38 }
 0xc18   :  { %v7909_v53 = vcombine.low %v1891_v3, %v1895_v4  ;;  %v1859_v31 = vld [vmem:[#allocation21 + $0x48] sm:$0xff] }
 0xc19   :  { %v1991_v46 = vld [vmem:[#allocation21 + $0x468] sm:$0xff] }
 0xc1a   :  { %5071 = vmatpush2.bf16.msra.mxu1 %v8211_v18  ;;  %5112 = vmatpush2.bf16.msra.mxu0 %v8339_v20  ;;  %v8045_v18 = vcombine.low %v2027_v60, %v2031_v50  ;;  %v7910_v20 = vcombine.high %v1891_v3, %v1895_v4  ;;  %v1851_v49 = vld [vmem:[#allocation21 + $0x8] sm:$0xff] }
 0xc1b   :  { %5072 = vmatprep.subr.bf16.mxu1 %v8204_v52  ;;  %5113 = vmatprep.subr.bf16.mxu0 %v8332_v22  ;;  %v8038_v52 = vcombine.high %v2019_v15, %v2023_v5  ;;  %v1883_v22 = vld [vmem:[#allocation21 + $0x108] sm:$0xff] }
 0xc1c   :  { %v7901_v14 = vcombine.low %v1883_v22, %v1887_v23  ;;  %v1855_v60 = vld [vmem:[#allocation21 + $0x28] sm:$0xff] }
 0xc1d   :  { %v1979_v50 = vld [vmem:[#allocation21 + $0x408] sm:$0xff] }
 0xc1e   :  { %5073 = vmatpush2.bf16.msra.mxu1 %v8203_v25  ;;  %5114 = vmatpush2.bf16.msra.mxu0 %v8331_v57  ;;  %v7902_v25 = vcombine.high %v1883_v22, %v1887_v23  ;;  %v8030_v57 = vcombine.high %v2011_v24, %v2015_v51  ;;  %v1971_v4 = vld [vmem:[#allocation21 + $0x3c8] sm:$0xff] }
 0xc1f   :  { %5074 = vmatprep.subr.bf16.mxu1 %v8196_v13  ;;  %5115 = vmatprep.subr.bf16.mxu0 %v8324_v7  ;;  %v1879_v13 = vld [vmem:[#allocation21 + $0xe8] sm:$0xff] }
 0xc20   :  { %v2003_v7 = vld [vmem:[#allocation21 + $0x4c8] sm:$0xff]  ;;  %v7894_v26 = vcombine.high %v1875_v19, %v1879_v13 }
 0xc21   :  { %v8021_v39 = vcombine.low %v2003_v7, %v2007_v8  ;;  %v1975_v15 = vld [vmem:[#allocation21 + $0x3e8] sm:$0xff] }
 0xc22   :  { %5075 = vmatpush2.bf16.msra.mxu1 %v8195_v35  ;;  %5116 = vmatpush2.bf16.msra.mxu0 %v8323_v36  ;;  %v8022_v35 = vcombine.high %v2003_v7, %v2007_v8  ;;  %v1867_v36 = vld [vmem:[#allocation21 + $0x88] sm:$0xff] }
 0xc23   :  { %5076 = vmatprep.subr.bf16.mxu1 %v8188_v37  ;;  %5117 = vmatprep.subr.bf16.mxu0 %v8316_v30  ;;  %v1871_v37 = vld [vmem:[#allocation21 + $0xa8] sm:$0xff]  ;;  %v7893_v30 = vcombine.low %v1875_v19, %v1879_v13 }
 0xc24   :  { %v7886_v40 = vcombine.high %v1867_v36, %v1871_v37  ;;  %v7885_v28 = vcombine.low %v1867_v36, %v1871_v37  ;;  %v2099_v5 = vld [vmem:[#allocation21 + $0x7c8] sm:$0xff] }
 0xc25   :  { %v1963_v23 = vld [vmem:[#allocation21 + $0x388] sm:$0xff] }
 0xc26   :  { %5077 = vmatpush2.bf16.msra.mxu1 %v8187_v43  ;;  %5118 = vmatpush2.bf16.msra.mxu0 %v8315_v45  ;;  %v1863_v43 = vld [vmem:[#allocation21 + $0x68] sm:$0xff] }
 0xc27   :  { %5128 = vmatprep.subr.bf16.mxu1 %v7926_v47  ;;  %5169 = vmatprep.subr.bf16.mxu0 %v8054_v48  ;;  %v1987_v45 = vld [vmem:[#allocation21 + $0x448] sm:$0xff]  ;;  %v8013_v47 = vcombine.low %v1995_v33, %v1999_v38  ;;  %v7878_v48 = vcombine.high %v1859_v31, %v1863_v43 }
 0xc28   :  { %v8006_v59 = vcombine.high %v1987_v45, %v1991_v46  ;;  %v1967_v24 = vld [vmem:[#allocation21 + $0x3a8] sm:$0xff] }
 0xc29   :  { %5079 = vmatmul.mubr.bf16.vlgmr.msra.gmra.mxu1 %v10180_v56  ;;  %5120 = vmatmul.mubr.bf16.vlgmr.msra.gmra.mxu0 %v10182_v58  ;;  %v2091_v51 = vld [vmem:[#allocation21 + $0x788] sm:$0xff] }
 0xc2a   :  { %5129 = vmatpush1.bf16.msra.mxu1 %v7925_v55  ;;  %5160 = vmatprep.mubr.bf16.mxu1 %v10134_v6  ;;  %v1983_v55 = vld [vmem:[#allocation21 + $0x428] sm:$0xff] }
 0xc2b   :  { %5170 = vmatpush1.bf16.msra.mxu0 %v8053_v0  ;;  %5201 = vmatprep.mubr.bf16.mxu0 %v10136_v61  ;;  %v7877_v0 = vcombine.low %v1859_v31, %v1863_v43  ;;  %v7998_v3 = vcombine.high %v1979_v50, %v1983_v55  ;;  %v1955_v13 = vld [vmem:[#allocation21 + $0x348] sm:$0xff] }
 0xc2c   :  { %5130 = vmatprep.subr.bf16.mxu1 %v7918_v1  ;;  %5171 = vmatprep.subr.bf16.mxu0 %v8046_v2  ;;  %v8005_v1 = vcombine.low %v1987_v45, %v1991_v46  ;;  %v7870_v2 = vcombine.high %v1851_v49, %v1855_v60  ;;  %v1959_v7 = vld [vmem:[#allocation21 + $0x368] sm:$0xff] }
 0xc2d   :  { %v2083_v8 = vld [vmem:[#allocation21 + $0x748] sm:$0xff] }
 0xc2e   :  { %5131 = vmatpush1.bf16.msra.mxu1 %v7917_v16  ;;  %v2103_v16 = vld [vmem:[#allocation21 + $0x7e8] sm:$0xff] }
 0xc2f   :  { %5172 = vmatpush1.bf16.msra.mxu0 %v8045_v18  ;;  %5132 = vmatprep.subr.bf16.mxu1 %v7910_v20  ;;  %v7869_v18 = vcombine.low %v1851_v49, %v1855_v60  ;;  %v7997_v20 = vcombine.low %v1979_v50, %v1983_v55  ;;  %v8118_v22 = vcombine.high %v2099_v5, %v2103_v16  ;;  %v1947_v37 = vld [vmem:[#allocation21 + $0x308] sm:$0xff] }
 0xc30   :  { %5173 = vmatprep.subr.bf16.mxu0 %v8038_v52  ;;  %v7990_v52 = vcombine.high %v1971_v4, %v1975_v15  ;;  %v1951_v33 = vld [vmem:[#allocation21 + $0x328] sm:$0xff] }
 0xc31   :  { %v2075_v38 = vld [vmem:[#allocation21 + $0x708] sm:$0xff] }
 0xc32   :  { %5133 = vmatpush1.bf16.msra.mxu1 %v7909_v53  ;;  %v2095_v53 = vld [vmem:[#allocation21 + $0x7a8] sm:$0xff] }
 0xc33   :  { %5174 = vmatpush1.bf16.msra.mxu0 %v8037_v54  ;;  %5134 = vmatprep.subr.bf16.mxu1 %v7902_v25  ;;  %v7989_v54 = vcombine.low %v1971_v4, %v1975_v15  ;;  %v8117_v25 = vcombine.low %v2099_v5, %v2103_v16  ;;  %v8110_v19 = vcombine.high %v2091_v51, %v2095_v53  ;;  %v1939_v43 = vld [vmem:[#allocation21 + $0x2c8] sm:$0xff] }
 0xc34   :  { %5175 = vmatprep.subr.bf16.mxu0 %v8030_v57  ;;  %v7982_v57 = vcombine.high %v1963_v23, %v1967_v24  ;;  %v1943_v45 = vld [vmem:[#allocation21 + $0x2e8] sm:$0xff] }
 0xc35   :  { %v2067_v46 = vld [vmem:[#allocation21 + $0x6c8] sm:$0xff] }
 0xc36   :  { %5135 = vmatpush1.bf16.msra.mxu1 %v7901_v14  ;;  %v2087_v14 = vld [vmem:[#allocation21 + $0x768] sm:$0xff] }
 0xc37   :  { %5176 = vmatpush1.bf16.msra.mxu0 %v8029_v11  ;;  %5136 = vmatprep.subr.bf16.mxu1 %v7894_v26  ;;  %v7981_v11 = vcombine.low %v1963_v23, %v1967_v24  ;;  %v8109_v26 = vcombine.low %v2091_v51, %v2095_v53  ;;  %v8102_v36 = vcombine.high %v2083_v8, %v2087_v14  ;;  %v1931_v60 = vld [vmem:[#allocation21 + $0x288] sm:$0xff] }
 0xc38   :  { %5177 = vmatprep.subr.bf16.mxu0 %v8022_v35  ;;  %v7974_v35 = vcombine.high %v1955_v13, %v1959_v7  ;;  %v1935_v50 = vld [vmem:[#allocation21 + $0x2a8] sm:$0xff] }
 0xc39   :  { %v2059_v55 = vld [vmem:[#allocation21 + $0x688] sm:$0xff] }
 0xc3a   :  { %5137 = vmatpush1.bf16.msra.mxu1 %v7893_v30  ;;  %v2079_v30 = vld [vmem:[#allocation21 + $0x728] sm:$0xff] }
 0xc3b   :  { %5178 = vmatpush1.bf16.msra.mxu0 %v8021_v39  ;;  %5138 = vmatprep.subr.bf16.mxu1 %v7886_v40  ;;  %v7973_v39 = vcombine.low %v1955_v13, %v1959_v7  ;;  %v8101_v40 = vcombine.low %v2083_v8, %v2087_v14  ;;  %v8094_v31 = vcombine.high %v2075_v38, %v2079_v30  ;;  %v1923_v15 = vld [vmem:[#allocation21 + $0x248] sm:$0xff] }
 0xc3c   :  { %5179 = vmatprep.subr.bf16.mxu0 %v8014_v41  ;;  %v7966_v41 = vcombine.high %v1947_v37, %v1951_v33  ;;  %v1927_v5 = vld [vmem:[#allocation21 + $0x268] sm:$0xff] }
 0xc3d   :  { %v2051_v16 = vld [vmem:[#allocation21 + $0x648] sm:$0xff] }
 0xc3e   :  { %5139 = vmatpush1.bf16.msra.mxu1 %v7885_v28  ;;  %v2071_v28 = vld [vmem:[#allocation21 + $0x6e8] sm:$0xff] }
 0xc3f   :  { %5180 = vmatpush1.bf16.msra.mxu0 %v8013_v47  ;;  %5140 = vmatprep.subr.bf16.mxu1 %v7878_v48  ;;  %v7965_v47 = vcombine.low %v1947_v37, %v1951_v33  ;;  %v8093_v48 = vcombine.low %v2075_v38, %v2079_v30  ;;  %v8086_v49 = vcombine.high %v2067_v46, %v2071_v28  ;;  %v1915_v24 = vld [vmem:[#allocation21 + $0x208] sm:$0xff] }
 0xc40   :  { %5181 = vmatprep.subr.bf16.mxu0 %v8006_v59  ;;  %v7958_v59 = vcombine.high %v1939_v43, %v1943_v45  ;;  %v1919_v51 = vld [vmem:[#allocation21 + $0x228] sm:$0xff] }
 0xc41   :  { %v2043_v53 = vld [vmem:[#allocation21 + $0x608] sm:$0xff] }
 0xc42   :  { %5141 = vmatpush1.bf16.msra.mxu1 %v7877_v0  ;;  %v2063_v0 = vld [vmem:[#allocation21 + $0x6a8] sm:$0xff] }
 0xc43   :  { %5182 = vmatpush1.bf16.msra.mxu0 %v8005_v1  ;;  %5142 = vmatprep.subr.bf16.mxu1 %v7870_v2  ;;  %v7957_v1 = vcombine.low %v1939_v43, %v1943_v45  ;;  %v8085_v2 = vcombine.low %v2067_v46, %v2071_v28  ;;  %v8078_v4 = vcombine.high %v2059_v55, %v2063_v0  ;;  %v2163_v7 = vld [vmem:[#allocation21 + $0x9c8] sm:$0xff] }
 0xc44   :  { %5183 = vmatprep.subr.bf16.mxu0 %v7998_v3  ;;  %v7950_v3 = vcombine.high %v1931_v60, %v1935_v50  ;;  %v2167_v8 = vld [vmem:[#allocation21 + $0x9e8] sm:$0xff] }
 0xc45   :  { %v2291_v14 = vld [vmem:[#allocation21 + $0xdc8] sm:$0xff]  ;;  %v8181_v30 = vcombine.low %v2163_v7, %v2167_v8 }
 0xc46   :  { %5143 = vmatpush1.bf16.msra.mxu1 %v7869_v18  ;;  %v2055_v18 = vld [vmem:[#allocation21 + $0x668] sm:$0xff] }
 0xc47   :  { %5184 = vmatpush1.bf16.msra.mxu0 %v7997_v20  ;;  %5144 = vmatprep.subr.bf16.mxu1 %v7990_v52  ;;  %v7949_v20 = vcombine.low %v1931_v60, %v1935_v50  ;;  %v8077_v52 = vcombine.low %v2059_v55, %v2063_v0  ;;  %v8070_v23 = vcombine.high %v2051_v16, %v2055_v18  ;;  %v2155_v33 = vld [vmem:[#allocation21 + $0x988] sm:$0xff] }
 0xc48   :  { %5185 = vmatprep.subr.bf16.mxu0 %v8118_v22  ;;  %v7942_v22 = vcombine.high %v1923_v15, %v1927_v5  ;;  %v2159_v38 = vld [vmem:[#allocation21 + $0x9a8] sm:$0xff] }
 0xc49   :  { %v2147_v43 = vld [vmem:[#allocation21 + $0x948] sm:$0xff] }
 0xc4a   :  { %5145 = vmatpush2.bf16.msra.mxu1 %v7989_v54  ;;  %v2047_v54 = vld [vmem:[#allocation21 + $0x628] sm:$0xff] }
 0xc4b   :  { %5186 = vmatpush2.bf16.msra.mxu0 %v8117_v25  ;;  %5146 = vmatprep.subr.bf16.mxu1 %v7982_v57  ;;  %v7941_v25 = vcombine.low %v1923_v15, %v1927_v5  ;;  %v8069_v57 = vcombine.low %v2051_v16, %v2055_v18  ;;  %v8062_v13 = vcombine.high %v2043_v53, %v2047_v54  ;;  %v2151_v45 = vld [vmem:[#allocation21 + $0x968] sm:$0xff] }
 0xc4c   :  { %5187 = vmatprep.subr.bf16.mxu0 %v8110_v19  ;;  %v7934_v19 = vcombine.high %v1915_v24, %v1919_v51  ;;  %v2275_v28 = vld [vmem:[#allocation21 + $0xd48] sm:$0xff] }
 0xc4d   :  { %v2139_v50 = vld [vmem:[#allocation21 + $0x908] sm:$0xff] }
 0xc4e   :  { %5147 = vmatpush2.bf16.msra.mxu1 %v7981_v11  ;;  %v2295_v11 = vld [vmem:[#allocation21 + $0xde8] sm:$0xff] }
 0xc4f   :  { %5188 = vmatpush2.bf16.msra.mxu0 %v8109_v26  ;;  %5148 = vmatprep.subr.bf16.mxu1 %v7974_v35  ;;  %v7933_v26 = vcombine.low %v1915_v24, %v1919_v51  ;;  %v8061_v35 = vcombine.low %v2043_v53, %v2047_v54  ;;  %v8310_v37 = vcombine.high %v2291_v14, %v2295_v11  ;;  %v2143_v55 = vld [vmem:[#allocation21 + $0x928] sm:$0xff] }
 0xc50   :  { %5189 = vmatprep.subr.bf16.mxu0 %v8102_v36  ;;  %v8182_v36 = vcombine.high %v2163_v7, %v2167_v8  ;;  %v2267_v0 = vld [vmem:[#allocation21 + $0xd08] sm:$0xff] }
 0xc51   :  { %v2131_v5 = vld [vmem:[#allocation21 + $0x8c8] sm:$0xff] }
 0xc52   :  { %5149 = vmatpush2.bf16.msra.mxu1 %v7973_v39  ;;  %v2283_v39 = vld [vmem:[#allocation21 + $0xd88] sm:$0xff] }
 0xc53   :  { %5190 = vmatpush2.bf16.msra.mxu0 %v8101_v40  ;;  %5150 = vmatprep.subr.bf16.mxu1 %v7966_v41  ;;  %v2287_v40 = vld [vmem:[#allocation21 + $0xda8] sm:$0xff]  ;;  %v8309_v41 = vcombine.low %v2291_v14, %v2295_v11 }
 0xc54   :  { %5191 = vmatprep.subr.bf16.mxu0 %v8094_v31  ;;  %v8174_v31 = vcombine.high %v2155_v33, %v2159_v38  ;;  %v8302_v46 = vcombine.high %v2283_v39, %v2287_v40  ;;  %v2135_v16 = vld [vmem:[#allocation21 + $0x8e8] sm:$0xff] }
 0xc55   :  { %v2259_v18 = vld [vmem:[#allocation21 + $0xcc8] sm:$0xff] }
 0xc56   :  { %5151 = vmatpush2.bf16.msra.mxu1 %v7965_v47  ;;  %v2279_v47 = vld [vmem:[#allocation21 + $0xd68] sm:$0xff] }
 0xc57   :  { %5192 = vmatpush2.bf16.msra.mxu0 %v8093_v48  ;;  %5152 = vmatprep.subr.bf16.mxu1 %v7958_v59  ;;  %v8173_v48 = vcombine.low %v2155_v33, %v2159_v38  ;;  %v8301_v59 = vcombine.low %v2283_v39, %v2287_v40  ;;  %v8294_v60 = vcombine.high %v2275_v28, %v2279_v47  ;;  %v2123_v51 = vld [vmem:[#allocation21 + $0x888] sm:$0xff] }
 0xc58   :  { %5193 = vmatprep.subr.bf16.mxu0 %v8086_v49  ;;  %v8166_v49 = vcombine.high %v2147_v43, %v2151_v45  ;;  %v2127_v53 = vld [vmem:[#allocation21 + $0x8a8] sm:$0xff] }
 0xc59   :  { %v2251_v54 = vld [vmem:[#allocation21 + $0xc88] sm:$0xff] }
 0xc5a   :  { %5153 = vmatpush2.bf16.msra.mxu1 %v7957_v1  ;;  %v2271_v1 = vld [vmem:[#allocation21 + $0xd28] sm:$0xff] }
 0xc5b   :  { %5194 = vmatpush2.bf16.msra.mxu0 %v8085_v2  ;;  %5154 = vmatprep.subr.bf16.mxu1 %v7950_v3  ;;  %v8165_v2 = vcombine.low %v2147_v43, %v2151_v45  ;;  %v8293_v3 = vcombine.low %v2275_v28, %v2279_v47  ;;  %v8286_v15 = vcombine.high %v2267_v0, %v2271_v1  ;;  %v2115_v8 = vld [vmem:[#allocation21 + $0x848] sm:$0xff] }
 0xc5c   :  { %5195 = vmatprep.subr.bf16.mxu0 %v8078_v4  ;;  %v8158_v4 = vcombine.high %v2139_v50, %v2143_v55  ;;  %v2119_v14 = vld [vmem:[#allocation21 + $0x868] sm:$0xff] }
 0xc5d   :  { %v2243_v11 = vld [vmem:[#allocation21 + $0xc48] sm:$0xff] }
 0xc5e   :  { %5155 = vmatpush2.bf16.msra.mxu1 %v7949_v20  ;;  %v2263_v20 = vld [vmem:[#allocation21 + $0xce8] sm:$0xff] }
 0xc5f   :  { %5196 = vmatpush2.bf16.msra.mxu0 %v8077_v52  ;;  %5156 = vmatprep.subr.bf16.mxu1 %v7942_v22  ;;  %v8157_v52 = vcombine.low %v2139_v50, %v2143_v55  ;;  %v8285_v22 = vcombine.low %v2267_v0, %v2271_v1  ;;  %v8278_v24 = vcombine.high %v2259_v18, %v2263_v20  ;;  %v2107_v38 = vld [vmem:[#allocation21 + $0x808] sm:$0xff] }
 0xc60   :  { %5197 = vmatprep.subr.bf16.mxu0 %v8070_v23  ;;  %v8150_v23 = vcombine.high %v2131_v5, %v2135_v16  ;;  %v2235_v39 = vld [vmem:[#allocation21 + $0xc08] sm:$0xff] }
 0xc61   :  { %v2239_v40 = vld [vmem:[#allocation21 + $0xc28] sm:$0xff] }
 0xc62   :  { %5157 = vmatpush2.bf16.msra.mxu1 %v7941_v25  ;;  %v2255_v25 = vld [vmem:[#allocation21 + $0xca8] sm:$0xff]  ;;  %v8254_v45 = vcombine.high %v2235_v39, %v2239_v40 }
 0xc63   :  { %5198 = vmatpush2.bf16.msra.mxu0 %v8069_v57  ;;  %5158 = vmatprep.subr.bf16.mxu1 %v7934_v19  ;;  %v8149_v57 = vcombine.low %v2131_v5, %v2135_v16  ;;  %v8277_v19 = vcombine.low %v2259_v18, %v2263_v20  ;;  %v8270_v7 = vcombine.high %v2251_v54, %v2255_v25  ;;  %v2231_v28 = vld [vmem:[#allocation21 + $0xbe8] sm:$0xff] }
 0xc64   :  { %5199 = vmatprep.subr.bf16.mxu0 %v8062_v13  ;;  %v8142_v13 = vcombine.high %v2123_v51, %v2127_v53  ;;  %v2355_v47 = vld [vmem:[#allocation21 + $0xfc8] sm:$0xff] }
 0xc65   :  { %v2219_v55 = vld [vmem:[#allocation21 + $0xb88] sm:$0xff] }
 0xc66   :  { %5159 = vmatpush2.bf16.msra.mxu1 %v7933_v26  ;;  %v2247_v26 = vld [vmem:[#allocation21 + $0xc68] sm:$0xff] }
 0xc67   :  { %5200 = vmatpush2.bf16.msra.mxu0 %v8061_v35  ;;  %5210 = vmatprep.subr.bf16.mxu1 %v8182_v36  ;;  %v8141_v35 = vcombine.low %v2123_v51, %v2127_v53  ;;  %v8269_v36 = vcombine.low %v2251_v54, %v2255_v25  ;;  %v8262_v33 = vcombine.high %v2243_v11, %v2247_v26  ;;  %v2223_v0 = vld [vmem:[#allocation21 + $0xba8] sm:$0xff] }
 0xc68   :  { %5251 = vmatprep.subr.bf16.mxu0 %v8310_v37  ;;  %v8134_v37 = vcombine.high %v2115_v8, %v2119_v14  ;;  %v2347_v1 = vld [vmem:[#allocation21 + $0xf88] sm:$0xff] }
 0xc69   :  { %5161 = vmatmul.mubr.bf16.vlgmr.msra.gmra.mxu1 %v10138_v62  ;;  %v2211_v16 = vld [vmem:[#allocation21 + $0xb48] sm:$0xff] }
 0xc6a   :  { %5202 = vmatmul.mubr.bf16.vlgmr.msra.gmra.mxu0 %v10140_v63  ;;  %5211 = vmatpush1.bf16.msra.mxu1 %v8181_v30  ;;  %v2111_v30 = vld [vmem:[#allocation21 + $0x828] sm:$0xff] }
 0xc6b   :  { %5242 = vmatprep.mubr.bf16.mxu1 %v10164_v9  ;;  %5252 = vmatpush1.bf16.msra.mxu0 %v8309_v41  ;;  %v8133_v41 = vcombine.low %v2115_v8, %v2119_v14  ;;  %v8126_v43 = vcombine.high %v2107_v38, %v2111_v30  ;;  %v2215_v18 = vld [vmem:[#allocation21 + $0xb68] sm:$0xff] }
 0xc6c   :  { %5283 = vmatprep.mubr.bf16.mxu0 %v10166_v10  ;;  %5212 = vmatprep.subr.bf16.mxu1 %v8174_v31  ;;  %v8261_v31 = vcombine.low %v2243_v11, %v2247_v26  ;;  %v2339_v20 = vld [vmem:[#allocation21 + $0xf48] sm:$0xff] }
 0xc6d   :  { %5253 = vmatprep.subr.bf16.mxu0 %v8302_v46  ;;  %v2227_v46 = vld [vmem:[#allocation21 + $0xbc8] sm:$0xff] }
 0xc6e   :  { %5213 = vmatpush1.bf16.msra.mxu1 %v8173_v48  ;;  %v2359_v48 = vld [vmem:[#allocation21 + $0xfe8] sm:$0xff] }
 0xc6f   :  { %5254 = vmatpush1.bf16.msra.mxu0 %v8301_v59  ;;  %5214 = vmatprep.subr.bf16.mxu1 %v8166_v49  ;;  %v8125_v59 = vcombine.low %v2107_v38, %v2111_v30  ;;  %v8253_v49 = vcombine.low %v2235_v39, %v2239_v40  ;;  %v8374_v50 = vcombine.high %v2355_v47, %v2359_v48  ;;  %v2203_v53 = vld [vmem:[#allocation21 + $0xb08] sm:$0xff] }
 0xc70   :  { %5255 = vmatprep.subr.bf16.mxu0 %v8294_v60  ;;  %v8246_v60 = vcombine.high %v2227_v46, %v2231_v28  ;;  %v2207_v54 = vld [vmem:[#allocation21 + $0xb28] sm:$0xff] }
 0xc71   :  { %v2331_v25 = vld [vmem:[#allocation21 + $0xf08] sm:$0xff] }
 0xc72   :  { %5215 = vmatpush1.bf16.msra.mxu1 %v8165_v2  ;;  %v2351_v2 = vld [vmem:[#allocation21 + $0xfa8] sm:$0xff] }
 0xc73   :  { %5256 = vmatpush1.bf16.msra.mxu0 %v8293_v3  ;;  %5216 = vmatprep.subr.bf16.mxu1 %v8158_v4  ;;  %v8245_v3 = vcombine.low %v2227_v46, %v2231_v28  ;;  %v8373_v4 = vcombine.low %v2355_v47, %v2359_v48  ;;  %v8366_v5 = vcombine.high %v2347_v1, %v2351_v2  ;;  %v2195_v14 = vld [vmem:[#allocation21 + $0xac8] sm:$0xff] }
 0xc74   :  { %5257 = vmatprep.subr.bf16.mxu0 %v8286_v15  ;;  %v8238_v15 = vcombine.high %v2219_v55, %v2223_v0  ;;  %v2199_v11 = vld [vmem:[#allocation21 + $0xae8] sm:$0xff] }
 0xc75   :  { %v2323_v26 = vld [vmem:[#allocation21 + $0xec8] sm:$0xff] }
 0xc76   :  { %5217 = vmatpush1.bf16.msra.mxu1 %v8157_v52  ;;  %v2343_v52 = vld [vmem:[#allocation21 + $0xf68] sm:$0xff] }
 0xc77   :  { %5258 = vmatpush1.bf16.msra.mxu0 %v8285_v22  ;;  %5218 = vmatprep.subr.bf16.mxu1 %v8150_v23  ;;  %v8237_v22 = vcombine.low %v2219_v55, %v2223_v0  ;;  %v8365_v23 = vcombine.low %v2347_v1, %v2351_v2  ;;  %v8358_v51 = vcombine.high %v2339_v20, %v2343_v52  ;;  %v2187_v30 = vld [vmem:[#allocation21 + $0xa88] sm:$0xff] }
 0xc78   :  { %5259 = vmatprep.subr.bf16.mxu0 %v8278_v24  ;;  %v8230_v24 = vcombine.high %v2211_v16, %v2215_v18  ;;  %v2191_v39 = vld [vmem:[#allocation21 + $0xaa8] sm:$0xff] }
 0xc79   :  { %v2315_v40 = vld [vmem:[#allocation21 + $0xe88] sm:$0xff] }
 0xc7a   :  { %5219 = vmatpush1.bf16.msra.mxu1 %v8149_v57  ;;  %v2335_v57 = vld [vmem:[#allocation21 + $0xf28] sm:$0xff] }
 0xc7b   :  { %5260 = vmatpush1.bf16.msra.mxu0 %v8277_v19  ;;  %5220 = vmatprep.subr.bf16.mxu1 %v8142_v13  ;;  %v8229_v19 = vcombine.low %v2211_v16, %v2215_v18  ;;  %v8357_v13 = vcombine.low %v2339_v20, %v2343_v52  ;;  %v8350_v8 = vcombine.high %v2331_v25, %v2335_v57  ;;  %v2179_v28 = vld [vmem:[#allocation21 + $0xa48] sm:$0xff]  ;;  %v1908_v18 = vld [vmem:[#allocation21 + $0x1d0] sm:$0xff] }
 0xc7c   :  { %5261 = vmatprep.subr.bf16.mxu0 %v8270_v7  ;;  %v8222_v7 = vcombine.high %v2203_v53, %v2207_v54  ;;  %v2183_v47 = vld [vmem:[#allocation21 + $0xa68] sm:$0xff]  ;;  %v1912_v20 = vld [vmem:[#allocation21 + $0x1f0] sm:$0xff] }
 0xc7d   :  { %v2307_v48 = vld [vmem:[#allocation21 + $0xe48] sm:$0xff]  ;;  %v2036_v52 = vld [vmem:[#allocation21 + $0x5d0] sm:$0xff] }
 0xc7e   :  { %5221 = vmatpush1.bf16.msra.mxu1 %v8141_v35  ;;  %v2327_v35 = vld [vmem:[#allocation21 + $0xee8] sm:$0xff] }
 0xc7f   :  { %5262 = vmatpush1.bf16.msra.mxu0 %v8269_v36  ;;  %5222 = vmatprep.subr.bf16.mxu1 %v8134_v37  ;;  %v8221_v36 = vcombine.low %v2203_v53, %v2207_v54  ;;  %v8349_v37 = vcombine.low %v2331_v25, %v2335_v57  ;;  %v8342_v38 = vcombine.high %v2323_v26, %v2327_v35  ;;  %v2171_v0 = vld [vmem:[#allocation21 + $0xa08] sm:$0xff]  ;;  %v10192_v53 = vld [vmem:[#allocation22] sm:$0xff]  ;;  %v1900_v25 = vld [vmem:[#allocation21 + $0x190] sm:$0xff] }
 0xc80   :  { %5263 = vmatprep.subr.bf16.mxu0 %v8262_v33  ;;  %v8214_v33 = vcombine.high %v2195_v14, %v2199_v11  ;;  %v2175_v1 = vld [vmem:[#allocation21 + $0xa28] sm:$0xff]  ;;  %v1904_v57 = vld [vmem:[#allocation21 + $0x1b0] sm:$0xff] }
 0xc81   :  { %v2299_v2 = vld [vmem:[#allocation21 + $0xe08] sm:$0xff] }
 0xc82   :  { %5223 = vmatpush1.bf16.msra.mxu1 %v8133_v41  ;;  %v2319_v41 = vld [vmem:[#allocation21 + $0xea8] sm:$0xff] }
 0xc83   :  { %5264 = vmatpush1.bf16.msra.mxu0 %v8261_v31  ;;  %5224 = vmatprep.subr.bf16.mxu1 %v8126_v43  ;;  %v8213_v31 = vcombine.low %v2195_v14, %v2199_v11  ;;  %v8341_v43 = vcombine.low %v2323_v26, %v2327_v35  ;;  %v8334_v46 = vcombine.high %v2315_v40, %v2319_v41  ;;  %v1892_v35 = vld [vmem:[#allocation21 + $0x150] sm:$0xff] }
 0xc84   :  { %5265 = vmatprep.subr.bf16.mxu0 %v8254_v45  ;;  %v8206_v45 = vcombine.high %v2187_v30, %v2191_v39  ;;  %v2371_v11 = vrot.slane %v10192_v53, %v10121_v34  ;;  %v7920_v26 = vcombine.high %v1900_v25, %v1904_v57 }
 0xc86   :  { %5225 = vmatpush1.bf16.msra.mxu1 %v8125_v59  ;;  %v2311_v59 = vld [vmem:[#allocation21 + $0xe68] sm:$0xff] }
 0xc87   :  { %5266 = vmatpush1.bf16.msra.mxu0 %v8253_v49  ;;  %5226 = vmatprep.subr.bf16.mxu1 %v8246_v60  ;;  %v8205_v49 = vcombine.low %v2187_v30, %v2191_v39  ;;  %v8333_v60 = vcombine.low %v2315_v40, %v2319_v41  ;;  %v8326_v55 = vcombine.high %v2307_v48, %v2311_v59  ;;  %v2020_v30 = vld [vmem:[#allocation21 + $0x550] sm:$0xff] }
 0xc88   :  { %5267 = vmatprep.subr.bf16.mxu0 %v8374_v50  ;;  %v8198_v50 = vcombine.high %v2179_v28, %v2183_v47  ;;  %v2024_v39 = vld [vmem:[#allocation21 + $0x570] sm:$0xff]  ;;  %v7919_v41 = vcombine.low %v1900_v25, %v1904_v57 }
 0xc89   :  { %v1868_v25 = vld [vmem:[#allocation21 + $0x90] sm:$0xff] }
 0xc8a   :  { %5227 = vmatpush2.bf16.msra.mxu1 %v8245_v3  ;;  %v2303_v3 = vld [vmem:[#allocation21 + $0xe28] sm:$0xff]  ;;  %v1872_v57 = vld [vmem:[#allocation21 + $0xb0] sm:$0xff] }
 0xc8b   :  { %5268 = vmatpush2.bf16.msra.mxu0 %v8373_v4  ;;  %5228 = vmatprep.subr.bf16.mxu1 %v8238_v15  ;;  %v8197_v4 = vcombine.low %v2179_v28, %v2183_v47  ;;  %v8325_v15 = vcombine.low %v2307_v48, %v2311_v59  ;;  %v8318_v16 = vcombine.high %v2299_v2, %v2303_v3  ;;  %v1884_v59 = vld [vmem:[#allocation21 + $0x110] sm:$0xff] }
 0xc8c   :  { %5269 = vmatprep.subr.bf16.mxu0 %v8366_v5  ;;  %v8190_v5 = vcombine.high %v2171_v0, %v2175_v1  ;;  %v8040_v48 = vcombine.high %v2020_v30, %v2024_v39 }
 0xc8e   :  { %5229 = vmatpush2.bf16.msra.mxu1 %v8237_v22  ;;  %v2040_v22 = vld [vmem:[#allocation21 + $0x5f0] sm:$0xff] }
 0xc8f   :  { %5270 = vmatpush2.bf16.msra.mxu0 %v8365_v23  ;;  %5230 = vmatprep.subr.bf16.mxu1 %v8230_v24  ;;  %v8189_v23 = vcombine.low %v2171_v0, %v2175_v1  ;;  %v8317_v24 = vcombine.low %v2299_v2, %v2303_v3  ;;  %v8056_v54 = vcombine.high %v2036_v52, %v2040_v22  ;;  %v2016_v0 = vld [vmem:[#allocation21 + $0x530] sm:$0xff] }
 0xc90   :  { %5271 = vmatprep.subr.bf16.mxu0 %v8358_v51  ;;  %v7928_v51 = vcombine.high %v1908_v18, %v1912_v20  ;;  %v8055_v14 = vcombine.low %v2036_v52, %v2040_v22  ;;  %v2004_v52 = vld [vmem:[#allocation21 + $0x4d0] sm:$0xff] }
 0xc91   :  { %v2008_v22 = vld [vmem:[#allocation21 + $0x4f0] sm:$0xff] }
 0xc92   :  { %5231 = vmatpush2.bf16.msra.mxu1 %v8229_v19  ;;  %v7927_v19 = vcombine.low %v1908_v18, %v1912_v20  ;;  %v1876_v18 = vld [vmem:[#allocation21 + $0xd0] sm:$0xff] }
 0xc93   :  { %5272 = vmatpush2.bf16.msra.mxu0 %v8357_v13  ;;  %5232 = vmatprep.subr.bf16.mxu1 %v8222_v7  ;;  %v2367_v13 = vrot.slane %v10192_v53, %v10113_v12  ;;  %v2028_v7 = vld [vmem:[#allocation21 + $0x590] sm:$0xff] }
 0xc94   :  { %5273 = vmatprep.subr.bf16.mxu0 %v8350_v8  ;;  %v2032_v8 = vld [vmem:[#allocation21 + $0x5b0] sm:$0xff] }
 0xc95   :  { %v1880_v20 = vld [vmem:[#allocation21 + $0xf0] sm:$0xff] }
 0xc96   :  { %5233 = vmatpush2.bf16.msra.mxu1 %v8221_v36  ;;  %v1896_v36 = vld [vmem:[#allocation21 + $0x170] sm:$0xff] }
 0xc97   :  { %5274 = vmatpush2.bf16.msra.mxu0 %v8349_v37  ;;  %5234 = vmatprep.subr.bf16.mxu1 %v8214_v33  ;;  %v7911_v2 = vcombine.low %v1892_v35, %v1896_v36 }
 0xc98   :  { %5275 = vmatprep.subr.bf16.mxu0 %v8342_v38  ;;  %v8048_v38 = vcombine.high %v2028_v7, %v2032_v8 }
 0xc9a   :  { %5235 = vmatpush2.bf16.msra.mxu1 %v8213_v31 }
 0xc9b   :  { %5276 = vmatpush2.bf16.msra.mxu0 %v8341_v43  ;;  %5236 = vmatprep.subr.bf16.mxu1 %v8206_v45  ;;  %v8047_v45 = vcombine.low %v2028_v7, %v2032_v8  ;;  %v7895_v7 = vcombine.low %v1876_v18, %v1880_v20  ;;  %v8023_v8 = vcombine.low %v2004_v52, %v2008_v22 }
 0xc9c   :  { %5277 = vmatprep.subr.bf16.mxu0 %v8334_v46  ;;  %v7912_v46 = vcombine.high %v1892_v35, %v1896_v36  ;;  %v1864_v35 = vld [vmem:[#allocation21 + $0x70] sm:$0xff] }
 0xc9d   :  { %v1988_v36 = vld [vmem:[#allocation21 + $0x450] sm:$0xff] }
 0xc9e   :  { %5237 = vmatpush2.bf16.msra.mxu1 %v8205_v49  ;;  %v1888_v49 = vld [vmem:[#allocation21 + $0x130] sm:$0xff] }
 0xc9f   :  { %5278 = vmatpush2.bf16.msra.mxu0 %v8333_v60  ;;  %5238 = vmatprep.subr.bf16.mxu1 %v8198_v50 }
 0xca0   :  { %5279 = vmatprep.subr.bf16.mxu0 %v8326_v55  ;;  %v2012_v55 = vld [vmem:[#allocation21 + $0x510] sm:$0xff] }
 0xca2   :  { %5239 = vmatpush2.bf16.msra.mxu1 %v8197_v4 }
 0xca3   :  { %5280 = vmatpush2.bf16.msra.mxu0 %v8325_v15  ;;  %5240 = vmatprep.subr.bf16.mxu1 %v8190_v5  ;;  %v8039_v15 = vcombine.low %v2020_v30, %v2024_v39  ;;  %v7904_v5 = vcombine.high %v1884_v59, %v1888_v49 }
 0xca4   :  { %5281 = vmatprep.subr.bf16.mxu0 %v8318_v16  ;;  %v8032_v16 = vcombine.high %v2012_v55, %v2016_v0 }
 0xca6   :  { %5241 = vmatpush2.bf16.msra.mxu1 %v8189_v23  ;;  %v7903_v23 = vcombine.low %v1884_v59, %v1888_v49  ;;  %v1972_v59 = vld [vmem:[#allocation21 + $0x3d0] sm:$0xff] }
 0xca7   :  { %5282 = vmatpush2.bf16.msra.mxu0 %v8317_v24  ;;  %5292 = vmatprep.subr.bf16.mxu1 %v7928_v51  ;;  %v8031_v24 = vcombine.low %v2012_v55, %v2016_v0  ;;  %v7896_v51 = vcombine.high %v1876_v18, %v1880_v20  ;;  %v1976_v49 = vld [vmem:[#allocation21 + $0x3f0] sm:$0xff] }
 0xca8   :  { %5333 = vmatprep.subr.bf16.mxu0 %v8056_v54  ;;  %v8024_v54 = vcombine.high %v2004_v52, %v2008_v22  ;;  %v7991_v18 = vcombine.low %v1972_v59, %v1976_v49 }
 0xca9   :  { %5243 = vmatmul.mubr.bf16.vlgmr.msra.gmra.mxu1 %v10180_v56  ;;  %v4998_v37 = vpop.f32.mrf.mxu1  ;;  %v5039_v33 = vpop.f32.mrf.mxu0 }
 0xcaa   :  { %5284 = vmatmul.mubr.bf16.vlgmr.msra.gmra.mxu0 %v10182_v58  ;;  %v4999_v40 = vadd.f32 %v4998_v37, %v2367_v13  ;;  %5293 = vmatpush1.bf16.msra.mxu1 %v7927_v19  ;;  %v1996_v19 = vld [vmem:[#allocation21 + $0x490] sm:$0xff] }
 0xcab   :  { %5324 = vmatprep.mubr.bf16.mxu1 %v10134_v6  ;;  %5334 = vmatpush1.bf16.msra.mxu0 %v8055_v14  ;;  %v5000_v31 = vpop.f32.mrf.mxu1  ;;  %v5041_v43 = vpop.f32.mrf.mxu0  ;;  %v2000_v13 = vld [vmem:[#allocation21 + $0x4b0] sm:$0xff]  ;;  %v7888_v14 = vcombine.high %v1868_v25, %v1872_v57 }
 0xcac   :  { %v10201_v28 = vadd.f32 %v5039_v33, %v4999_v40  ;;  %5365 = vmatprep.mubr.bf16.mxu0 %v10136_v61  ;;  %v5001_v47 = vadd.f32 %v5000_v31, %v2371_v11  ;;  %5294 = vmatprep.subr.bf16.mxu1 %v7920_v26  ;;  %v8016_v11 = vcombine.high %v1996_v19, %v2000_v13  ;;  %v1860_v26 = vld [vmem:[#allocation21 + $0x50] sm:$0xff] }
 0xcad   :  { %5335 = vmatprep.subr.bf16.mxu0 %v8048_v38  ;;  %v5002_v60 = vpop.f32.mrf.mxu1  ;;  %v5043_v50 = vpop.f32.mrf.mxu0  ;;  %v1992_v37 = vld [vmem:[#allocation21 + $0x470] sm:$0xff]  ;;  %v7887_v33 = vcombine.low %v1868_v25, %v1872_v57  ;;  %v8015_v38 = vcombine.low %v1996_v19, %v2000_v13  ;;  %v7880_v30 = vcombine.high %v1860_v26, %v1864_v35 }
 0xcae   :  { %v10204_v1 = vadd.f32 %v5041_v43, %v5001_v47  ;;  %5295 = vmatpush1.bf16.msra.mxu1 %v7919_v41  ;;  %v8008_v39 = vcombine.high %v1988_v36, %v1992_v37  ;;  %v1852_v40 = vld [vmem:[#allocation21 + $0x10] sm:$0xff] }
 0xcaf   :  { %5336 = vmatpush1.bf16.msra.mxu0 %v8047_v45  ;;  %v5003_v3 = vpop.f32.mrf.mxu1  ;;  %v5044_v4 = vpop.f32.mrf.mxu0  ;;  %5296 = vmatprep.subr.bf16.mxu1 %v7912_v46  ;;  %v1856_v41 = vld [vmem:[#allocation21 + $0x30] sm:$0xff]  ;;  %v7879_v45 = vcombine.low %v1860_v26, %v1864_v35  ;;  %v8007_v46 = vcombine.low %v1988_v36, %v1992_v37 }
 0xcb0   :  { %5337 = vmatprep.subr.bf16.mxu0 %v8040_v48  ;;  %v1980_v31 = vld [vmem:[#allocation21 + $0x410] sm:$0xff]  ;;  %v7872_v47 = vcombine.high %v1852_v40, %v1856_v41  ;;  %v7871_v55 = vcombine.low %v1852_v40, %v1856_v41 }
 0xcb1   :  { %v1984_v43 = vld [vmem:[#allocation21 + $0x430] sm:$0xff] }
 0xcb2   :  { %5297 = vmatpush1.bf16.msra.mxu1 %v7911_v2  ;;  %v8000_v48 = vcombine.high %v1980_v31, %v1984_v43  ;;  %v2100_v60 = vld [vmem:[#allocation21 + $0x7d0] sm:$0xff]  ;;  %v7999_v0 = vcombine.low %v1980_v31, %v1984_v43  ;;  %v7992_v2 = vcombine.high %v1972_v59, %v1976_v49 }
 0xcb3   :  { %5338 = vmatpush1.bf16.msra.mxu0 %v8039_v15  ;;  %5298 = vmatprep.subr.bf16.mxu1 %v7904_v5  ;;  %v2104_v50 = vld [vmem:[#allocation21 + $0x7f0] sm:$0xff] }
 0xcb4   :  { %5339 = vmatprep.subr.bf16.mxu0 %v8032_v16  ;;  %v8120_v3 = vcombine.high %v2100_v60, %v2104_v50  ;;  %v1964_v4 = vld [vmem:[#allocation21 + $0x390] sm:$0xff]  ;;  %v8119_v20 = vcombine.low %v2100_v60, %v2104_v50 }
 0xcb5   :  { %v1968_v15 = vld [vmem:[#allocation21 + $0x3b0] sm:$0xff] }
 0xcb6   :  { %5299 = vmatpush1.bf16.msra.mxu1 %v7903_v23  ;;  %v2092_v5 = vld [vmem:[#allocation21 + $0x790] sm:$0xff]  ;;  %v7984_v52 = vcombine.high %v1964_v4, %v1968_v15  ;;  %v7983_v25 = vcombine.low %v1964_v4, %v1968_v15 }
 0xcb7   :  { %5340 = vmatpush1.bf16.msra.mxu0 %v8031_v24  ;;  %5300 = vmatprep.subr.bf16.mxu1 %v7896_v51  ;;  %v2096_v16 = vld [vmem:[#allocation21 + $0x7b0] sm:$0xff] }
 0xcb8   :  { %5341 = vmatprep.subr.bf16.mxu0 %v8024_v54  ;;  %v8112_v22 = vcombine.high %v2092_v5, %v2096_v16  ;;  %v1956_v23 = vld [vmem:[#allocation21 + $0x350] sm:$0xff]  ;;  %v8111_v57 = vcombine.low %v2092_v5, %v2096_v16 }
 0xcb9   :  { %v1960_v24 = vld [vmem:[#allocation21 + $0x370] sm:$0xff] }
 0xcba   :  { %5301 = vmatpush1.bf16.msra.mxu1 %v7895_v7  ;;  %v2084_v51 = vld [vmem:[#allocation21 + $0x750] sm:$0xff]  ;;  %v7976_v19 = vcombine.high %v1956_v23, %v1960_v24  ;;  %v7975_v26 = vcombine.low %v1956_v23, %v1960_v24 }
 0xcbb   :  { %5342 = vmatpush1.bf16.msra.mxu0 %v8023_v8  ;;  %5302 = vmatprep.subr.bf16.mxu1 %v7888_v14  ;;  %v2088_v54 = vld [vmem:[#allocation21 + $0x770] sm:$0xff] }
 0xcbc   :  { %5343 = vmatprep.subr.bf16.mxu0 %v8016_v11  ;;  %v8104_v13 = vcombine.high %v2084_v51, %v2088_v54  ;;  %v1948_v7 = vld [vmem:[#allocation21 + $0x310] sm:$0xff]  ;;  %v8103_v35 = vcombine.low %v2084_v51, %v2088_v54 }
 0xcbd   :  { %v1952_v8 = vld [vmem:[#allocation21 + $0x330] sm:$0xff] }
 0xcbe   :  { %5303 = vmatpush1.bf16.msra.mxu1 %v7887_v33  ;;  %v2076_v14 = vld [vmem:[#allocation21 + $0x710] sm:$0xff]  ;;  %v7968_v36 = vcombine.high %v1948_v7, %v1952_v8  ;;  %v7967_v40 = vcombine.low %v1948_v7, %v1952_v8 }
 0xcbf   :  { %5344 = vmatpush1.bf16.msra.mxu0 %v8015_v38  ;;  %5304 = vmatprep.subr.bf16.mxu1 %v7880_v30  ;;  %v2080_v11 = vld [vmem:[#allocation21 + $0x730] sm:$0xff] }
 0xcc0   :  { %5345 = vmatprep.subr.bf16.mxu0 %v8008_v39  ;;  %v8096_v37 = vcombine.high %v2076_v14, %v2080_v11  ;;  %v1940_v33 = vld [vmem:[#allocation21 + $0x2d0] sm:$0xff]  ;;  %v8095_v41 = vcombine.low %v2076_v14, %v2080_v11 }
 0xcc1   :  { %v1944_v38 = vld [vmem:[#allocation21 + $0x2f0] sm:$0xff] }
 0xcc2   :  { %5305 = vmatpush1.bf16.msra.mxu1 %v7879_v45  ;;  %v2068_v30 = vld [vmem:[#allocation21 + $0x6d0] sm:$0xff]  ;;  %v7960_v31 = vcombine.high %v1940_v33, %v1944_v38  ;;  %v7959_v59 = vcombine.low %v1940_v33, %v1944_v38 }
 0xcc3   :  { %5346 = vmatpush1.bf16.msra.mxu0 %v8007_v46  ;;  %5306 = vmatprep.subr.bf16.mxu1 %v7872_v47  ;;  %v2072_v39 = vld [vmem:[#allocation21 + $0x6f0] sm:$0xff] }
 0xcc4   :  { %5347 = vmatprep.subr.bf16.mxu0 %v8000_v48  ;;  %v8088_v43 = vcombine.high %v2068_v30, %v2072_v39  ;;  %v1932_v45 = vld [vmem:[#allocation21 + $0x290] sm:$0xff]  ;;  %v8087_v49 = vcombine.low %v2068_v30, %v2072_v39 }
 0xcc5   :  { %v1936_v46 = vld [vmem:[#allocation21 + $0x2b0] sm:$0xff] }
 0xcc6   :  { %5307 = vmatpush1.bf16.msra.mxu1 %v7871_v55  ;;  %v2060_v47 = vld [vmem:[#allocation21 + $0x690] sm:$0xff]  ;;  %v7952_v60 = vcombine.high %v1932_v45, %v1936_v46  ;;  %v7951_v4 = vcombine.low %v1932_v45, %v1936_v46 }
 0xcc7   :  { %5348 = vmatpush1.bf16.msra.mxu0 %v7999_v0  ;;  %5308 = vmatprep.subr.bf16.mxu1 %v7992_v2  ;;  %v2064_v48 = vld [vmem:[#allocation21 + $0x6b0] sm:$0xff] }
 0xcc8   :  { %5349 = vmatprep.subr.bf16.mxu0 %v8120_v3  ;;  %v8080_v50 = vcombine.high %v2060_v47, %v2064_v48  ;;  %v1924_v55 = vld [vmem:[#allocation21 + $0x250] sm:$0xff]  ;;  %v8079_v15 = vcombine.low %v2060_v47, %v2064_v48 }
 0xcc9   :  { %v1928_v0 = vld [vmem:[#allocation21 + $0x270] sm:$0xff] }
 0xcca   :  { %5309 = vmatpush2.bf16.msra.mxu1 %v7991_v18  ;;  %v2052_v2 = vld [vmem:[#allocation21 + $0x650] sm:$0xff]  ;;  %v7944_v5 = vcombine.high %v1924_v55, %v1928_v0  ;;  %v7943_v23 = vcombine.low %v1924_v55, %v1928_v0 }
 0xccb   :  { %5350 = vmatpush2.bf16.msra.mxu0 %v8119_v20  ;;  %5310 = vmatprep.subr.bf16.mxu1 %v7984_v52  ;;  %v2056_v3 = vld [vmem:[#allocation21 + $0x670] sm:$0xff] }
 0xccc   :  { %5351 = vmatprep.subr.bf16.mxu0 %v8112_v22  ;;  %v8072_v16 = vcombine.high %v2052_v2, %v2056_v3  ;;  %v1916_v18 = vld [vmem:[#allocation21 + $0x210] sm:$0xff]  ;;  %v8071_v24 = vcombine.low %v2052_v2, %v2056_v3 }
 0xccd   :  { %v1920_v20 = vld [vmem:[#allocation21 + $0x230] sm:$0xff] }
 0xcce   :  { %5311 = vmatpush2.bf16.msra.mxu1 %v7983_v25  ;;  %v2044_v52 = vld [vmem:[#allocation21 + $0x610] sm:$0xff]  ;;  %v7936_v51 = vcombine.high %v1916_v18, %v1920_v20  ;;  %v7935_v7 = vcombine.low %v1916_v18, %v1920_v20 }
 0xccf   :  { %5352 = vmatpush2.bf16.msra.mxu0 %v8111_v57  ;;  %5312 = vmatprep.subr.bf16.mxu1 %v7976_v19  ;;  %v2048_v22 = vld [vmem:[#allocation21 + $0x630] sm:$0xff] }
 0xcd0   :  { %5353 = vmatprep.subr.bf16.mxu0 %v8104_v13  ;;  %v8064_v54 = vcombine.high %v2044_v52, %v2048_v22  ;;  %v2164_v25 = vld [vmem:[#allocation21 + $0x9d0] sm:$0xff]  ;;  %v8063_v8 = vcombine.low %v2044_v52, %v2048_v22 }
 0xcd1   :  { %v2168_v57 = vld [vmem:[#allocation21 + $0x9f0] sm:$0xff] }
 0xcd2   :  { %5313 = vmatpush2.bf16.msra.mxu1 %v7975_v26  ;;  %v2292_v19 = vld [vmem:[#allocation21 + $0xdd0] sm:$0xff]  ;;  %v8184_v14 = vcombine.high %v2164_v25, %v2168_v57 }
 0xcd3   :  { %5354 = vmatpush2.bf16.msra.mxu0 %v8103_v35  ;;  %5314 = vmatprep.subr.bf16.mxu1 %v7968_v36  ;;  %v2296_v13 = vld [vmem:[#allocation21 + $0xdf0] sm:$0xff]  ;;  %v8183_v36 = vcombine.low %v2164_v25, %v2168_v57 }
 0xcd4   :  { %5355 = vmatprep.subr.bf16.mxu0 %v8096_v37  ;;  %v8312_v11 = vcombine.high %v2292_v19, %v2296_v13  ;;  %v2156_v26 = vld [vmem:[#allocation21 + $0x990] sm:$0xff]  ;;  %v8311_v38 = vcombine.low %v2292_v19, %v2296_v13 }
 0xcd5   :  { %v2160_v35 = vld [vmem:[#allocation21 + $0x9b0] sm:$0xff] }
 0xcd6   :  { %5315 = vmatpush2.bf16.msra.mxu1 %v7967_v40  ;;  %v2284_v37 = vld [vmem:[#allocation21 + $0xd90] sm:$0xff]  ;;  %v8176_v30 = vcombine.high %v2156_v26, %v2160_v35  ;;  %v8175_v48 = vcombine.low %v2156_v26, %v2160_v35 }
 0xcd7   :  { %5356 = vmatpush2.bf16.msra.mxu0 %v8095_v41  ;;  %5316 = vmatprep.subr.bf16.mxu1 %v7960_v31  ;;  %v2288_v33 = vld [vmem:[#allocation21 + $0xdb0] sm:$0xff] }
 0xcd8   :  { %5357 = vmatprep.subr.bf16.mxu0 %v8088_v43  ;;  %v2148_v39 = vld [vmem:[#allocation21 + $0x950] sm:$0xff]  ;;  %v8304_v43 = vcombine.high %v2284_v37, %v2288_v33 }
 0xcd9   :  { %v2152_v40 = vld [vmem:[#allocation21 + $0x970] sm:$0xff] }
 0xcda   :  { %5317 = vmatpush2.bf16.msra.mxu1 %v7959_v59  ;;  %v2276_v45 = vld [vmem:[#allocation21 + $0xd50] sm:$0xff]  ;;  %v8167_v20 = vcombine.low %v2148_v39, %v2152_v40 }
 0xcdb   :  { %5358 = vmatpush2.bf16.msra.mxu0 %v8087_v49  ;;  %5318 = vmatprep.subr.bf16.mxu1 %v7952_v60  ;;  %v2280_v46 = vld [vmem:[#allocation21 + $0xd70] sm:$0xff]  ;;  %v8303_v60 = vcombine.low %v2284_v37, %v2288_v33 }
 0xcdc   :  { %5359 = vmatprep.subr.bf16.mxu0 %v8080_v50  ;;  %v8168_v50 = vcombine.high %v2148_v39, %v2152_v40  ;;  %v8296_v2 = vcombine.high %v2276_v45, %v2280_v46  ;;  %v2144_v3 = vld [vmem:[#allocation21 + $0x930] sm:$0xff] }
 0xcdd   :  { %v2260_v25 = vld [vmem:[#allocation21 + $0xcd0] sm:$0xff] }
 0xcde   :  { %5319 = vmatpush2.bf16.msra.mxu1 %v7951_v4  ;;  %v2264_v57 = vld [vmem:[#allocation21 + $0xcf0] sm:$0xff] }
 0xcdf   :  { %5360 = vmatpush2.bf16.msra.mxu0 %v8079_v15  ;;  %5320 = vmatprep.subr.bf16.mxu1 %v7944_v5  ;;  %v2268_v5 = vld [vmem:[#allocation21 + $0xd10] sm:$0xff]  ;;  %v8279_v37 = vcombine.low %v2260_v25, %v2264_v57 }
 0xce0   :  { %5361 = vmatprep.subr.bf16.mxu0 %v8072_v16  ;;  %v2272_v16 = vld [vmem:[#allocation21 + $0xd30] sm:$0xff] }
 0xce1   :  { %v8287_v13 = vcombine.low %v2268_v5, %v2272_v16  ;;  %v2252_v26 = vld [vmem:[#allocation21 + $0xc90] sm:$0xff] }
 0xce2   :  { %5321 = vmatpush2.bf16.msra.mxu1 %v7943_v23  ;;  %v8295_v23 = vcombine.low %v2276_v45, %v2280_v46  ;;  %v2256_v35 = vld [vmem:[#allocation21 + $0xcb0] sm:$0xff] }
 0xce3   :  { %5362 = vmatpush2.bf16.msra.mxu0 %v8071_v24  ;;  %5322 = vmatprep.subr.bf16.mxu1 %v7936_v51  ;;  %v2132_v51 = vld [vmem:[#allocation21 + $0x8d0] sm:$0xff] }
 0xce4   :  { %5363 = vmatprep.subr.bf16.mxu0 %v8064_v54  ;;  %v2136_v54 = vld [vmem:[#allocation21 + $0x8f0] sm:$0xff] }
 0xce5   :  { %v2120_v39 = vld [vmem:[#allocation21 + $0x870] sm:$0xff] }
 0xce6   :  { %5323 = vmatpush2.bf16.msra.mxu1 %v7935_v7  ;;  %v8152_v7 = vcombine.high %v2132_v51, %v2136_v54  ;;  %v2244_v40 = vld [vmem:[#allocation21 + $0xc50] sm:$0xff] }
 0xce7   :  { %5364 = vmatpush2.bf16.msra.mxu0 %v8063_v8  ;;  %5374 = vmatprep.subr.bf16.mxu1 %v8184_v14  ;;  %v8280_v8 = vcombine.high %v2260_v25, %v2264_v57  ;;  %v2124_v14 = vld [vmem:[#allocation21 + $0x890] sm:$0xff] }
 0xce8   :  { %5415 = vmatprep.subr.bf16.mxu0 %v8312_v11  ;;  %v2128_v11 = vld [vmem:[#allocation21 + $0x8b0] sm:$0xff] }
 0xce9   :  { %v5080_v41 = vpop.f32.mrf.mxu1  ;;  %v5121_v31 = vpop.f32.mrf.mxu0  ;;  %5325 = vmatmul.mubr.bf16.vlgmr.msra.gmra.mxu1 %v10138_v62  ;;  %v8144_v33 = vcombine.high %v2124_v14, %v2128_v11 }
 0xcea   :  { %v5081_v47 = vadd.f32 %v5080_v41, %v10201_v28  ;;  %5366 = vmatmul.mubr.bf16.vlgmr.msra.gmra.mxu0 %v10140_v63  ;;  %5375 = vmatpush1.bf16.msra.mxu1 %v8183_v36  ;;  %v2140_v28 = vld [vmem:[#allocation21 + $0x910] sm:$0xff]  ;;  %v8151_v36 = vcombine.low %v2132_v51, %v2136_v54 }
 0xceb   :  { %5406 = vmatprep.mubr.bf16.mxu1 %v10164_v9  ;;  %5416 = vmatpush1.bf16.msra.mxu0 %v8311_v38  ;;  %v5082_v59 = vpop.f32.mrf.mxu1  ;;  %v5123_v49 = vpop.f32.mrf.mxu0  ;;  %v8160_v24 = vcombine.high %v2140_v28, %v2144_v3  ;;  %v8159_v19 = vcombine.low %v2140_v28, %v2144_v3  ;;  %v8272_v38 = vcombine.high %v2252_v26, %v2256_v35  ;;  %v2248_v41 = vld [vmem:[#allocation21 + $0xc70] sm:$0xff] }
 0xcec   :  { %v10210_v55 = vadd.f32 %v5121_v31, %v5081_v47  ;;  %5447 = vmatprep.mubr.bf16.mxu0 %v10166_v10  ;;  %v5083_v0 = vadd.f32 %v5082_v59, %v10204_v1  ;;  %5376 = vmatprep.subr.bf16.mxu1 %v8176_v30  ;;  %v8288_v1 = vcombine.high %v2268_v5, %v2272_v16  ;;  %v2116_v30 = vld [vmem:[#allocation21 + $0x850] sm:$0xff] }
 0xced   :  { %v5084_v4 = vpop.f32.mrf.mxu1  ;;  %v5125_v15 = vpop.f32.mrf.mxu0  ;;  %5417 = vmatprep.subr.bf16.mxu0 %v8304_v43  ;;  %v8143_v31 = vcombine.low %v2124_v14, %v2128_v11  ;;  %v8271_v43 = vcombine.low %v2252_v26, %v2256_v35  ;;  %v8136_v45 = vcombine.high %v2116_v30, %v2120_v39  ;;  %v8264_v46 = vcombine.high %v2244_v40, %v2248_v41  ;;  %v2108_v47 = vld [vmem:[#allocation21 + $0x810] sm:$0xff] }
 0xcee   :  { %v10214_v18 = vadd.f32 %v5123_v49, %v5083_v0  ;;  %5377 = vmatpush1.bf16.msra.mxu1 %v8175_v48  ;;  %v2112_v48 = vld [vmem:[#allocation21 + $0x830] sm:$0xff] }
 0xcef   :  { %5418 = vmatpush1.bf16.msra.mxu0 %v8303_v60  ;;  %v5085_v52 = vpop.f32.mrf.mxu1  ;;  %v5126_v22 = vpop.f32.mrf.mxu0  ;;  %5378 = vmatprep.subr.bf16.mxu1 %v8168_v50  ;;  %v2236_v59 = vld [vmem:[#allocation21 + $0xc10] sm:$0xff]  ;;  %v8135_v60 = vcombine.low %v2116_v30, %v2120_v39  ;;  %v8263_v50 = vcombine.low %v2244_v40, %v2248_v41  ;;  %v8128_v0 = vcombine.high %v2108_v47, %v2112_v48 }
 0xcf0   :  { %5419 = vmatprep.subr.bf16.mxu0 %v8296_v2  ;;  %v2240_v49 = vld [vmem:[#allocation21 + $0xc30] sm:$0xff]  ;;  %v8127_v5 = vcombine.low %v2108_v47, %v2112_v48 }
 0xcf1   :  { %v8256_v2 = vcombine.high %v2236_v59, %v2240_v49  ;;  %v2228_v28 = vld [vmem:[#allocation21 + $0xbd0] sm:$0xff]  ;;  %v8255_v16 = vcombine.low %v2236_v59, %v2240_v49 }
 0xcf2   :  { %5379 = vmatpush1.bf16.msra.mxu1 %v8167_v20  ;;  %v2232_v3 = vld [vmem:[#allocation21 + $0xbf0] sm:$0xff] }
 0xcf3   :  { %5420 = vmatpush1.bf16.msra.mxu0 %v8295_v23  ;;  %5380 = vmatprep.subr.bf16.mxu1 %v8160_v24  ;;  %v2356_v4 = vld [vmem:[#allocation21 + $0xfd0] sm:$0xff]  ;;  %v8248_v20 = vcombine.high %v2228_v28, %v2232_v3  ;;  %v8247_v51 = vcombine.low %v2228_v28, %v2232_v3 }
 0xcf4   :  { %5421 = vmatprep.subr.bf16.mxu0 %v8288_v1  ;;  %v2360_v15 = vld [vmem:[#allocation21 + $0xff0] sm:$0xff] }
 0xcf5   :  { %v8376_v52 = vcombine.high %v2356_v4, %v2360_v15  ;;  %v2220_v22 = vld [vmem:[#allocation21 + $0xb90] sm:$0xff]  ;;  %v8375_v54 = vcombine.low %v2356_v4, %v2360_v15 }
 0xcf6   :  { %5381 = vmatpush1.bf16.msra.mxu1 %v8159_v19  ;;  %v2224_v23 = vld [vmem:[#allocation21 + $0xbb0] sm:$0xff] }
 0xcf7   :  { %5422 = vmatpush1.bf16.msra.mxu0 %v8287_v13  ;;  %5382 = vmatprep.subr.bf16.mxu1 %v8152_v7  ;;  %v2348_v24 = vld [vmem:[#allocation21 + $0xf90] sm:$0xff]  ;;  %v8240_v25 = vcombine.high %v2220_v22, %v2224_v23  ;;  %v8239_v14 = vcombine.low %v2220_v22, %v2224_v23 }
 0xcf8   :  { %5423 = vmatprep.subr.bf16.mxu0 %v8280_v8  ;;  %v2352_v1 = vld [vmem:[#allocation21 + $0xfb0] sm:$0xff] }
 0xcf9   :  { %v8368_v57 = vcombine.high %v2348_v24, %v2352_v1  ;;  %v2212_v19 = vld [vmem:[#allocation21 + $0xb50] sm:$0xff]  ;;  %v8367_v11 = vcombine.low %v2348_v24, %v2352_v1 }
 0xcfa   :  { %5383 = vmatpush1.bf16.msra.mxu1 %v8151_v36  ;;  %v2216_v13 = vld [vmem:[#allocation21 + $0xb70] sm:$0xff] }
 0xcfb   :  { %5424 = vmatpush1.bf16.msra.mxu0 %v8279_v37  ;;  %5384 = vmatprep.subr.bf16.mxu1 %v8144_v33  ;;  %v2340_v7 = vld [vmem:[#allocation21 + $0xf50] sm:$0xff]  ;;  %v8232_v26 = vcombine.high %v2212_v19, %v2216_v13  ;;  %v8231_v30 = vcombine.low %v2212_v19, %v2216_v13 }
 0xcfc   :  { %5425 = vmatprep.subr.bf16.mxu0 %v8272_v38  ;;  %v2344_v8 = vld [vmem:[#allocation21 + $0xf70] sm:$0xff] }
 0xcfd   :  { %v8360_v35 = vcombine.high %v2340_v7, %v2344_v8  ;;  %v2204_v36 = vld [vmem:[#allocation21 + $0xb10] sm:$0xff]  ;;  %v8359_v39 = vcombine.low %v2340_v7, %v2344_v8 }
 0xcfe   :  { %5385 = vmatpush1.bf16.msra.mxu1 %v8143_v31  ;;  %v2208_v37 = vld [vmem:[#allocation21 + $0xb30] sm:$0xff] }
 0xcff   :  { %5426 = vmatpush1.bf16.msra.mxu0 %v8271_v43  ;;  %5386 = vmatprep.subr.bf16.mxu1 %v8136_v45  ;;  %v2332_v33 = vld [vmem:[#allocation21 + $0xf10] sm:$0xff]  ;;  %v8224_v40 = vcombine.high %v2204_v36, %v2208_v37  ;;  %v8223_v47 = vcombine.low %v2204_v36, %v2208_v37 }
 0xd00   :  { %5427 = vmatprep.subr.bf16.mxu0 %v8264_v46  ;;  %v2336_v38 = vld [vmem:[#allocation21 + $0xf30] sm:$0xff] }
 0xd01   :  { %v8352_v41 = vcombine.high %v2332_v33, %v2336_v38  ;;  %v2196_v31 = vld [vmem:[#allocation21 + $0xad0] sm:$0xff]  ;;  %v8351_v48 = vcombine.low %v2332_v33, %v2336_v38 }
 0xd02   :  { %5387 = vmatpush1.bf16.msra.mxu1 %v8135_v60  ;;  %v2200_v43 = vld [vmem:[#allocation21 + $0xaf0] sm:$0xff] }
 0xd03   :  { %5428 = vmatpush1.bf16.msra.mxu0 %v8263_v50  ;;  %5388 = vmatprep.subr.bf16.mxu1 %v8128_v0  ;;  %v2324_v45 = vld [vmem:[#allocation21 + $0xed0] sm:$0xff]  ;;  %v8216_v59 = vcombine.high %v2196_v31, %v2200_v43  ;;  %v8215_v28 = vcombine.low %v2196_v31, %v2200_v43  ;;  %v2029_v31 = vld [vmem:[#allocation21 + $0x598] sm:$0xff] }
 0xd04   :  { %5429 = vmatprep.subr.bf16.mxu0 %v8256_v2  ;;  %v2328_v46 = vld [vmem:[#allocation21 + $0xef0] sm:$0xff]  ;;  %v2033_v43 = vld [vmem:[#allocation21 + $0x5b8] sm:$0xff] }
 0xd05   :  { %v8344_v49 = vcombine.high %v2324_v45, %v2328_v46  ;;  %v2188_v60 = vld [vmem:[#allocation21 + $0xa90] sm:$0xff]  ;;  %v8343_v3 = vcombine.low %v2324_v45, %v2328_v46  ;;  %v2379_v46 = vrot.slane %v10192_v53, %v10124_v32 }
 0xd06   :  { %5389 = vmatpush1.bf16.msra.mxu1 %v8127_v5  ;;  %v2192_v50 = vld [vmem:[#allocation21 + $0xab0] sm:$0xff] }
 0xd07   :  { %5430 = vmatpush1.bf16.msra.mxu0 %v8255_v16  ;;  %5390 = vmatprep.subr.bf16.mxu1 %v8248_v20  ;;  %v2316_v0 = vld [vmem:[#allocation21 + $0xe90] sm:$0xff]  ;;  %v8208_v4 = vcombine.high %v2188_v60, %v2192_v50  ;;  %v8207_v22 = vcombine.low %v2188_v60, %v2192_v50  ;;  %v8050_v60 = vcombine.high %v2029_v31, %v2033_v43  ;;  %v2021_v50 = vld [vmem:[#allocation21 + $0x558] sm:$0xff] }
 0xd08   :  { %5431 = vmatprep.subr.bf16.mxu0 %v8376_v52  ;;  %v2320_v2 = vld [vmem:[#allocation21 + $0xeb0] sm:$0xff] }
 0xd09   :  { %v8336_v15 = vcombine.high %v2316_v0, %v2320_v2  ;;  %v2180_v5 = vld [vmem:[#allocation21 + $0xa50] sm:$0xff]  ;;  %v8335_v23 = vcombine.low %v2316_v0, %v2320_v2  ;;  %v2025_v0 = vld [vmem:[#allocation21 + $0x578] sm:$0xff] }
 0xd0a   :  { %5391 = vmatpush2.bf16.msra.mxu1 %v8247_v51  ;;  %v2184_v16 = vld [vmem:[#allocation21 + $0xa70] sm:$0xff] }
 0xd0b   :  { %5432 = vmatpush2.bf16.msra.mxu0 %v8375_v54  ;;  %5392 = vmatprep.subr.bf16.mxu1 %v8240_v25  ;;  %v2308_v20 = vld [vmem:[#allocation21 + $0xe50] sm:$0xff]  ;;  %v8200_v24 = vcombine.high %v2180_v5, %v2184_v16  ;;  %v8199_v19 = vcombine.low %v2180_v5, %v2184_v16 }
 0xd0c   :  { %5433 = vmatprep.subr.bf16.mxu0 %v8368_v57  ;;  %v2312_v52 = vld [vmem:[#allocation21 + $0xe70] sm:$0xff] }
 0xd0d   :  { %v8328_v1 = vcombine.high %v2308_v20, %v2312_v52  ;;  %v2172_v51 = vld [vmem:[#allocation21 + $0xa10] sm:$0xff]  ;;  %v8327_v13 = vcombine.low %v2308_v20, %v2312_v52  ;;  %v8042_v52 = vcombine.high %v2021_v50, %v2025_v0 }
 0xd0e   :  { %5393 = vmatpush2.bf16.msra.mxu1 %v8239_v14  ;;  %v2176_v54 = vld [vmem:[#allocation21 + $0xa30] sm:$0xff]  ;;  %v1909_v14 = vld [vmem:[#allocation21 + $0x1d8] sm:$0xff] }
 0xd0f   :  { %5434 = vmatpush2.bf16.msra.mxu0 %v8367_v11  ;;  %5394 = vmatprep.subr.bf16.mxu1 %v8232_v26  ;;  %v2300_v25 = vld [vmem:[#allocation21 + $0xe10] sm:$0xff]  ;;  %v8192_v7 = vcombine.high %v2172_v51, %v2176_v54  ;;  %v1913_v11 = vld [vmem:[#allocation21 + $0x1f8] sm:$0xff]  ;;  %v8191_v36 = vcombine.low %v2172_v51, %v2176_v54 }
 0xd10   :  { %5435 = vmatprep.subr.bf16.mxu0 %v8360_v35  ;;  %v2304_v57 = vld [vmem:[#allocation21 + $0xe30] sm:$0xff]  ;;  %v2037_v26 = vld [vmem:[#allocation21 + $0x5d8] sm:$0xff]  ;;  %v7930_v33 = vcombine.high %v1909_v14, %v1913_v11 }
 0xd11   :  { %v8320_v8 = vcombine.high %v2300_v25, %v2304_v57  ;;  %v2041_v35 = vld [vmem:[#allocation21 + $0x5f8] sm:$0xff]  ;;  %v8319_v37 = vcombine.low %v2300_v25, %v2304_v57 }
 0xd12   :  { %5395 = vmatpush2.bf16.msra.mxu1 %v8231_v30  ;;  %v8058_v38 = vcombine.high %v2037_v26, %v2041_v35  ;;  %v1901_v30 = vld [vmem:[#allocation21 + $0x198] sm:$0xff]  ;;  %v8057_v45 = vcombine.low %v2037_v26, %v2041_v35 }
 0xd13   :  { %5436 = vmatpush2.bf16.msra.mxu0 %v8359_v39  ;;  %5396 = vmatprep.subr.bf16.mxu1 %v8224_v40  ;;  %v1905_v39 = vld [vmem:[#allocation21 + $0x1b8] sm:$0xff]  ;;  %v2375_v40 = vrot.slane %v10192_v53, %v10116_v29  ;;  %v8049_v53 = vcombine.low %v2029_v31, %v2033_v43 }
 0xd14   :  { %5437 = vmatprep.subr.bf16.mxu0 %v8352_v41  ;;  %v7929_v41 = vcombine.low %v1909_v14, %v1913_v11  ;;  %v2017_v51 = vld [vmem:[#allocation21 + $0x538] sm:$0xff] }
 0xd15   :  { %v1881_v14 = vld [vmem:[#allocation21 + $0xf8] sm:$0xff] }
 0xd16   :  { %5397 = vmatpush2.bf16.msra.mxu1 %v8223_v47  ;;  %v7922_v47 = vcombine.high %v1901_v30, %v1905_v39  ;;  %v2005_v11 = vld [vmem:[#allocation21 + $0x4d8] sm:$0xff] }
 0xd17   :  { %5438 = vmatpush2.bf16.msra.mxu0 %v8351_v48  ;;  %5398 = vmatprep.subr.bf16.mxu1 %v8216_v59  ;;  %v1893_v48 = vld [vmem:[#allocation21 + $0x158] sm:$0xff] }
 0xd18   :  { %5439 = vmatprep.subr.bf16.mxu0 %v8344_v49  ;;  %v1897_v59 = vld [vmem:[#allocation21 + $0x178] sm:$0xff] }
 0xd19   :  { %v7913_v25 = vcombine.low %v1893_v48, %v1897_v59  ;;  %v2009_v26 = vld [vmem:[#allocation21 + $0x4f8] sm:$0xff] }
 0xd1a   :  { %5399 = vmatpush2.bf16.msra.mxu1 %v8215_v28  ;;  %v8025_v31 = vcombine.low %v2005_v11, %v2009_v26 }
 0xd1b   :  { %5440 = vmatpush2.bf16.msra.mxu0 %v8343_v3  ;;  %5400 = vmatprep.subr.bf16.mxu1 %v8208_v4  ;;  %v7921_v3 = vcombine.low %v1901_v30, %v1905_v39  ;;  %v1873_v30 = vld [vmem:[#allocation21 + $0xb8] sm:$0xff] }
 0xd1c   :  { %5441 = vmatprep.subr.bf16.mxu0 %v8336_v15  ;;  %v7914_v15 = vcombine.high %v1893_v48, %v1897_v59  ;;  %v1997_v39 = vld [vmem:[#allocation21 + $0x498] sm:$0xff] }
 0xd1d   :  { %v1989_v48 = vld [vmem:[#allocation21 + $0x458] sm:$0xff] }
 0xd1e   :  { %5401 = vmatpush2.bf16.msra.mxu1 %v8207_v22  ;;  %v1885_v22 = vld [vmem:[#allocation21 + $0x118] sm:$0xff] }
 0xd1f   :  { %5442 = vmatpush2.bf16.msra.mxu0 %v8335_v23  ;;  %5402 = vmatprep.subr.bf16.mxu1 %v8200_v24  ;;  %v1889_v23 = vld [vmem:[#allocation21 + $0x138] sm:$0xff] }
 0xd20   :  { %5443 = vmatprep.subr.bf16.mxu0 %v8328_v1  ;;  %v2013_v1 = vld [vmem:[#allocation21 + $0x518] sm:$0xff]  ;;  %v7905_v35 = vcombine.low %v1885_v22, %v1889_v23 }
 0xd21   :  { %v1993_v59 = vld [vmem:[#allocation21 + $0x478] sm:$0xff] }
 0xd22   :  { %5403 = vmatpush2.bf16.msra.mxu1 %v8199_v19  ;;  %v8041_v19 = vcombine.low %v2021_v50, %v2025_v0  ;;  %v8010_v0 = vcombine.high %v1989_v48, %v1993_v59 }
 0xd23   :  { %5444 = vmatpush2.bf16.msra.mxu0 %v8327_v13  ;;  %5404 = vmatprep.subr.bf16.mxu1 %v8192_v7  ;;  %v8034_v7 = vcombine.high %v2013_v1, %v2017_v51 }
 0xd24   :  { %5445 = vmatprep.subr.bf16.mxu0 %v8320_v8  ;;  %v1877_v8 = vld [vmem:[#allocation21 + $0xd8] sm:$0xff] }
 0xd26   :  { %5405 = vmatpush2.bf16.msra.mxu1 %v8191_v36  ;;  %v8033_v36 = vcombine.low %v2013_v1, %v2017_v51 }
 0xd27   :  { %5446 = vmatpush2.bf16.msra.mxu0 %v8319_v37  ;;  %5456 = vmatprep.subr.bf16.mxu1 %v7930_v33  ;;  %v7898_v37 = vcombine.high %v1877_v8, %v1881_v14  ;;  %v8026_v33 = vcombine.high %v2005_v11, %v2009_v26  ;;  %v1957_v26 = vld [vmem:[#allocation21 + $0x358] sm:$0xff] }
 0xd28   :  { %5497 = vmatprep.subr.bf16.mxu0 %v8058_v38  ;;  %v1869_v38 = vld [vmem:[#allocation21 + $0x98] sm:$0xff] }
 0xd29   :  { %v5162_v49 = vpop.f32.mrf.mxu1  ;;  %5407 = vmatmul.mubr.bf16.vlgmr.msra.gmra.mxu1 %v10180_v56  ;;  %v7890_v43 = vcombine.high %v1869_v38, %v1873_v30 }
 0xd2a   :  { %v5163_v2 = vadd.f32 %v5162_v49, %v2375_v40  ;;  %v5203_v28 = vpop.f32.mrf.mxu0  ;;  %5448 = vmatmul.mubr.bf16.vlgmr.msra.gmra.mxu0 %v10182_v58  ;;  %5457 = vmatpush1.bf16.msra.mxu1 %v7929_v41  ;;  %v2001_v40 = vld [vmem:[#allocation21 + $0x4b8] sm:$0xff]  ;;  %v7897_v41 = vcombine.low %v1877_v8, %v1881_v14  ;;  %v7889_v49 = vcombine.low %v1869_v38, %v1873_v30 }
 0xd2b   :  { %5488 = vmatprep.mubr.bf16.mxu1 %v10134_v6  ;;  %5498 = vmatpush1.bf16.msra.mxu0 %v8057_v45  ;;  %v5164_v4 = vpop.f32.mrf.mxu1  ;;  %v8018_v45 = vcombine.high %v1997_v39, %v2001_v40 }
 0xd2c   :  { %v10223_v5 = vadd.f32 %v5203_v28, %v5163_v2  ;;  %5529 = vmatprep.mubr.bf16.mxu0 %v10136_v61  ;;  %v5165_v16 = vadd.f32 %v5164_v4, %v2379_v46  ;;  %v5205_v20 = vpop.f32.mrf.mxu0  ;;  %5458 = vmatprep.subr.bf16.mxu1 %v7922_v47  ;;  %v7906_v61 = vcombine.high %v1885_v22, %v1889_v23  ;;  %v1861_v46 = vld [vmem:[#allocation21 + $0x58] sm:$0xff] }
 0xd2d   :  { %v5166_v24 = vpop.f32.mrf.mxu1  ;;  %5499 = vmatprep.subr.bf16.mxu0 %v8050_v60  ;;  %v1865_v47 = vld [vmem:[#allocation21 + $0x78] sm:$0xff]  ;;  %v8017_v60 = vcombine.low %v1997_v39, %v2001_v40 }
 0xd2e   :  { %v10226_v54 = vadd.f32 %v5205_v20, %v5165_v16  ;;  %v5207_v6 = vpop.f32.mrf.mxu0  ;;  %5459 = vmatpush1.bf16.msra.mxu1 %v7921_v3  ;;  %v7882_v50 = vcombine.high %v1861_v46, %v1865_v47  ;;  %v1853_v2 = vld [vmem:[#allocation21 + $0x18] sm:$0xff] }
 0xd2f   :  { %5500 = vmatpush1.bf16.msra.mxu0 %v8049_v53  ;;  %v5167_v57 = vpop.f32.mrf.mxu1  ;;  %5460 = vmatprep.subr.bf16.mxu1 %v7914_v15  ;;  %v1857_v28 = vld [vmem:[#allocation21 + $0x38] sm:$0xff]  ;;  %v7881_v53 = vcombine.low %v1861_v46, %v1865_v47  ;;  %v8009_v15 = vcombine.low %v1989_v48, %v1993_v59 }
 0xd30   :  { %v5208_v13 = vpop.f32.mrf.mxu0  ;;  %5501 = vmatprep.subr.bf16.mxu0 %v8042_v52  ;;  %v1981_v3 = vld [vmem:[#allocation21 + $0x418] sm:$0xff]  ;;  %v7874_v16 = vcombine.high %v1853_v2, %v1857_v28  ;;  %v7873_v1 = vcombine.low %v1853_v2, %v1857_v28 }
 0xd31   :  { %v1985_v4 = vld [vmem:[#allocation21 + $0x438] sm:$0xff] }
 0xd32   :  { %5461 = vmatpush1.bf16.msra.mxu1 %v7913_v25  ;;  %v8002_v20 = vcombine.high %v1981_v3, %v1985_v4  ;;  %v1973_v52 = vld [vmem:[#allocation21 + $0x3d8] sm:$0xff]  ;;  %v8001_v51 = vcombine.low %v1981_v3, %v1985_v4 }
 0xd33   :  { %5502 = vmatpush1.bf16.msra.mxu0 %v8041_v19  ;;  %5462 = vmatprep.subr.bf16.mxu1 %v7906_v61  ;;  %v1977_v22 = vld [vmem:[#allocation21 + $0x3f8] sm:$0xff] }
 0xd34   :  { %5503 = vmatprep.subr.bf16.mxu0 %v8034_v7  ;;  %v2101_v23 = vld [vmem:[#allocation21 + $0x7d8] sm:$0xff]  ;;  %v7994_v6 = vcombine.high %v1973_v52, %v1977_v22  ;;  %v7993_v7 = vcombine.low %v1973_v52, %v1977_v22 }
 0xd35   :  { %v2105_v24 = vld [vmem:[#allocation21 + $0x7f8] sm:$0xff] }
 0xd36   :  { %5463 = vmatpush1.bf16.msra.mxu1 %v7905_v35  ;;  %v8122_v25 = vcombine.high %v2101_v23, %v2105_v24  ;;  %v1965_v57 = vld [vmem:[#allocation21 + $0x398] sm:$0xff]  ;;  %v8121_v8 = vcombine.low %v2101_v23, %v2105_v24 }
 0xd37   :  { %5504 = vmatpush1.bf16.msra.mxu0 %v8033_v36  ;;  %5464 = vmatprep.subr.bf16.mxu1 %v7898_v37  ;;  %v1969_v19 = vld [vmem:[#allocation21 + $0x3b8] sm:$0xff] }
 0xd38   :  { %5505 = vmatprep.subr.bf16.mxu0 %v8026_v33  ;;  %v2093_v61 = vld [vmem:[#allocation21 + $0x798] sm:$0xff]  ;;  %v7986_v14 = vcombine.high %v1965_v57, %v1969_v19  ;;  %v7985_v33 = vcombine.low %v1965_v57, %v1969_v19 }
 0xd39   :  { %v2097_v13 = vld [vmem:[#allocation21 + $0x7b8] sm:$0xff] }
 0xd3a   :  { %5465 = vmatpush1.bf16.msra.mxu1 %v7897_v41  ;;  %v8114_v11 = vcombine.high %v2093_v61, %v2097_v13  ;;  %v1961_v35 = vld [vmem:[#allocation21 + $0x378] sm:$0xff]  ;;  %v8113_v38 = vcombine.low %v2093_v61, %v2097_v13 }
 0xd3b   :  { %5506 = vmatpush1.bf16.msra.mxu0 %v8025_v31  ;;  %5466 = vmatprep.subr.bf16.mxu1 %v7890_v43  ;;  %v2085_v36 = vld [vmem:[#allocation21 + $0x758] sm:$0xff]  ;;  %v7978_v30 = vcombine.high %v1957_v26, %v1961_v35 }
 0xd3c   :  { %5507 = vmatprep.subr.bf16.mxu0 %v8018_v45  ;;  %v2089_v37 = vld [vmem:[#allocation21 + $0x778] sm:$0xff]  ;;  %v7977_v45 = vcombine.low %v1957_v26, %v1961_v35 }
 0xd3d   :  { %v8106_v39 = vcombine.high %v2085_v36, %v2089_v37  ;;  %v1949_v40 = vld [vmem:[#allocation21 + $0x318] sm:$0xff]  ;;  %v8105_v46 = vcombine.low %v2085_v36, %v2089_v37 }
 0xd3e   :  { %5467 = vmatpush1.bf16.msra.mxu1 %v7889_v49  ;;  %v1953_v41 = vld [vmem:[#allocation21 + $0x338] sm:$0xff] }
 0xd3f   :  { %5508 = vmatpush1.bf16.msra.mxu0 %v8017_v60  ;;  %5468 = vmatprep.subr.bf16.mxu1 %v7882_v50  ;;  %v2077_v31 = vld [vmem:[#allocation21 + $0x718] sm:$0xff]  ;;  %v7970_v47 = vcombine.high %v1949_v40, %v1953_v41 }
 0xd40   :  { %5509 = vmatprep.subr.bf16.mxu0 %v8010_v0  ;;  %v2081_v43 = vld [vmem:[#allocation21 + $0x738] sm:$0xff]  ;;  %v7969_v0 = vcombine.low %v1949_v40, %v1953_v41 }
 0xd41   :  { %v8098_v48 = vcombine.high %v2077_v31, %v2081_v43  ;;  %v1941_v59 = vld [vmem:[#allocation21 + $0x2d8] sm:$0xff]  ;;  %v8097_v2 = vcombine.low %v2077_v31, %v2081_v43 }
 0xd42   :  { %5469 = vmatpush1.bf16.msra.mxu1 %v7881_v53  ;;  %v1945_v49 = vld [vmem:[#allocation21 + $0x2f8] sm:$0xff] }
 0xd43   :  { %5510 = vmatpush1.bf16.msra.mxu0 %v8009_v15  ;;  %5470 = vmatprep.subr.bf16.mxu1 %v7874_v16  ;;  %v2069_v60 = vld [vmem:[#allocation21 + $0x6d8] sm:$0xff]  ;;  %v7962_v28 = vcombine.high %v1941_v59, %v1945_v49 }
 0xd44   :  { %5511 = vmatprep.subr.bf16.mxu0 %v8002_v20  ;;  %v2073_v50 = vld [vmem:[#allocation21 + $0x6f8] sm:$0xff]  ;;  %v7961_v20 = vcombine.low %v1941_v59, %v1945_v49 }
 0xd45   :  { %v8090_v3 = vcombine.high %v2069_v60, %v2073_v50  ;;  %v1933_v4 = vld [vmem:[#allocation21 + $0x298] sm:$0xff]  ;;  %v8089_v52 = vcombine.low %v2069_v60, %v2073_v50 }
 0xd46   :  { %5471 = vmatpush1.bf16.msra.mxu1 %v7873_v1  ;;  %v1937_v53 = vld [vmem:[#allocation21 + $0x2b8] sm:$0xff] }
 0xd47   :  { %5512 = vmatpush1.bf16.msra.mxu0 %v8001_v51  ;;  %5472 = vmatprep.subr.bf16.mxu1 %v7994_v6  ;;  %v2061_v15 = vld [vmem:[#allocation21 + $0x698] sm:$0xff]  ;;  %v7954_v22 = vcombine.high %v1933_v4, %v1937_v53 }
 0xd48   :  { %5513 = vmatprep.subr.bf16.mxu0 %v8122_v25  ;;  %v2065_v16 = vld [vmem:[#allocation21 + $0x6b8] sm:$0xff]  ;;  %v7953_v25 = vcombine.low %v1933_v4, %v1937_v53 }
 0xd49   :  { %v8082_v23 = vcombine.high %v2061_v15, %v2065_v16  ;;  %v1925_v24 = vld [vmem:[#allocation21 + $0x258] sm:$0xff]  ;;  %v8081_v57 = vcombine.low %v2061_v15, %v2065_v16 }
 0xd4a   :  { %5473 = vmatpush2.bf16.msra.mxu1 %v7993_v7  ;;  %v1929_v1 = vld [vmem:[#allocation21 + $0x278] sm:$0xff] }
 0xd4b   :  { %5514 = vmatpush2.bf16.msra.mxu0 %v8121_v8  ;;  %5474 = vmatprep.subr.bf16.mxu1 %v7986_v14  ;;  %v2053_v51 = vld [vmem:[#allocation21 + $0x658] sm:$0xff]  ;;  %v7946_v19 = vcombine.high %v1925_v24, %v1929_v1 }
 0xd4c   :  { %5515 = vmatprep.subr.bf16.mxu0 %v8114_v11  ;;  %v2057_v6 = vld [vmem:[#allocation21 + $0x678] sm:$0xff]  ;;  %v7945_v11 = vcombine.low %v1925_v24, %v1929_v1 }
 0xd4d   :  { %v8074_v61 = vcombine.high %v2053_v51, %v2057_v6  ;;  %v1917_v13 = vld [vmem:[#allocation21 + $0x218] sm:$0xff]  ;;  %v8073_v26 = vcombine.low %v2053_v51, %v2057_v6 }
 0xd4e   :  { %5475 = vmatpush2.bf16.msra.mxu1 %v7985_v33  ;;  %v1921_v7 = vld [vmem:[#allocation21 + $0x238] sm:$0xff] }
 0xd4f   :  { %5516 = vmatpush2.bf16.msra.mxu0 %v8113_v38  ;;  %5476 = vmatprep.subr.bf16.mxu1 %v7978_v30  ;;  %v2045_v8 = vld [vmem:[#allocation21 + $0x618] sm:$0xff]  ;;  %v7938_v35 = vcombine.high %v1917_v13, %v1921_v7 }
 0xd50   :  { %5517 = vmatprep.subr.bf16.mxu0 %v8106_v39  ;;  %v2049_v14 = vld [vmem:[#allocation21 + $0x638] sm:$0xff]  ;;  %v7937_v39 = vcombine.low %v1917_v13, %v1921_v7 }
 0xd51   :  { %v8066_v36 = vcombine.high %v2045_v8, %v2049_v14  ;;  %v2165_v37 = vld [vmem:[#allocation21 + $0x9d8] sm:$0xff]  ;;  %v8065_v40 = vcombine.low %v2045_v8, %v2049_v14 }
 0xd52   :  { %5477 = vmatpush2.bf16.msra.mxu1 %v7977_v45  ;;  %v2169_v33 = vld [vmem:[#allocation21 + $0x9f8] sm:$0xff] }
 0xd53   :  { %5518 = vmatpush2.bf16.msra.mxu0 %v8105_v46  ;;  %5478 = vmatprep.subr.bf16.mxu1 %v7970_v47  ;;  %v2293_v38 = vld [vmem:[#allocation21 + $0xdd8] sm:$0xff]  ;;  %v8186_v41 = vcombine.high %v2165_v37, %v2169_v33  ;;  %v8185_v46 = vcombine.low %v2165_v37, %v2169_v33 }
 0xd54   :  { %5519 = vmatprep.subr.bf16.mxu0 %v8098_v48  ;;  %v2297_v30 = vld [vmem:[#allocation21 + $0xdf8] sm:$0xff] }
 0xd55   :  { %v8314_v31 = vcombine.high %v2293_v38, %v2297_v30  ;;  %v2157_v43 = vld [vmem:[#allocation21 + $0x998] sm:$0xff]  ;;  %v8313_v59 = vcombine.low %v2293_v38, %v2297_v30 }
 0xd56   :  { %5479 = vmatpush2.bf16.msra.mxu1 %v7969_v0  ;;  %v2161_v45 = vld [vmem:[#allocation21 + $0x9b8] sm:$0xff] }
 0xd57   :  { %5520 = vmatpush2.bf16.msra.mxu0 %v8097_v2  ;;  %5480 = vmatprep.subr.bf16.mxu1 %v7962_v28  ;;  %v2285_v47 = vld [vmem:[#allocation21 + $0xd98] sm:$0xff]  ;;  %v8178_v49 = vcombine.high %v2157_v43, %v2161_v45  ;;  %v8177_v15 = vcombine.low %v2157_v43, %v2161_v45 }
 0xd58   :  { %5521 = vmatprep.subr.bf16.mxu0 %v8090_v3  ;;  %v2289_v48 = vld [vmem:[#allocation21 + $0xdb8] sm:$0xff] }
 0xd59   :  { %v2149_v60 = vld [vmem:[#allocation21 + $0x958] sm:$0xff]  ;;  %v8306_v2 = vcombine.high %v2285_v47, %v2289_v48 }
 0xd5a   :  { %5481 = vmatpush2.bf16.msra.mxu1 %v7961_v20  ;;  %v2153_v50 = vld [vmem:[#allocation21 + $0x978] sm:$0xff]  ;;  %v8305_v20 = vcombine.low %v2285_v47, %v2289_v48 }
 0xd5b   :  { %5522 = vmatpush2.bf16.msra.mxu0 %v8089_v52  ;;  %5482 = vmatprep.subr.bf16.mxu1 %v7954_v22  ;;  %v2277_v28 = vld [vmem:[#allocation21 + $0xd58] sm:$0xff]  ;;  %v8170_v52 = vcombine.high %v2149_v60, %v2153_v50  ;;  %v8169_v6 = vcombine.low %v2149_v60, %v2153_v50 }
 0xd5c   :  { %5523 = vmatprep.subr.bf16.mxu0 %v8082_v23  ;;  %v2281_v3 = vld [vmem:[#allocation21 + $0xd78] sm:$0xff] }
 0xd5d   :  { %v2141_v23 = vld [vmem:[#allocation21 + $0x918] sm:$0xff] }
 0xd5e   :  { %5483 = vmatpush2.bf16.msra.mxu1 %v7953_v25  ;;  %v2145_v24 = vld [vmem:[#allocation21 + $0x938] sm:$0xff] }
 0xd5f   :  { %5524 = vmatpush2.bf16.msra.mxu0 %v8081_v57  ;;  %5484 = vmatprep.subr.bf16.mxu1 %v7946_v19  ;;  %v2269_v1 = vld [vmem:[#allocation21 + $0xd18] sm:$0xff]  ;;  %v8297_v57 = vcombine.low %v2277_v28, %v2281_v3  ;;  %v8162_v19 = vcombine.high %v2141_v23, %v2145_v24 }
 0xd60   :  { %5525 = vmatprep.subr.bf16.mxu0 %v8074_v61  ;;  %v2273_v51 = vld [vmem:[#allocation21 + $0xd38] sm:$0xff] }
 0xd61   :  { %v2133_v13 = vld [vmem:[#allocation21 + $0x8d8] sm:$0xff] }
 0xd62   :  { %5485 = vmatpush2.bf16.msra.mxu1 %v7945_v11  ;;  %v2137_v7 = vld [vmem:[#allocation21 + $0x8f8] sm:$0xff]  ;;  %v8161_v11 = vcombine.low %v2141_v23, %v2145_v24 }
 0xd63   :  { %5526 = vmatpush2.bf16.msra.mxu0 %v8073_v26  ;;  %5486 = vmatprep.subr.bf16.mxu1 %v7938_v35  ;;  %v2261_v8 = vld [vmem:[#allocation21 + $0xcd8] sm:$0xff]  ;;  %v8289_v26 = vcombine.low %v2269_v1, %v2273_v51  ;;  %v8154_v35 = vcombine.high %v2133_v13, %v2137_v7 }
 0xd64   :  { %5527 = vmatprep.subr.bf16.mxu0 %v8066_v36  ;;  %v2265_v14 = vld [vmem:[#allocation21 + $0xcf8] sm:$0xff] }
 0xd65   :  { %v8282_v36 = vcombine.high %v2261_v8, %v2265_v14  ;;  %v2125_v37 = vld [vmem:[#allocation21 + $0x898] sm:$0xff] }
 0xd66   :  { %5487 = vmatpush2.bf16.msra.mxu1 %v7937_v39  ;;  %v2129_v33 = vld [vmem:[#allocation21 + $0x8b8] sm:$0xff]  ;;  %v8153_v39 = vcombine.low %v2133_v13, %v2137_v7 }
 0xd67   :  { %5528 = vmatpush2.bf16.msra.mxu0 %v8065_v40  ;;  %5538 = vmatprep.subr.bf16.mxu1 %v8186_v41  ;;  %v2253_v38 = vld [vmem:[#allocation21 + $0xc98] sm:$0xff]  ;;  %v8281_v40 = vcombine.low %v2261_v8, %v2265_v14  ;;  %v8146_v41 = vcombine.high %v2125_v37, %v2129_v33  ;;  %v8145_v48 = vcombine.low %v2125_v37, %v2129_v33 }
 0xd68   :  { %5579 = vmatprep.subr.bf16.mxu0 %v8314_v31  ;;  %v2257_v30 = vld [vmem:[#allocation21 + $0xcb8] sm:$0xff] }
 0xd69   :  { %v5244_v0 = vpop.f32.mrf.mxu1  ;;  %5489 = vmatmul.mubr.bf16.vlgmr.msra.gmra.mxu1 %v10138_v62  ;;  %v8274_v31 = vcombine.high %v2253_v38, %v2257_v30  ;;  %v2117_v43 = vld [vmem:[#allocation21 + $0x858] sm:$0xff] }
 0xd6a   :  { %v5245_v4 = vadd.f32 %v5244_v0, %v10223_v5  ;;  %v5285_v53 = vpop.f32.mrf.mxu0  ;;  %5530 = vmatmul.mubr.bf16.vlgmr.msra.gmra.mxu0 %v10140_v63  ;;  %5539 = vmatpush1.bf16.msra.mxu1 %v8185_v46  ;;  %v8298_v5 = vcombine.high %v2277_v28, %v2281_v3  ;;  %v2121_v45 = vld [vmem:[#allocation21 + $0x878] sm:$0xff] }
 0xd6b   :  { %5570 = vmatprep.mubr.bf16.mxu1 %v10164_v9  ;;  %5580 = vmatpush1.bf16.msra.mxu0 %v8313_v59  ;;  %v10232_v16 = vpop.f32.mrf.mxu1  ;;  %v2245_v46 = vld [vmem:[#allocation21 + $0xc58] sm:$0xff]  ;;  %v8273_v59 = vcombine.low %v2253_v38, %v2257_v30  ;;  %v8137_v3 = vcombine.low %v2117_v43, %v2121_v45 }
 0xd6c   :  { %v10234_v22 = vadd.f32 %v5285_v53, %v5245_v4  ;;  %5611 = vmatprep.mubr.bf16.mxu0 %v10166_v10  ;;  %v10237_v62 = vpop.f32.mrf.mxu0  ;;  %5540 = vmatprep.subr.bf16.mxu1 %v8178_v49  ;;  %v8290_v10 = vcombine.high %v2269_v1, %v2273_v51  ;;  %v2249_v47 = vld [vmem:[#allocation21 + $0xc78] sm:$0xff]  ;;  %v8138_v49 = vcombine.high %v2117_v43, %v2121_v45 }
 0xd6d   :  { %v5248_v63 = vpop.f32.mrf.mxu1  ;;  %5581 = vmatprep.subr.bf16.mxu0 %v8306_v2  ;;  %v8266_v60 = vcombine.high %v2245_v46, %v2249_v47  ;;  %v2109_v50 = vld [vmem:[#allocation21 + $0x818] sm:$0xff]  ;;  %v8265_v4 = vcombine.low %v2245_v46, %v2249_v47 }
 0xd6e   :  { %v5289_v9 = vpop.f32.mrf.mxu0  ;;  %5541 = vmatpush1.bf16.msra.mxu1 %v8177_v15  ;;  %v2113_v0 = vld [vmem:[#allocation21 + $0x838] sm:$0xff] }
 0xd6f   :  { %5582 = vmatpush1.bf16.msra.mxu0 %v8305_v20  ;;  %v5249_v25 = vpop.f32.mrf.mxu1  ;;  %5542 = vmatprep.subr.bf16.mxu1 %v8170_v52  ;;  %v2237_v2 = vld [vmem:[#allocation21 + $0xc18] sm:$0xff]  ;;  %v8130_v53 = vcombine.high %v2109_v50, %v2113_v0  ;;  %v8129_v24 = vcombine.low %v2109_v50, %v2113_v0 }
 0xd70   :  { %v5290_v61 = vpop.f32.mrf.mxu0  ;;  %5583 = vmatprep.subr.bf16.mxu0 %v8298_v5  ;;  %v2241_v28 = vld [vmem:[#allocation21 + $0xc38] sm:$0xff] }
 0xd71   :  { %v8258_v15 = vcombine.high %v2237_v2, %v2241_v28  ;;  %v2229_v20 = vld [vmem:[#allocation21 + $0xbd8] sm:$0xff]  ;;  %v8257_v63 = vcombine.low %v2237_v2, %v2241_v28 }
 0xd72   :  { %5543 = vmatpush1.bf16.msra.mxu1 %v8169_v6  ;;  %v2233_v52 = vld [vmem:[#allocation21 + $0xbf8] sm:$0xff] }
 0xd73   :  { %5584 = vmatpush1.bf16.msra.mxu0 %v8297_v57  ;;  %5544 = vmatprep.subr.bf16.mxu1 %v8162_v19  ;;  %v2357_v5 = vld [vmem:[#allocation21 + $0xfd8] sm:$0xff]  ;;  %v8250_v1 = vcombine.high %v2229_v20, %v2233_v52  ;;  %v8249_v19 = vcombine.low %v2229_v20, %v2233_v52 }
 0xd74   :  { %5585 = vmatprep.subr.bf16.mxu0 %v8290_v10  ;;  %v2361_v23 = vld [vmem:[#allocation21 + $0xff8] sm:$0xff] }
 0xd75   :  { %v8378_v51 = vcombine.high %v2357_v5, %v2361_v23  ;;  %v2221_v9 = vld [vmem:[#allocation21 + $0xb98] sm:$0xff]  ;;  %v8377_v61 = vcombine.low %v2357_v5, %v2361_v23 }
 0xd76   :  { %5545 = vmatpush1.bf16.msra.mxu1 %v8161_v11  ;;  %v2225_v6 = vld [vmem:[#allocation21 + $0xbb8] sm:$0xff] }
 0xd77   :  { %5586 = vmatpush1.bf16.msra.mxu0 %v8289_v26  ;;  %5546 = vmatprep.subr.bf16.mxu1 %v8154_v35  ;;  %v2349_v25 = vld [vmem:[#allocation21 + $0xf98] sm:$0xff]  ;;  %v8242_v10 = vcombine.high %v2221_v9, %v2225_v6  ;;  %v8241_v26 = vcombine.low %v2221_v9, %v2225_v6 }
 0xd78   :  { %5587 = vmatprep.subr.bf16.mxu0 %v8282_v36  ;;  %v2353_v57 = vld [vmem:[#allocation21 + $0xfb8] sm:$0xff] }
 0xd79   :  { %v8370_v13 = vcombine.high %v2349_v25, %v2353_v57  ;;  %v2213_v7 = vld [vmem:[#allocation21 + $0xb58] sm:$0xff]  ;;  %v8369_v35 = vcombine.low %v2349_v25, %v2353_v57 }
 0xd7a   :  { %5547 = vmatpush1.bf16.msra.mxu1 %v8153_v39  ;;  %v2217_v8 = vld [vmem:[#allocation21 + $0xb78] sm:$0xff] }
 0xd7b   :  { %5588 = vmatpush1.bf16.msra.mxu0 %v8281_v40  ;;  %5548 = vmatprep.subr.bf16.mxu1 %v8146_v41  ;;  %v2341_v14 = vld [vmem:[#allocation21 + $0xf58] sm:$0xff]  ;;  %v8234_v36 = vcombine.high %v2213_v7, %v2217_v8  ;;  %v8233_v40 = vcombine.low %v2213_v7, %v2217_v8 }
 0xd7c   :  { %5589 = vmatprep.subr.bf16.mxu0 %v8274_v31  ;;  %v2345_v11 = vld [vmem:[#allocation21 + $0xf78] sm:$0xff] }
 0xd7d   :  { %v8362_v37 = vcombine.high %v2341_v14, %v2345_v11  ;;  %v2205_v33 = vld [vmem:[#allocation21 + $0xb18] sm:$0xff]  ;;  %v8361_v41 = vcombine.low %v2341_v14, %v2345_v11 }
 0xd7e   :  { %5549 = vmatpush1.bf16.msra.mxu1 %v8145_v48  ;;  %v2209_v38 = vld [vmem:[#allocation21 + $0xb38] sm:$0xff] }
 0xd7f   :  { %5590 = vmatpush1.bf16.msra.mxu0 %v8273_v59  ;;  %5550 = vmatprep.subr.bf16.mxu1 %v8138_v49  ;;  %v2333_v30 = vld [vmem:[#allocation21 + $0xf18] sm:$0xff]  ;;  %v8226_v31 = vcombine.high %v2205_v33, %v2209_v38  ;;  %v8225_v59 = vcombine.low %v2205_v33, %v2209_v38 }
 0xd80   :  { %5591 = vmatprep.subr.bf16.mxu0 %v8266_v60  ;;  %v2337_v39 = vld [vmem:[#allocation21 + $0xf38] sm:$0xff] }
 0xd81   :  { %v8354_v43 = vcombine.high %v2333_v30, %v2337_v39  ;;  %v2197_v45 = vld [vmem:[#allocation21 + $0xad8] sm:$0xff]  ;;  %v8353_v49 = vcombine.low %v2333_v30, %v2337_v39 }
 0xd82   :  { %5551 = vmatpush1.bf16.msra.mxu1 %v8137_v3  ;;  %v2201_v46 = vld [vmem:[#allocation21 + $0xaf8] sm:$0xff] }
 0xd83   :  { %5592 = vmatpush1.bf16.msra.mxu0 %v8265_v4  ;;  %5552 = vmatprep.subr.bf16.mxu1 %v8130_v53  ;;  %v2325_v47 = vld [vmem:[#allocation21 + $0xed8] sm:$0xff]  ;;  %v8218_v60 = vcombine.high %v2197_v45, %v2201_v46  ;;  %v8217_v4 = vcombine.low %v2197_v45, %v2201_v46 }
 0xd84   :  { %5593 = vmatprep.subr.bf16.mxu0 %v8258_v15  ;;  %v2329_v48 = vld [vmem:[#allocation21 + $0xef8] sm:$0xff] }
 0xd85   :  { %v8346_v50 = vcombine.high %v2325_v47, %v2329_v48  ;;  %v2189_v0 = vld [vmem:[#allocation21 + $0xa98] sm:$0xff]  ;;  %v8345_v53 = vcombine.low %v2325_v47, %v2329_v48 }
 0xd86   :  { %5553 = vmatpush1.bf16.msra.mxu1 %v8129_v24  ;;  %v2193_v2 = vld [vmem:[#allocation21 + $0xab8] sm:$0xff] }
 0xd87   :  { %5594 = vmatpush1.bf16.msra.mxu0 %v8257_v63  ;;  %5554 = vmatprep.subr.bf16.mxu1 %v8250_v1  ;;  %v2317_v28 = vld [vmem:[#allocation21 + $0xe98] sm:$0xff]  ;;  %v8210_v15 = vcombine.high %v2189_v0, %v2193_v2  ;;  %v8209_v63 = vcombine.low %v2189_v0, %v2193_v2 }
 0xd88   :  { %5595 = vmatprep.subr.bf16.mxu0 %v8378_v51  ;;  %v2321_v3 = vld [vmem:[#allocation21 + $0xeb8] sm:$0xff] }
 0xd89   :  { %v8338_v20 = vcombine.high %v2317_v28, %v2321_v3  ;;  %v2181_v52 = vld [vmem:[#allocation21 + $0xa58] sm:$0xff]  ;;  %v8337_v1 = vcombine.low %v2317_v28, %v2321_v3 }
 0xd8a   :  { %5555 = vmatpush2.bf16.msra.mxu1 %v8249_v19  ;;  %v2185_v5 = vld [vmem:[#allocation21 + $0xa78] sm:$0xff] }
 0xd8b   :  { %5596 = vmatpush2.bf16.msra.mxu0 %v8377_v61  ;;  %5556 = vmatprep.subr.bf16.mxu1 %v8242_v10  ;;  %v2309_v23 = vld [vmem:[#allocation21 + $0xe58] sm:$0xff]  ;;  %v8202_v51 = vcombine.high %v2181_v52, %v2185_v5  ;;  %v5247_v61 = vadd.f32 %v10232_v16, %v10226_v54  ;;  %v8201_v10 = vcombine.low %v2181_v52, %v2185_v5  ;;  %v5621_v54 = vmax.f32 %v10214_v18, 0.0 }
 0xd8c   :  { %5597 = vmatprep.subr.bf16.mxu0 %v8370_v13  ;;  %v2313_v24 = vld [vmem:[#allocation21 + $0xe78] sm:$0xff] }
 0xd8d   :  { %v8330_v9 = vcombine.high %v2309_v23, %v2313_v24  ;;  %v2173_v6 = vld [vmem:[#allocation21 + $0xa18] sm:$0xff]  ;;  %v8329_v13 = vcombine.low %v2309_v23, %v2313_v24  ;;  %v5288_v14 = vadd.f32 %v10237_v62, %v5247_v61  ;;  %v10248_v39 = vpack.c.bf16 %v5621_v54, %v5621_v54 }
 0xd8e   :  { %5557 = vmatpush2.bf16.msra.mxu1 %v8241_v26  ;;  %v2177_v25 = vld [vmem:[#allocation21 + $0xa38] sm:$0xff] }
 0xd8f   :  { %5598 = vmatpush2.bf16.msra.mxu0 %v8369_v35  ;;  %5558 = vmatprep.subr.bf16.mxu1 %v8234_v36  ;;  %v2301_v57 = vld [vmem:[#allocation21 + $0xe18] sm:$0xff]  ;;  %v8194_v7 = vcombine.high %v2173_v6, %v2177_v25  ;;  %v8193_v11 = vcombine.low %v2173_v6, %v2177_v25  ;;  %v5623_v16 = vmax.f32 %v5288_v14, 0.0 }
 0xd90   :  { %5599 = vmatprep.subr.bf16.mxu0 %v8362_v37  ;;  %v2305_v19 = vld [vmem:[#allocation21 + $0xe38] sm:$0xff]  ;;  %v10243_v37 = vld [vmem:[#allocation22] sm:$0xff] }
 0xd91   :  { %v8322_v8 = vcombine.high %v2301_v57, %v2305_v19  ;;  %v8321_v26 = vcombine.low %v2301_v57, %v2305_v19  ;;  %v9014_v35 = vld [vmem:[#allocation24 + $0xe4] ss:$16 sps:$4 sm:$0xff]   ;;  %v2383_v33 = vrot.slane %v10243_v37, %v1328_v17  ;;  %v9012_v38 = vld [vmem:[#allocation24 + $0xe0] ss:$16 sps:$4 sm:$0xff]  }
 0xd92   :  { %5559 = vmatpush2.bf16.msra.mxu1 %v8233_v40  ;;  %v9017_v36 = vld [vmem:[#allocation24 + $0x2e4] ss:$16 sps:$4 sm:$0xff]   ;;  %v9015_v62 = vld [vmem:[#allocation24 + $0x2e0] ss:$16 sps:$4 sm:$0xff]  }
 0xd93   :  { %5600 = vmatpush2.bf16.msra.mxu0 %v8361_v41  ;;  %5560 = vmatprep.subr.bf16.mxu1 %v8226_v31  ;;  %v9020_v30 = vld [vmem:[#allocation24 + $0xc4] ss:$16 sps:$4 sm:$0xff]   ;;  %v10251_v41 = vpack.c.bf16 %v5623_v16, %v5623_v16  ;;  %v9018_v17 = vld [vmem:[#allocation24 + $0xc0] ss:$16 sps:$4 sm:$0xff]  }
 0xd94   :  { %5601 = vmatprep.subr.bf16.mxu0 %v8354_v43  ;;  %v9023_v18 = vld [vmem:[#allocation24 + $0x2c4] ss:$16 sps:$4 sm:$0xff]   ;;  %v9021_v46 = vld [vmem:[#allocation24 + $0x2c0] ss:$16 sps:$4 sm:$0xff]  }
 0xd95   :  { %v9026_v47 = vld [vmem:[#allocation24 + $0xa4] ss:$16 sps:$4 sm:$0xff]   ;;  %v9027_v0 = vld [vmem:[#allocation24 + $0x2a0] ss:$16 sps:$4 sm:$0xff]  }
 0xd96   :  { %5561 = vmatpush2.bf16.msra.mxu1 %v8225_v59  ;;  %v9029_v59 = vld [vmem:[#allocation24 + $0x2a4] ss:$16 sps:$4 sm:$0xff]   ;;  %v9036_v52 = vld [vmem:[#allocation24 + $0x60] ss:$16 sps:$4 sm:$0xff]  }
 0xd97   :  { %5602 = vmatpush2.bf16.msra.mxu0 %v8353_v49  ;;  %5562 = vmatprep.subr.bf16.mxu1 %v8218_v60  ;;  %v9024_v60 = vld [vmem:[#allocation24 + $0xa0] ss:$16 sps:$4 sm:$0xff]   ;;  %v9032_v2 = vld [vmem:[#allocation24 + $0x84] ss:$16 sps:$4 sm:$0xff]  }
 0xd98   :  { %5603 = vmatprep.subr.bf16.mxu0 %v8346_v50  ;;  %v9035_v3 = vld [vmem:[#allocation24 + $0x284] ss:$16 sps:$4 sm:$0xff]   ;;  %v9039_v5 = vld [vmem:[#allocation24 + $0x260] ss:$16 sps:$4 sm:$0xff]  }
 0xd99   :  { %v9044_v23 = vld [vmem:[#allocation24 + $0x44] ss:$16 sps:$4 sm:$0xff]   ;;  %v9048_v6 = vld [vmem:[#allocation24 + $0x20] ss:$16 sps:$4 sm:$0xff]  }
 0xd9a   :  { %5563 = vmatpush2.bf16.msra.mxu1 %v8217_v4  ;;  %v9030_v4 = vld [vmem:[#allocation24 + $0x80] ss:$16 sps:$4 sm:$0xff]   ;;  %v9047_v24 = vld [vmem:[#allocation24 + $0x244] ss:$16 sps:$4 sm:$0xff]  }
 0xd9b   :  { %5604 = vmatpush2.bf16.msra.mxu0 %v8345_v53  ;;  %5564 = vmatprep.subr.bf16.mxu1 %v8210_v15  ;;  %v9033_v53 = vld [vmem:[#allocation24 + $0x280] ss:$16 sps:$4 sm:$0xff]   ;;  %v9038_v15 = vld [vmem:[#allocation24 + $0x64] ss:$16 sps:$4 sm:$0xff]  }
 0xd9c   :  { %5605 = vmatprep.subr.bf16.mxu0 %v8338_v20  ;;  %v9041_v20 = vld [vmem:[#allocation24 + $0x264] ss:$16 sps:$4 sm:$0xff]   ;;  %v9051_v25 = vld [vmem:[#allocation24 + $0x220] ss:$16 sps:$4 sm:$0xff]  }
 0xd9d   :  { %v9056_v57 = vld [vmem:[#allocation24 + $0x4] ss:$16 sps:$4 sm:$0xff]   ;;  %v9054_v61 = vld [vmem:[#allocation24] ss:$16 sps:$4 sm:$0xff]  }
 0xd9e   :  { %5565 = vmatpush2.bf16.msra.mxu1 %v8209_v63  ;;  %v9042_v63 = vld [vmem:[#allocation24 + $0x40] ss:$16 sps:$4 sm:$0xff]   ;;  %v9059_v19 = vld [vmem:[#allocation24 + $0x204] ss:$16 sps:$4 sm:$0xff]  }
 0xd9f   :  { %5606 = vmatpush2.bf16.msra.mxu0 %v8337_v1  ;;  %5566 = vmatprep.subr.bf16.mxu1 %v8202_v51  ;;  %v9045_v1 = vld [vmem:[#allocation24 + $0x240] ss:$16 sps:$4 sm:$0xff]   ;;  %v9050_v51 = vld [vmem:[#allocation24 + $0x24] ss:$16 sps:$4 sm:$0xff]  }
 0xda0   :  { %5607 = vmatprep.subr.bf16.mxu0 %v8330_v9  ;;  %v9053_v9 = vld [vmem:[#allocation24 + $0x224] ss:$16 sps:$4 sm:$0xff]   ;;  %v9063_v14 = vld [vmem:[#allocation24 + $0x3e0] ss:$16 sps:$4 sm:$0xff]  }
 0xda1   :  { %v9074_v54 = vld [vmem:[#allocation24 + $0x1a4] ss:$16 sps:$4 sm:$0xff]  }
 0xda2   :  { %5567 = vmatpush2.bf16.msra.mxu1 %v8201_v10  ;;  %v9057_v10 = vld [vmem:[#allocation24 + $0x200] ss:$16 sps:$4 sm:$0xff]   ;;  %v9077_v16 = vld [vmem:[#allocation24 + $0x3a4] ss:$16 sps:$4 sm:$0xff]  }
 0xda3   :  { %5608 = vmatpush2.bf16.msra.mxu0 %v8329_v13  ;;  %5568 = vmatprep.subr.bf16.mxu1 %v8194_v7  ;;  %v9062_v13 = vld [vmem:[#allocation24 + $0x1e4] ss:$16 sps:$4 sm:$0xff]  }
 0xda4   :  { %5609 = vmatprep.subr.bf16.mxu0 %v8322_v8  ;;  %v9065_v7 = vld [vmem:[#allocation24 + $0x3e4] ss:$16 sps:$4 sm:$0xff]   ;;  %v9060_v8 = vld [vmem:[#allocation24 + $0x1e0] ss:$16 sps:$4 sm:$0xff]  }
 0xda6   :  { %5569 = vmatpush2.bf16.msra.mxu1 %v8193_v11  ;;  %v9068_v11 = vld [vmem:[#allocation24 + $0x1c4] ss:$16 sps:$4 sm:$0xff]  }
 0xda7   :  { %5610 = vmatpush2.bf16.msra.mxu0 %v8321_v26  ;;  %7194 = vmatprep.subr.bf16.mxu1 %v9014_v35  ;;  %v9071_v26 = vld [vmem:[#allocation24 + $0x3c4] ss:$16 sps:$4 sm:$0xff]   ;;  %v9066_v35 = vld [vmem:[#allocation24 + $0x1c0] ss:$16 sps:$4 sm:$0xff]  }
 0xda8   :  { %7235 = vmatprep.subr.bf16.mxu0 %v9017_v36  ;;  %v9069_v36 = vld [vmem:[#allocation24 + $0x3c0] ss:$16 sps:$4 sm:$0xff]  }
 0xda9   :  { %v5326_v40 = vpop.f32.mrf.mxu1  ;;  %5571 = vmatmul.mubr.bf16.vlgmr.msra.gmra.mxu1 %v10180_v56 }
 0xdaa   :  { %v5327_v31 = vadd.f32 %v5326_v40, %v2383_v33  ;;  %v5367_v43 = vpop.f32.mrf.mxu0  ;;  %5612 = vmatmul.mubr.bf16.vlgmr.msra.gmra.mxu0 %v10182_v58  ;;  %7195 = vmatpush1.bf16.msra.mxu1 %v9012_v38  ;;  %v9072_v33 = vld [vmem:[#allocation24 + $0x1a0] ss:$16 sps:$4 sm:$0xff]  }
 0xdab   :  { %7226 = vmatprep.mubr.bf16.mxu1 %v10248_v39  ;;  %7236 = vmatpush1.bf16.msra.mxu0 %v9015_v62  ;;  %v10255_v45 = vpop.f32.mrf.mxu1  ;;  %v9075_v38 = vld [vmem:[#allocation24 + $0x3a0] ss:$16 sps:$4 sm:$0xff]   ;;  %v9080_v62 = vld [vmem:[#allocation24 + $0x184] ss:$16 sps:$4 sm:$0xff]  }
 0xdac   :  { %v10257_v48 = vadd.f32 %v5367_v43, %v5327_v31  ;;  %7267 = vmatprep.mubr.bf16.mxu0 %v10251_v41  ;;  %v10260_v56 = vpop.f32.mrf.mxu0  ;;  %7196 = vmatprep.subr.bf16.mxu1 %v9020_v30  ;;  %v9083_v30 = vld [vmem:[#allocation24 + $0x384] ss:$16 sps:$4 sm:$0xff]   ;;  %v9078_v40 = vld [vmem:[#allocation24 + $0x180] ss:$16 sps:$4 sm:$0xff]  }
 0xdad   :  { %v5330_v49 = vpop.f32.mrf.mxu1  ;;  %7237 = vmatprep.subr.bf16.mxu0 %v9023_v18  ;;  %v9081_v18 = vld [vmem:[#allocation24 + $0x380] ss:$16 sps:$4 sm:$0xff]   ;;  %v9086_v31 = vld [vmem:[#allocation24 + $0x164] ss:$16 sps:$4 sm:$0xff]  }
 0xdae   :  { %v5371_v58 = vpop.f32.mrf.mxu0  ;;  %7197 = vmatpush1.bf16.msra.mxu1 %v9018_v17  ;;  %v9089_v43 = vld [vmem:[#allocation24 + $0x364] ss:$16 sps:$4 sm:$0xff]   ;;  %v9084_v17 = vld [vmem:[#allocation24 + $0x160] ss:$16 sps:$4 sm:$0xff]  }
 0xdaf   :  { %7238 = vmatpush1.bf16.msra.mxu0 %v9021_v46  ;;  %v5331_v50 = vpop.f32.mrf.mxu1  ;;  %7198 = vmatprep.subr.bf16.mxu1 %v9026_v47  ;;  %v9087_v46 = vld [vmem:[#allocation24 + $0x360] ss:$16 sps:$4 sm:$0xff]   ;;  %v9092_v47 = vld [vmem:[#allocation24 + $0x144] ss:$16 sps:$4 sm:$0xff]  }
 0xdb0   :  { %v5372_v28 = vpop.f32.mrf.mxu0  ;;  %7239 = vmatprep.subr.bf16.mxu0 %v9029_v59  ;;  %v9095_v59 = vld [vmem:[#allocation24 + $0x344] ss:$16 sps:$4 sm:$0xff]   ;;  %v9090_v49 = vld [vmem:[#allocation24 + $0x140] ss:$16 sps:$4 sm:$0xff]  }
 0xdb1   :  { %v9093_v58 = vld [vmem:[#allocation24 + $0x340] ss:$16 sps:$4 sm:$0xff]   ;;  %v9101_v50 = vld [vmem:[#allocation24 + $0x324] ss:$16 sps:$4 sm:$0xff]  }
 0xdb2   :  { %7199 = vmatpush1.bf16.msra.mxu1 %v9024_v60  ;;  %v9098_v60 = vld [vmem:[#allocation24 + $0x124] ss:$16 sps:$4 sm:$0xff]  }
 0xdb3   :  { %7240 = vmatpush1.bf16.msra.mxu0 %v9027_v0  ;;  %7200 = vmatprep.subr.bf16.mxu1 %v9032_v2  ;;  %v9096_v0 = vld [vmem:[#allocation24 + $0x120] ss:$16 sps:$4 sm:$0xff]   ;;  %v9104_v28 = vld [vmem:[#allocation24 + $0x104] ss:$16 sps:$4 sm:$0xff]  }
 0xdb4   :  { %7241 = vmatprep.subr.bf16.mxu0 %v9035_v3  ;;  %v9099_v2 = vld [vmem:[#allocation24 + $0x320] ss:$16 sps:$4 sm:$0xff]   ;;  %v9107_v3 = vld [vmem:[#allocation24 + $0x304] ss:$16 sps:$4 sm:$0xff]  }
 0xdb6   :  { %7201 = vmatpush1.bf16.msra.mxu1 %v9030_v4  ;;  %v2387_v4 = vrot.slane %v10243_v37, %v1332_v42  ;;  %v9113_v42 = vld [vmem:[#allocation24 + $0x4c4] ss:$16 sps:$4 sm:$0xff]  }
 0xdb7   :  { %7242 = vmatpush1.bf16.msra.mxu0 %v9033_v53  ;;  %7202 = vmatprep.subr.bf16.mxu1 %v9038_v15  ;;  %v9102_v53 = vld [vmem:[#allocation24 + $0x100] ss:$16 sps:$4 sm:$0xff]   ;;  %v5620_v15 = vmax.f32 %v10210_v55, 0.0  ;;  %v9173_v55 = vld [vmem:[#allocation24 + $0x6c4] ss:$16 sps:$4 sm:$0xff]  }
 0xdb8   :  { %7243 = vmatprep.subr.bf16.mxu0 %v9041_v20  ;;  %v9105_v20 = vld [vmem:[#allocation24 + $0x300] ss:$16 sps:$4 sm:$0xff]  }
 0xdba   :  { %7203 = vmatpush1.bf16.msra.mxu1 %v9036_v52  ;;  %v9110_v52 = vld [vmem:[#allocation24 + $0x4e4] ss:$16 sps:$4 sm:$0xff]  }
 0xdbb   :  { %7244 = vmatpush1.bf16.msra.mxu0 %v9039_v5  ;;  %7204 = vmatprep.subr.bf16.mxu1 %v9044_v23  ;;  %v5622_v5 = vmax.f32 %v10234_v22, 0.0  ;;  %v9167_v23 = vld [vmem:[#allocation24 + $0x6e4] ss:$16 sps:$4 sm:$0xff]  }
 0xdbc   :  { %7245 = vmatprep.subr.bf16.mxu0 %v9047_v24  ;;  %v5329_v24 = vadd.f32 %v10255_v45, %v2387_v4  ;;  %v9111_v45 = vld [vmem:[#allocation24 + $0x4c0] ss:$16 sps:$4 sm:$0xff]  }
 0xdbd   :  { %v9207_v4 = vld [vmem:[#allocation24 + $0x600] ss:$16 sps:$4 sm:$0xff]  }
 0xdbe   :  { %7205 = vmatpush1.bf16.msra.mxu1 %v9042_v63  ;;  %v9108_v63 = vld [vmem:[#allocation24 + $0x4e0] ss:$16 sps:$4 sm:$0xff]   ;;  %v5370_v22 = vadd.f32 %v10260_v56, %v5329_v24  ;;  %v9140_v24 = vld [vmem:[#allocation24 + $0x5a4] ss:$16 sps:$4 sm:$0xff]  }
 0xdbf   :  { %7246 = vmatpush1.bf16.msra.mxu0 %v9045_v1  ;;  %7206 = vmatprep.subr.bf16.mxu1 %v9050_v51  ;;  %v10268_v1 = vpack.c.bf16 %v5620_v15, %v5620_v15  ;;  %v9165_v51 = vld [vmem:[#allocation24 + $0x6e0] ss:$16 sps:$4 sm:$0xff]  }
 0xdc0   :  { %7247 = vmatprep.subr.bf16.mxu0 %v9053_v9  ;;  %v10270_v9 = vpack.c.bf16 %v5622_v5, %v5622_v5  ;;  %v9114_v56 = vld [vmem:[#allocation24 + $0x4a0] ss:$16 sps:$4 sm:$0xff]   ;;  %v9221_v5 = vld [vmem:[#allocation24 + $0x7c4] ss:$16 sps:$4 sm:$0xff]  }
 0xdc1   :  { %v9132_v15 = vld [vmem:[#allocation24 + $0x5e0] ss:$16 sps:$4 sm:$0xff]  }
 0xdc2   :  { %7207 = vmatpush1.bf16.msra.mxu1 %v9048_v6 }
 0xdc3   :  { %7248 = vmatpush1.bf16.msra.mxu0 %v9051_v25  ;;  %7208 = vmatprep.subr.bf16.mxu1 %v9056_v57 }
 0xdc4   :  { %7249 = vmatprep.subr.bf16.mxu0 %v9059_v19  ;;  %v9116_v19 = vld [vmem:[#allocation24 + $0x4a4] ss:$16 sps:$4 sm:$0xff]  }
 0xdc6   :  { %7209 = vmatpush1.bf16.msra.mxu1 %v9054_v61  ;;  %v9171_v61 = vld [vmem:[#allocation24 + $0x6c0] ss:$16 sps:$4 sm:$0xff]  }
 0xdc7   :  { %7250 = vmatpush1.bf16.msra.mxu0 %v9057_v10  ;;  %7210 = vmatprep.subr.bf16.mxu1 %v9062_v13 }
 0xdc8   :  { %7251 = vmatprep.subr.bf16.mxu0 %v9065_v7  ;;  %v9179_v7 = vld [vmem:[#allocation24 + $0x6a4] ss:$16 sps:$4 sm:$0xff]  }
 0xdca   :  { %7211 = vmatpush2.bf16.msra.mxu1 %v9060_v8 }
 0xdcb   :  { %7252 = vmatpush2.bf16.msra.mxu0 %v9063_v14  ;;  %7212 = vmatprep.subr.bf16.mxu1 %v9068_v11 }
 0xdcc   :  { %7253 = vmatprep.subr.bf16.mxu0 %v9071_v26 }
 0xdce   :  { %7213 = vmatpush2.bf16.msra.mxu1 %v9066_v35  ;;  %v9119_v35 = vld [vmem:[#allocation24 + $0x484] ss:$16 sps:$4 sm:$0xff]  }
 0xdcf   :  { %7254 = vmatpush2.bf16.msra.mxu0 %v9069_v36  ;;  %7214 = vmatprep.subr.bf16.mxu1 %v9074_v54  ;;  %v9177_v36 = vld [vmem:[#allocation24 + $0x6a0] ss:$16 sps:$4 sm:$0xff]  }
 0xdd0   :  { %7255 = vmatprep.subr.bf16.mxu0 %v9077_v16 }
 0xdd2   :  { %7215 = vmatpush2.bf16.msra.mxu1 %v9072_v33  ;;  %v9185_v33 = vld [vmem:[#allocation24 + $0x684] ss:$16 sps:$4 sm:$0xff]  }
 0xdd3   :  { %7256 = vmatpush2.bf16.msra.mxu0 %v9075_v38  ;;  %7216 = vmatprep.subr.bf16.mxu1 %v9080_v62  ;;  %v9117_v62 = vld [vmem:[#allocation24 + $0x480] ss:$16 sps:$4 sm:$0xff]  }
 0xdd4   :  { %7257 = vmatprep.subr.bf16.mxu0 %v9083_v30  ;;  %v9122_v30 = vld [vmem:[#allocation24 + $0x464] ss:$16 sps:$4 sm:$0xff]  }
 0xdd6   :  { %7217 = vmatpush2.bf16.msra.mxu1 %v9078_v40  ;;  %v9183_v40 = vld [vmem:[#allocation24 + $0x680] ss:$16 sps:$4 sm:$0xff]  }
 0xdd7   :  { %7258 = vmatpush2.bf16.msra.mxu0 %v9081_v18  ;;  %7218 = vmatprep.subr.bf16.mxu1 %v9086_v31  ;;  %v9191_v18 = vld [vmem:[#allocation24 + $0x664] ss:$16 sps:$4 sm:$0xff]   ;;  %v9120_v31 = vld [vmem:[#allocation24 + $0x460] ss:$16 sps:$4 sm:$0xff]  }
 0xdd8   :  { %7259 = vmatprep.subr.bf16.mxu0 %v9089_v43  ;;  %v9125_v43 = vld [vmem:[#allocation24 + $0x444] ss:$16 sps:$4 sm:$0xff]  }
 0xdda   :  { %7219 = vmatpush2.bf16.msra.mxu1 %v9084_v17  ;;  %v9189_v17 = vld [vmem:[#allocation24 + $0x660] ss:$16 sps:$4 sm:$0xff]  }
 0xddb   :  { %7260 = vmatpush2.bf16.msra.mxu0 %v9087_v46  ;;  %7220 = vmatprep.subr.bf16.mxu1 %v9092_v47  ;;  %v9197_v46 = vld [vmem:[#allocation24 + $0x644] ss:$16 sps:$4 sm:$0xff]   ;;  %v9123_v47 = vld [vmem:[#allocation24 + $0x440] ss:$16 sps:$4 sm:$0xff]  }
 0xddc   :  { %7261 = vmatprep.subr.bf16.mxu0 %v9095_v59  ;;  %v9128_v59 = vld [vmem:[#allocation24 + $0x424] ss:$16 sps:$4 sm:$0xff]  }
 0xdde   :  { %7221 = vmatpush2.bf16.msra.mxu1 %v9090_v49  ;;  %v9195_v49 = vld [vmem:[#allocation24 + $0x640] ss:$16 sps:$4 sm:$0xff]  }
 0xddf   :  { %7262 = vmatpush2.bf16.msra.mxu0 %v9093_v58  ;;  %7222 = vmatprep.subr.bf16.mxu1 %v9098_v60  ;;  %v9203_v58 = vld [vmem:[#allocation24 + $0x624] ss:$16 sps:$4 sm:$0xff]   ;;  %v9126_v60 = vld [vmem:[#allocation24 + $0x420] ss:$16 sps:$4 sm:$0xff]  }
 0xde0   :  { %7263 = vmatprep.subr.bf16.mxu0 %v9101_v50  ;;  %v9131_v50 = vld [vmem:[#allocation24 + $0x404] ss:$16 sps:$4 sm:$0xff]  }
 0xde2   :  { %7223 = vmatpush2.bf16.msra.mxu1 %v9096_v0  ;;  %v9201_v0 = vld [vmem:[#allocation24 + $0x620] ss:$16 sps:$4 sm:$0xff]  }
 0xde3   :  { %7264 = vmatpush2.bf16.msra.mxu0 %v9099_v2  ;;  %7224 = vmatprep.subr.bf16.mxu1 %v9104_v28  ;;  %v9209_v2 = vld [vmem:[#allocation24 + $0x604] ss:$16 sps:$4 sm:$0xff]   ;;  %v9129_v28 = vld [vmem:[#allocation24 + $0x400] ss:$16 sps:$4 sm:$0xff]  }
 0xde4   :  { %7265 = vmatprep.subr.bf16.mxu0 %v9107_v3  ;;  %v9134_v3 = vld [vmem:[#allocation24 + $0x5e4] ss:$16 sps:$4 sm:$0xff]  }
 0xde6   :  { %7225 = vmatpush2.bf16.msra.mxu1 %v9102_v53  ;;  %v9215_v53 = vld [vmem:[#allocation24 + $0x7e4] ss:$16 sps:$4 sm:$0xff]  }
 0xde7   :  { %7266 = vmatpush2.bf16.msra.mxu0 %v9105_v20  ;;  %7276 = vmatprep.subr.bf16.mxu1 %v9110_v52  ;;  %v9137_v20 = vld [vmem:[#allocation24 + $0x5c4] ss:$16 sps:$4 sm:$0xff]   ;;  %v9213_v52 = vld [vmem:[#allocation24 + $0x7e0] ss:$16 sps:$4 sm:$0xff]  }
 0xde8   :  { %7317 = vmatprep.subr.bf16.mxu0 %v9167_v23  ;;  %v9135_v23 = vld [vmem:[#allocation24 + $0x5c0] ss:$16 sps:$4 sm:$0xff]  }
 0xde9   :  { %v10272_v6 = vpop.f32.mrf.mxu1  ;;  %7227 = vmatmul.mubr.bf16.vlgmr.msra.gmra.mxu1 %v10268_v1 }
 0xdea   :  { %v10276_v25 = vpop.f32.mrf.mxu0  ;;  %7268 = vmatmul.mubr.bf16.vlgmr.msra.gmra.mxu0 %v10270_v9  ;;  %7277 = vmatpush1.bf16.msra.mxu1 %v9108_v63  ;;  %v9219_v63 = vld [vmem:[#allocation24 + $0x7c0] ss:$16 sps:$4 sm:$0xff]  }
 0xdeb   :  { %v5410_v57 = vpop.f32.mrf.mxu1  ;;  %7278 = vmatprep.subr.bf16.mxu1 %v9113_v42  ;;  %7318 = vmatpush1.bf16.msra.mxu0 %v9165_v51  ;;  %v9227_v42 = vld [vmem:[#allocation24 + $0x7a4] ss:$16 sps:$4 sm:$0xff]   ;;  %v9138_v51 = vld [vmem:[#allocation24 + $0x5a0] ss:$16 sps:$4 sm:$0xff]  }
 0xdec   :  { %v5411_v10 = vadd.f32 %v5410_v57, %v5370_v22  ;;  %v5451_v13 = vpop.f32.mrf.mxu0  ;;  %7319 = vmatprep.subr.bf16.mxu0 %v9173_v55  ;;  %v9143_v55 = vld [vmem:[#allocation24 + $0x584] ss:$16 sps:$4 sm:$0xff]   ;;  %v9225_v22 = vld [vmem:[#allocation24 + $0x7a0] ss:$16 sps:$4 sm:$0xff]  }
 0xded   :  { %v5412_v8 = vpop.f32.mrf.mxu1  ;;  %v9141_v57 = vld [vmem:[#allocation24 + $0x580] ss:$16 sps:$4 sm:$0xff]  }
 0xdee   :  { %v5452_v14 = vadd.f32 %v5451_v13, %v5411_v10  ;;  %v5453_v11 = vpop.f32.mrf.mxu0  ;;  %7279 = vmatpush1.bf16.msra.mxu1 %v9111_v45  ;;  %v9233_v45 = vld [vmem:[#allocation24 + $0x784] ss:$16 sps:$4 sm:$0xff]   ;;  %v9144_v13 = vld [vmem:[#allocation24 + $0x560] ss:$16 sps:$4 sm:$0xff]  }
 0xdef   :  { %v5413_v26 = vpop.f32.mrf.mxu1  ;;  %7280 = vmatprep.subr.bf16.mxu1 %v9116_v19  ;;  %7320 = vmatpush1.bf16.msra.mxu0 %v9171_v61  ;;  %v9146_v19 = vld [vmem:[#allocation24 + $0x564] ss:$16 sps:$4 sm:$0xff]   ;;  %v9231_v61 = vld [vmem:[#allocation24 + $0x780] ss:$16 sps:$4 sm:$0xff]  }
 0xdf0   :  { %v5625_v54 = vmax.f32 %v5452_v14, 0.0  ;;  %v5454_v16 = vpop.f32.mrf.mxu0  ;;  %7321 = vmatprep.subr.bf16.mxu0 %v9179_v7  ;;  %v9239_v10 = vld [vmem:[#allocation24 + $0x764] ss:$16 sps:$4 sm:$0xff]   ;;  %v9237_v8 = vld [vmem:[#allocation24 + $0x760] ss:$16 sps:$4 sm:$0xff]  }
 0xdf1   :  { %v9149_v7 = vld [vmem:[#allocation24 + $0x544] ss:$16 sps:$4 sm:$0xff]   ;;  %v9147_v11 = vld [vmem:[#allocation24 + $0x540] ss:$16 sps:$4 sm:$0xff]  }
 0xdf2   :  { %v10279_v38 = vpack.c.bf16 %v5625_v54, %v5625_v54  ;;  %7281 = vmatpush1.bf16.msra.mxu1 %v9114_v56  ;;  %v9245_v14 = vld [vmem:[#allocation24 + $0x744] ss:$16 sps:$4 sm:$0xff]   ;;  %v5409_v56 = vadd.f32 %v10272_v6, %v10257_v48  ;;  %v9150_v54 = vld [vmem:[#allocation24 + $0x520] ss:$16 sps:$4 sm:$0xff]   ;;  %v9158_v48 = vld [vmem:[#allocation24 + $0xec] ss:$16 sps:$4 sm:$0xff]  }
 0xdf3   :  { %7282 = vmatprep.subr.bf16.mxu1 %v9119_v35  ;;  %7322 = vmatpush1.bf16.msra.mxu0 %v9177_v36  ;;  %v9152_v26 = vld [vmem:[#allocation24 + $0x524] ss:$16 sps:$4 sm:$0xff]   ;;  %v9243_v35 = vld [vmem:[#allocation24 + $0x740] ss:$16 sps:$4 sm:$0xff]  }
 0xdf4   :  { %7308 = vmatprep.mubr.bf16.mxu1 %v10279_v38  ;;  %7323 = vmatprep.subr.bf16.mxu0 %v9185_v33  ;;  %v9251_v36 = vld [vmem:[#allocation24 + $0x724] ss:$16 sps:$4 sm:$0xff]   ;;  %v5450_v16 = vadd.f32 %v10276_v25, %v5409_v56  ;;  %v9255_v6 = vld [vmem:[#allocation24 + $0x700] ss:$16 sps:$4 sm:$0xff]   ;;  %v9161_v25 = vld [vmem:[#allocation24 + $0xcc] ss:$16 sps:$4 sm:$0xff]  }
 0xdf5   :  { %v9155_v33 = vld [vmem:[#allocation24 + $0x504] ss:$16 sps:$4 sm:$0xff]   ;;  %v9242_v56 = vld [vmem:[#allocation24 + $0x10c] ss:$16 sps:$4 sm:$0xff]  }
 0xdf6   :  { %7283 = vmatpush1.bf16.msra.mxu1 %v9117_v62  ;;  %v9249_v62 = vld [vmem:[#allocation24 + $0x720] ss:$16 sps:$4 sm:$0xff]  }
 0xdf7   :  { %7284 = vmatprep.subr.bf16.mxu1 %v9122_v30  ;;  %7324 = vmatpush1.bf16.msra.mxu0 %v9183_v40  ;;  %v9257_v30 = vld [vmem:[#allocation24 + $0x704] ss:$16 sps:$4 sm:$0xff]   ;;  %v9153_v40 = vld [vmem:[#allocation24 + $0x500] ss:$16 sps:$4 sm:$0xff]  }
 0xdf8   :  { %7325 = vmatprep.subr.bf16.mxu0 %v9191_v18  ;;  %v5624_v18 = vmax.f32 %v5450_v16, 0.0 }
 0xdfa   :  { %7285 = vmatpush1.bf16.msra.mxu1 %v9120_v31  ;;  %v9263_v31 = vld [vmem:[#allocation24 + $0x2ec] ss:$16 sps:$4 sm:$0xff]  }
 0xdfb   :  { %7286 = vmatprep.subr.bf16.mxu1 %v9125_v43  ;;  %7326 = vmatpush1.bf16.msra.mxu0 %v9189_v17  ;;  %v9156_v43 = vld [vmem:[#allocation24 + $0xe8] ss:$16 sps:$4 sm:$0xff]   ;;  %v10285_v17 = vpack.c.bf16 %v5624_v18, %v5624_v18 }
 0xdfc   :  { %7327 = vmatprep.subr.bf16.mxu0 %v9197_v46 }
 0xdfe   :  { %7287 = vmatpush1.bf16.msra.mxu1 %v9123_v47 }
 0xdff   :  { %7288 = vmatprep.subr.bf16.mxu1 %v9128_v59  ;;  %7328 = vmatpush1.bf16.msra.mxu0 %v9195_v49  ;;  %v9159_v59 = vld [vmem:[#allocation24 + $0xc8] ss:$16 sps:$4 sm:$0xff]  }
 0xe00   :  { %7329 = vmatprep.subr.bf16.mxu0 %v9203_v58  ;;  %v9164_v58 = vld [vmem:[#allocation24 + $0xac] ss:$16 sps:$4 sm:$0xff]  }
 0xe02   :  { %7289 = vmatpush1.bf16.msra.mxu1 %v9126_v60 }
 0xe03   :  { %7290 = vmatprep.subr.bf16.mxu1 %v9131_v50  ;;  %7330 = vmatpush1.bf16.msra.mxu0 %v9201_v0 }
 0xe04   :  { %7331 = vmatprep.subr.bf16.mxu0 %v9209_v2  ;;  %v9162_v2 = vld [vmem:[#allocation24 + $0xa8] ss:$16 sps:$4 sm:$0xff]  }
 0xe06   :  { %7291 = vmatpush1.bf16.msra.mxu1 %v9129_v28 }
 0xe07   :  { %7292 = vmatprep.subr.bf16.mxu1 %v9134_v3  ;;  %7332 = vmatpush1.bf16.msra.mxu0 %v9207_v4  ;;  %v9170_v3 = vld [vmem:[#allocation24 + $0x8c] ss:$16 sps:$4 sm:$0xff]  }
 0xe08   :  { %7333 = vmatprep.subr.bf16.mxu0 %v9215_v53  ;;  %v9168_v53 = vld [vmem:[#allocation24 + $0x88] ss:$16 sps:$4 sm:$0xff]  }
 0xe0a   :  { %7293 = vmatpush2.bf16.msra.mxu1 %v9132_v15  ;;  %v9176_v15 = vld [vmem:[#allocation24 + $0x6c] ss:$16 sps:$4 sm:$0xff]  }
 0xe0b   :  { %7294 = vmatprep.subr.bf16.mxu1 %v9137_v20  ;;  %7334 = vmatpush2.bf16.msra.mxu0 %v9213_v52  ;;  %v9182_v20 = vld [vmem:[#allocation24 + $0x4c] ss:$16 sps:$4 sm:$0xff]   ;;  %v9180_v52 = vld [vmem:[#allocation24 + $0x48] ss:$16 sps:$4 sm:$0xff]  }
 0xe0c   :  { %7335 = vmatprep.subr.bf16.mxu0 %v9221_v5  ;;  %v9188_v5 = vld [vmem:[#allocation24 + $0x2c] ss:$16 sps:$4 sm:$0xff]  }
 0xe0e   :  { %7295 = vmatpush2.bf16.msra.mxu1 %v9135_v23  ;;  %v9186_v23 = vld [vmem:[#allocation24 + $0x28] ss:$16 sps:$4 sm:$0xff]  }
 0xe0f   :  { %7296 = vmatprep.subr.bf16.mxu1 %v9140_v24  ;;  %7336 = vmatpush2.bf16.msra.mxu0 %v9219_v63  ;;  %v9194_v24 = vld [vmem:[#allocation24 + $0xc] ss:$16 sps:$4 sm:$0xff]   ;;  %v9192_v63 = vld [vmem:[#allocation24 + $0x8] ss:$16 sps:$4 sm:$0xff]  }
 0xe10   :  { %7337 = vmatprep.subr.bf16.mxu0 %v9227_v42  ;;  %v9200_v42 = vld [vmem:[#allocation24 + $0x1ec] ss:$16 sps:$4 sm:$0xff]  }
 0xe12   :  { %7297 = vmatpush2.bf16.msra.mxu1 %v9138_v51  ;;  %v9198_v51 = vld [vmem:[#allocation24 + $0x1e8] ss:$16 sps:$4 sm:$0xff]  }
 0xe13   :  { %7298 = vmatprep.subr.bf16.mxu1 %v9143_v55  ;;  %7338 = vmatpush2.bf16.msra.mxu0 %v9225_v22  ;;  %v9206_v55 = vld [vmem:[#allocation24 + $0x1cc] ss:$16 sps:$4 sm:$0xff]   ;;  %v9204_v22 = vld [vmem:[#allocation24 + $0x1c8] ss:$16 sps:$4 sm:$0xff]  }
 0xe14   :  { %7339 = vmatprep.subr.bf16.mxu0 %v9233_v45  ;;  %v9212_v45 = vld [vmem:[#allocation24 + $0x1ac] ss:$16 sps:$4 sm:$0xff]  }
 0xe16   :  { %7299 = vmatpush2.bf16.msra.mxu1 %v9141_v57  ;;  %v9210_v57 = vld [vmem:[#allocation24 + $0x1a8] ss:$16 sps:$4 sm:$0xff]  }
 0xe17   :  { %7300 = vmatprep.subr.bf16.mxu1 %v9146_v19  ;;  %7340 = vmatpush2.bf16.msra.mxu0 %v9231_v61  ;;  %v9218_v19 = vld [vmem:[#allocation24 + $0x18c] ss:$16 sps:$4 sm:$0xff]   ;;  %v9216_v61 = vld [vmem:[#allocation24 + $0x188] ss:$16 sps:$4 sm:$0xff]  }
 0xe18   :  { %7341 = vmatprep.subr.bf16.mxu0 %v9239_v10  ;;  %v9224_v10 = vld [vmem:[#allocation24 + $0x16c] ss:$16 sps:$4 sm:$0xff]  }
 0xe1a   :  { %7301 = vmatpush2.bf16.msra.mxu1 %v9144_v13  ;;  %v9222_v13 = vld [vmem:[#allocation24 + $0x168] ss:$16 sps:$4 sm:$0xff]  }
 0xe1b   :  { %7302 = vmatprep.subr.bf16.mxu1 %v9149_v7  ;;  %7342 = vmatpush2.bf16.msra.mxu0 %v9237_v8  ;;  %v9230_v7 = vld [vmem:[#allocation24 + $0x14c] ss:$16 sps:$4 sm:$0xff]   ;;  %v9228_v8 = vld [vmem:[#allocation24 + $0x148] ss:$16 sps:$4 sm:$0xff]  }
 0xe1c   :  { %7343 = vmatprep.subr.bf16.mxu0 %v9245_v14  ;;  %v9236_v14 = vld [vmem:[#allocation24 + $0x12c] ss:$16 sps:$4 sm:$0xff]  }
 0xe1e   :  { %7303 = vmatpush2.bf16.msra.mxu1 %v9147_v11  ;;  %v9234_v11 = vld [vmem:[#allocation24 + $0x128] ss:$16 sps:$4 sm:$0xff]  }
 0xe1f   :  { %7304 = vmatprep.subr.bf16.mxu1 %v9152_v26  ;;  %7344 = vmatpush2.bf16.msra.mxu0 %v9243_v35  ;;  %v2391_v26 = vrot.slane %v10243_v37, %v1336_v21  ;;  %v2395_v35 = vrot.slane %v10243_v37, %v1340_v44  ;;  %v9252_v37 = vld [vmem:[#allocation24 + $0x4c8] ss:$16 sps:$4 sm:$0xff]  }
 0xe20   :  { %7345 = vmatprep.subr.bf16.mxu0 %v9251_v36  ;;  %v9240_v36 = vld [vmem:[#allocation24 + $0x108] ss:$16 sps:$4 sm:$0xff]  }
 0xe22   :  { %7305 = vmatpush2.bf16.msra.mxu1 %v9150_v54  ;;  %v9248_v54 = vld [vmem:[#allocation24 + $0x4ec] ss:$16 sps:$4 sm:$0xff]  }
 0xe23   :  { %7306 = vmatprep.subr.bf16.mxu1 %v9155_v33  ;;  %7346 = vmatpush2.bf16.msra.mxu0 %v9249_v62  ;;  %v9246_v62 = vld [vmem:[#allocation24 + $0x4e8] ss:$16 sps:$4 sm:$0xff]  }
 0xe24   :  { %7347 = vmatprep.subr.bf16.mxu0 %v9257_v30  ;;  %v9254_v30 = vld [vmem:[#allocation24 + $0x4cc] ss:$16 sps:$4 sm:$0xff]  }
 0xe26   :  { %7307 = vmatpush2.bf16.msra.mxu1 %v9153_v40 }
 0xe27   :  { %7358 = vmatprep.subr.bf16.mxu1 %v9158_v48  ;;  %7348 = vmatpush2.bf16.msra.mxu0 %v9255_v6  ;;  %v9260_v6 = vld [vmem:[#allocation24 + $0x4ac] ss:$16 sps:$4 sm:$0xff]  }
 0xe28   :  { %7399 = vmatprep.subr.bf16.mxu0 %v9263_v31 }
 0xe29   :  { %v10287_v46 = vpop.f32.mrf.mxu1  ;;  %7309 = vmatmul.mubr.bf16.vlgmr.msra.gmra.mxu1 %v10285_v17 }
 0xe2a   :  { %v10290_v47 = vpop.f32.mrf.mxu0  ;;  %7359 = vmatpush1.bf16.msra.mxu1 %v9156_v43  ;;  %7390 = vmatprep.mubr.bf16.mxu1 %v10248_v39  ;;  %v9174_v39 = vld [vmem:[#allocation24 + $0x68] ss:$16 sps:$4 sm:$0xff]   ;;  %v5491_v16 = vadd.f32 %v10287_v46, %v2391_v26 }
 0xe2b   :  { %v10293_v49 = vpop.f32.mrf.mxu1  ;;  %7360 = vmatprep.subr.bf16.mxu1 %v9161_v25  ;;  %v9303_v26 = vld [vmem:[#allocation24 + $0x208] ss:$16 sps:$4 sm:$0xff]  }
 0xe2c   :  { %v10295_v60 = vpop.f32.mrf.mxu0  ;;  %v5493_v33 = vadd.f32 %v10293_v49, %v2395_v35  ;;  %v5532_v40 = vadd.f32 %v10290_v47, %v5491_v16  ;;  %v9258_v49 = vld [vmem:[#allocation24 + $0x4a8] ss:$16 sps:$4 sm:$0xff]  }
 0xe2d   :  { %v5494_v50 = vpop.f32.mrf.mxu1  ;;  %v9306_v35 = vld [vmem:[#allocation24 + $0x5a8] ss:$16 sps:$4 sm:$0xff]  }
 0xe2e   :  { %v5535_v0 = vpop.f32.mrf.mxu0  ;;  %7361 = vmatpush1.bf16.msra.mxu1 %v9159_v59  ;;  %v5534_v27 = vadd.f32 %v10295_v60, %v5493_v33  ;;  %v9266_v60 = vld [vmem:[#allocation24 + $0x48c] ss:$16 sps:$4 sm:$0xff]   ;;  %v9309_v16 = vld [vmem:[#allocation24 + $0x3e8] ss:$16 sps:$4 sm:$0xff]  }
 0xe2f   :  { %v5495_v28 = vpop.f32.mrf.mxu1  ;;  %7362 = vmatprep.subr.bf16.mxu1 %v9164_v58  ;;  %v9312_v33 = vld [vmem:[#allocation24 + $0x588] ss:$16 sps:$4 sm:$0xff]  }
 0xe30   :  { %v5536_v4 = vpop.f32.mrf.mxu0 }
 0xe31   :  { %v9269_v4 = vld [vmem:[#allocation24 + $0x2cc] ss:$16 sps:$4 sm:$0xff]  }
 0xe32   :  { %7363 = vmatpush1.bf16.msra.mxu1 %v9162_v2 }
 0xe33   :  { %7364 = vmatprep.subr.bf16.mxu1 %v9170_v3  ;;  %v9264_v3 = vld [vmem:[#allocation24 + $0x488] ss:$16 sps:$4 sm:$0xff]  }
 0xe36   :  { %7365 = vmatpush1.bf16.msra.mxu1 %v9168_v53  ;;  %v9272_v53 = vld [vmem:[#allocation24 + $0x46c] ss:$16 sps:$4 sm:$0xff]  }
 0xe37   :  { %7366 = vmatprep.subr.bf16.mxu1 %v9176_v15  ;;  %v9267_v15 = vld [vmem:[#allocation24 + $0x2c8] ss:$16 sps:$4 sm:$0xff]  }
 0xe3a   :  { %7367 = vmatpush1.bf16.msra.mxu1 %v9174_v39  ;;  %v9270_v39 = vld [vmem:[#allocation24 + $0x468] ss:$16 sps:$4 sm:$0xff]  }
 0xe3b   :  { %7368 = vmatprep.subr.bf16.mxu1 %v9182_v20  ;;  %v9275_v20 = vld [vmem:[#allocation24 + $0x2ac] ss:$16 sps:$4 sm:$0xff]  }
 0xe3e   :  { %7369 = vmatpush1.bf16.msra.mxu1 %v9180_v52  ;;  %v9278_v52 = vld [vmem:[#allocation24 + $0x44c] ss:$16 sps:$4 sm:$0xff]  }
 0xe3f   :  { %7370 = vmatprep.subr.bf16.mxu1 %v9188_v5  ;;  %v9273_v5 = vld [vmem:[#allocation24 + $0x2a8] ss:$16 sps:$4 sm:$0xff]  }
 0xe42   :  { %7371 = vmatpush1.bf16.msra.mxu1 %v9186_v23  ;;  %v9276_v23 = vld [vmem:[#allocation24 + $0x448] ss:$16 sps:$4 sm:$0xff]  }
 0xe43   :  { %7372 = vmatprep.subr.bf16.mxu1 %v9194_v24  ;;  %v9281_v24 = vld [vmem:[#allocation24 + $0x28c] ss:$16 sps:$4 sm:$0xff]  }
 0xe46   :  { %7373 = vmatpush1.bf16.msra.mxu1 %v9192_v63  ;;  %v9284_v63 = vld [vmem:[#allocation24 + $0x42c] ss:$16 sps:$4 sm:$0xff]  }
 0xe47   :  { %7374 = vmatprep.subr.bf16.mxu1 %v9200_v42  ;;  %v9279_v42 = vld [vmem:[#allocation24 + $0x288] ss:$16 sps:$4 sm:$0xff]  }
 0xe4a   :  { %7375 = vmatpush2.bf16.msra.mxu1 %v9198_v51  ;;  %v9287_v51 = vld [vmem:[#allocation24 + $0x26c] ss:$16 sps:$4 sm:$0xff]  }
 0xe4b   :  { %7376 = vmatprep.subr.bf16.mxu1 %v9206_v55  ;;  %v9290_v55 = vld [vmem:[#allocation24 + $0x40c] ss:$16 sps:$4 sm:$0xff]  }
 0xe4e   :  { %7377 = vmatpush2.bf16.msra.mxu1 %v9204_v22  ;;  %v9285_v22 = vld [vmem:[#allocation24 + $0x268] ss:$16 sps:$4 sm:$0xff]  }
 0xe4f   :  { %7378 = vmatprep.subr.bf16.mxu1 %v9212_v45  ;;  %v9288_v45 = vld [vmem:[#allocation24 + $0x408] ss:$16 sps:$4 sm:$0xff]  }
 0xe52   :  { %7379 = vmatpush2.bf16.msra.mxu1 %v9210_v57  ;;  %v9293_v57 = vld [vmem:[#allocation24 + $0x24c] ss:$16 sps:$4 sm:$0xff]  }
 0xe53   :  { %7380 = vmatprep.subr.bf16.mxu1 %v9218_v19  ;;  %v9296_v19 = vld [vmem:[#allocation24 + $0x5ec] ss:$16 sps:$4 sm:$0xff]  }
 0xe56   :  { %7381 = vmatpush2.bf16.msra.mxu1 %v9216_v61  ;;  %v9291_v61 = vld [vmem:[#allocation24 + $0x248] ss:$16 sps:$4 sm:$0xff]  }
 0xe57   :  { %7382 = vmatprep.subr.bf16.mxu1 %v9224_v10  ;;  %v9294_v10 = vld [vmem:[#allocation24 + $0x5e8] ss:$16 sps:$4 sm:$0xff]  }
 0xe5a   :  { %7383 = vmatpush2.bf16.msra.mxu1 %v9222_v13  ;;  %v9299_v13 = vld [vmem:[#allocation24 + $0x22c] ss:$16 sps:$4 sm:$0xff]  }
 0xe5b   :  { %7384 = vmatprep.subr.bf16.mxu1 %v9230_v7  ;;  %v9302_v7 = vld [vmem:[#allocation24 + $0x5cc] ss:$16 sps:$4 sm:$0xff]  }
 0xe5e   :  { %7385 = vmatpush2.bf16.msra.mxu1 %v9228_v8  ;;  %v9297_v8 = vld [vmem:[#allocation24 + $0x228] ss:$16 sps:$4 sm:$0xff]  }
 0xe5f   :  { %7386 = vmatprep.subr.bf16.mxu1 %v9236_v14  ;;  %v9300_v14 = vld [vmem:[#allocation24 + $0x5c8] ss:$16 sps:$4 sm:$0xff]  }
 0xe62   :  { %7387 = vmatpush2.bf16.msra.mxu1 %v9234_v11  ;;  %v9305_v11 = vld [vmem:[#allocation24 + $0x20c] ss:$16 sps:$4 sm:$0xff]  }
 0xe63   :  { %7388 = vmatprep.subr.bf16.mxu1 %v9242_v56  ;;  %v9308_v56 = vld [vmem:[#allocation24 + $0x5ac] ss:$16 sps:$4 sm:$0xff]  }
 0xe66   :  { %7389 = vmatpush2.bf16.msra.mxu1 %v9240_v36  ;;  %v9311_v36 = vld [vmem:[#allocation24 + $0x3ec] ss:$16 sps:$4 sm:$0xff]  }
 0xe67   :  { %7440 = vmatprep.subr.bf16.mxu1 %v9248_v54  ;;  %v9314_v54 = vld [vmem:[#allocation24 + $0x58c] ss:$16 sps:$4 sm:$0xff]  }
 0xe69   :  { %v5572_v18 = vpop.f32.mrf.mxu1  ;;  %7391 = vmatmul.mubr.bf16.vlgmr.msra.gmra.mxu1 %v10268_v1 }
 0xe6a   :  { %v5573_v44 = vadd.f32 %v5572_v18, %v5532_v40  ;;  %v5613_v21 = vpop.f32.mrf.mxu0  ;;  %7441 = vmatpush1.bf16.msra.mxu1 %v9246_v62  ;;  %7472 = vmatprep.mubr.bf16.mxu1 %v10279_v38  ;;  %v9261_v38 = vld [vmem:[#allocation24 + $0x2e8] ss:$16 sps:$4 sm:$0xff]   ;;  %v9317_v62 = vld [vmem:[#allocation24 + $0x3cc] ss:$16 sps:$4 sm:$0xff]  }
 0xe6b   :  { %v5574_v48 = vpop.f32.mrf.mxu1  ;;  %7442 = vmatprep.subr.bf16.mxu1 %v9254_v30  ;;  %v9320_v30 = vld [vmem:[#allocation24 + $0x56c] ss:$16 sps:$4 sm:$0xff]   ;;  %v9315_v40 = vld [vmem:[#allocation24 + $0x3c8] ss:$16 sps:$4 sm:$0xff]  }
 0xe6c   :  { %v5614_v31 = vadd.f32 %v5613_v21, %v5573_v44  ;;  %v5575_v43 = vadd.f32 %v5574_v48, %v5534_v27  ;;  %v5615_v25 = vpop.f32.mrf.mxu0  ;;  %v9318_v18 = vld [vmem:[#allocation24 + $0x568] ss:$16 sps:$4 sm:$0xff]   ;;  %v9323_v27 = vld [vmem:[#allocation24 + $0x3ac] ss:$16 sps:$4 sm:$0xff]  }
 0xe6d   :  { %v5576_v46 = vpop.f32.mrf.mxu1  ;;  %v9326_v44 = vld [vmem:[#allocation24 + $0x54c] ss:$16 sps:$4 sm:$0xff]   ;;  %v9321_v21 = vld [vmem:[#allocation24 + $0x3a8] ss:$16 sps:$4 sm:$0xff]  }
 0xe6e   :  { %v5616_v59 = vadd.f32 %v5615_v25, %v5575_v43  ;;  %v5617_v47 = vpop.f32.mrf.mxu0  ;;  %7443 = vmatpush1.bf16.msra.mxu1 %v9252_v37  ;;  %v5626_v1 = vmax.f32 %v5614_v31, 0.0  ;;  %v9324_v37 = vld [vmem:[#allocation24 + $0x548] ss:$16 sps:$4 sm:$0xff]   ;;  %v9329_v48 = vld [vmem:[#allocation24 + $0x38c] ss:$16 sps:$4 sm:$0xff]  }
 0xe6f   :  { %v5577_v58 = vpop.f32.mrf.mxu1  ;;  %7444 = vmatprep.subr.bf16.mxu1 %v9260_v6  ;;  %v9332_v6 = vld [vmem:[#allocation24 + $0x52c] ss:$16 sps:$4 sm:$0xff]   ;;  %v9327_v31 = vld [vmem:[#allocation24 + $0x388] ss:$16 sps:$4 sm:$0xff]  }
 0xe70   :  { %v5627_v50 = vmax.f32 %v5616_v59, 0.0  ;;  %v5618_v0 = vpop.f32.mrf.mxu0  ;;  %v10311_v28 = vpack.c.bf16 %v5626_v1, %v5626_v1  ;;  %v9330_v43 = vld [vmem:[#allocation24 + $0x528] ss:$16 sps:$4 sm:$0xff]   ;;  %v9335_v25 = vld [vmem:[#allocation24 + $0x36c] ss:$16 sps:$4 sm:$0xff]  }
 0xe71   :  { %v9338_v46 = vld [vmem:[#allocation24 + $0x50c] ss:$16 sps:$4 sm:$0xff]   ;;  %v9333_v59 = vld [vmem:[#allocation24 + $0x368] ss:$16 sps:$4 sm:$0xff]   ;;  %v10316_v1 = vld [vmem:[#allocation25] sm:$0xf] }
 0xe72   :  { %v10309_v2 = vpack.c.bf16 %v5627_v50, %v5627_v50  ;;  %7445 = vmatpush1.bf16.msra.mxu1 %v9258_v49  ;;  %v9336_v47 = vld [vmem:[#allocation24 + $0x508] ss:$16 sps:$4 sm:$0xff]   ;;  %v9341_v49 = vld [vmem:[#allocation24 + $0x34c] ss:$16 sps:$4 sm:$0xff]   ;;  %v5897_v50 = vrot.slane %v10316_v1, %v10113_v12 }
 0xe73   :  { %7446 = vmatprep.subr.bf16.mxu1 %v9266_v60  ;;  %v7557_v58 = vld [vmem:[%s10553_s16 + $0xf8] sm:$0xff] }
 0xe74   :  { %7349 = vmatprep.mubr.bf16.mxu0 %v10309_v2  ;;  %v9339_v60 = vld [vmem:[#allocation24 + $0x348] ss:$16 sps:$4 sm:$0xff]   ;;  %v9344_v0 = vld [vmem:[#allocation24 + $0x32c] ss:$16 sps:$4 sm:$0xff]  }
 0xe75   :  { %7350 = vmatmul.mubr.bf16.vlgmr.msra.gmra.mxu0 %v10311_v28  ;;  %v9342_v12 = vld [vmem:[#allocation24 + $0x328] ss:$16 sps:$4 sm:$0xff]  }
 0xe76   :  { %7400 = vmatpush1.bf16.msra.mxu0 %v9261_v38  ;;  %7431 = vmatprep.mubr.bf16.mxu0 %v10251_v41  ;;  %v9282_v41 = vld [vmem:[#allocation24 + $0x428] ss:$16 sps:$4 sm:$0xff]   ;;  %v5901_v38 = vrot.slane %v10316_v1, %v10121_v34  ;;  %v7540_v34 = vld [vmem:[%s10553_s16 + $0x70] sm:$0xff] }
 0xe77   :  { %7447 = vmatpush1.bf16.msra.mxu1 %v9264_v3  ;;  %7401 = vmatprep.subr.bf16.mxu0 %v9269_v4  ;;  %v7541_v3 = vld [vmem:[%s10553_s16 + $0x78] sm:$0xff] }
 0xe78   :  { %7448 = vmatprep.subr.bf16.mxu1 %v9272_v53  ;;  %v7556_v53 = vld [vmem:[%s10553_s16 + $0xf0] sm:$0xff] }
 0xe7a   :  { %7402 = vmatpush1.bf16.msra.mxu0 %v9267_v15 }
 0xe7b   :  { %7449 = vmatpush1.bf16.msra.mxu1 %v9270_v39  ;;  %7403 = vmatprep.subr.bf16.mxu0 %v9275_v20 }
 0xe7c   :  { %7450 = vmatprep.subr.bf16.mxu1 %v9278_v52  ;;  %v9347_v52 = vld [vmem:[#allocation24 + $0x30c] ss:$16 sps:$4 sm:$0xff]  }
 0xe7e   :  { %7404 = vmatpush1.bf16.msra.mxu0 %v9273_v5  ;;  %v7555_v5 = vld [vmem:[%s10553_s16 + $0xe8] sm:$0xff] }
 0xe7f   :  { %7451 = vmatpush1.bf16.msra.mxu1 %v9276_v23  ;;  %7405 = vmatprep.subr.bf16.mxu0 %v9281_v24 }
 0xe80   :  { %7452 = vmatprep.subr.bf16.mxu1 %v9284_v63 }
 0xe82   :  { %7406 = vmatpush1.bf16.msra.mxu0 %v9279_v42 }
 0xe83   :  { %7453 = vmatpush1.bf16.msra.mxu1 %v9282_v41  ;;  %7407 = vmatprep.subr.bf16.mxu0 %v9287_v51  ;;  %v7554_v41 = vld [vmem:[%s10553_s16 + $0xe0] sm:$0xff] }
 0xe84   :  { %7454 = vmatprep.subr.bf16.mxu1 %v9290_v55 }
 0xe86   :  { %7408 = vmatpush1.bf16.msra.mxu0 %v9285_v22  ;;  %v9345_v22 = vld [vmem:[#allocation24 + $0x308] ss:$16 sps:$4 sm:$0xff]  }
 0xe87   :  { %7455 = vmatpush1.bf16.msra.mxu1 %v9288_v45  ;;  %7409 = vmatprep.subr.bf16.mxu0 %v9293_v57  ;;  %v7538_v45 = vld [vmem:[%s10553_s16 + $0x60] sm:$0xff] }
 0xe88   :  { %7456 = vmatprep.subr.bf16.mxu1 %v9296_v19  ;;  %v9350_v19 = vld [vmem:[#allocation24 + $0x6ec] ss:$16 sps:$4 sm:$0xff]  }
 0xe8a   :  { %7410 = vmatpush1.bf16.msra.mxu0 %v9291_v61  ;;  %v7553_v61 = vld [vmem:[%s10553_s16 + $0xd8] sm:$0xff] }
 0xe8b   :  { %7457 = vmatpush2.bf16.msra.mxu1 %v9294_v10  ;;  %7411 = vmatprep.subr.bf16.mxu0 %v9299_v13  ;;  %v7537_v13 = vld [vmem:[%s10553_s16 + $0x58] sm:$0xff] }
 0xe8c   :  { %7458 = vmatprep.subr.bf16.mxu1 %v9302_v7  ;;  %v7552_v7 = vld [vmem:[%s10553_s16 + $0xd0] sm:$0xff] }
 0xe8e   :  { %7412 = vmatpush1.bf16.msra.mxu0 %v9297_v8  ;;  %v9348_v8 = vld [vmem:[#allocation24 + $0x6e8] ss:$16 sps:$4 sm:$0xff]  }
 0xe8f   :  { %7459 = vmatpush2.bf16.msra.mxu1 %v9300_v14  ;;  %7413 = vmatprep.subr.bf16.mxu0 %v9305_v11  ;;  %v7536_v14 = vld [vmem:[%s10553_s16 + $0x50] sm:$0xff] }
 0xe90   :  { %7460 = vmatprep.subr.bf16.mxu1 %v9308_v56  ;;  %v9353_v11 = vld [vmem:[#allocation24 + $0x6cc] ss:$16 sps:$4 sm:$0xff]  }
 0xe91   :  { %v7551_v56 = vld [vmem:[%s10553_s16 + $0xc8] sm:$0xff] }
 0xe92   :  { %7414 = vmatpush1.bf16.msra.mxu0 %v9303_v26  ;;  %v7535_v26 = vld [vmem:[%s10553_s16 + $0x48] sm:$0xff] }
 0xe93   :  { %7461 = vmatpush2.bf16.msra.mxu1 %v9306_v35  ;;  %7415 = vmatprep.subr.bf16.mxu0 %v9311_v36  ;;  %v9351_v35 = vld [vmem:[#allocation24 + $0x6c8] ss:$16 sps:$4 sm:$0xff]   ;;  %v7550_v36 = vld [vmem:[%s10553_s16 + $0xc0] sm:$0xff] }
 0xe94   :  { %7462 = vmatprep.subr.bf16.mxu1 %v9314_v54  ;;  %v9356_v54 = vld [vmem:[#allocation24 + $0x6ac] ss:$16 sps:$4 sm:$0xff]  }
 0xe96   :  { %7416 = vmatpush2.bf16.msra.mxu0 %v9309_v16  ;;  %v7549_v16 = vld [vmem:[%s10553_s16 + $0xb8] sm:$0xff] }
 0xe97   :  { %7463 = vmatpush2.bf16.msra.mxu1 %v9312_v33  ;;  %7417 = vmatprep.subr.bf16.mxu0 %v9317_v62  ;;  %v9354_v33 = vld [vmem:[#allocation24 + $0x6a8] ss:$16 sps:$4 sm:$0xff]   ;;  %v7548_v62 = vld [vmem:[%s10553_s16 + $0xb0] sm:$0xff] }
 0xe98   :  { %7464 = vmatprep.subr.bf16.mxu1 %v9320_v30  ;;  %v9359_v30 = vld [vmem:[#allocation24 + $0x68c] ss:$16 sps:$4 sm:$0xff]  }
 0xe9a   :  { %7418 = vmatpush2.bf16.msra.mxu0 %v9315_v40  ;;  %v7532_v40 = vld [vmem:[%s10553_s16 + $0x30] sm:$0xff] }
 0xe9b   :  { %7465 = vmatpush2.bf16.msra.mxu1 %v9318_v18  ;;  %7419 = vmatprep.subr.bf16.mxu0 %v9323_v27  ;;  %v7547_v18 = vld [vmem:[%s10553_s16 + $0xa8] sm:$0xff] }
 0xe9c   :  { %7466 = vmatprep.subr.bf16.mxu1 %v9326_v44  ;;  %v7531_v27 = vld [vmem:[%s10553_s16 + $0x28] sm:$0xff] }
 0xe9d   :  { %v9357_v44 = vld [vmem:[#allocation24 + $0x688] ss:$16 sps:$4 sm:$0xff]  }
 0xe9e   :  { %7420 = vmatpush2.bf16.msra.mxu0 %v9321_v21  ;;  %v7546_v21 = vld [vmem:[%s10553_s16 + $0xa0] sm:$0xff] }
 0xe9f   :  { %7467 = vmatpush2.bf16.msra.mxu1 %v9324_v37  ;;  %7421 = vmatprep.subr.bf16.mxu0 %v9329_v48  ;;  %v9362_v37 = vld [vmem:[#allocation24 + $0x66c] ss:$16 sps:$4 sm:$0xff]  }
 0xea0   :  { %7468 = vmatprep.subr.bf16.mxu1 %v9332_v6  ;;  %v7530_v48 = vld [vmem:[%s10553_s16 + $0x20] sm:$0xff]  ;;  %v7545_v6 = vld [vmem:[%s10553_s16 + $0x98] sm:$0xff] }
 0xea2   :  { %7422 = vmatpush2.bf16.msra.mxu0 %v9327_v31  ;;  %v7529_v31 = vld [vmem:[%s10553_s16 + $0x18] sm:$0xff] }
 0xea3   :  { %7469 = vmatpush2.bf16.msra.mxu1 %v9330_v43  ;;  %7423 = vmatprep.subr.bf16.mxu0 %v9335_v25  ;;  %v9360_v43 = vld [vmem:[#allocation24 + $0x668] ss:$16 sps:$4 sm:$0xff]   ;;  %v7544_v25 = vld [vmem:[%s10553_s16 + $0x90] sm:$0xff] }
 0xea4   :  { %7470 = vmatprep.subr.bf16.mxu1 %v9338_v46  ;;  %v9365_v46 = vld [vmem:[#allocation24 + $0x64c] ss:$16 sps:$4 sm:$0xff]  }
 0xea6   :  { %7424 = vmatpush2.bf16.msra.mxu0 %v9333_v59  ;;  %v7528_v59 = vld [vmem:[%s10553_s16 + $0x10] sm:$0xff] }
 0xea7   :  { %7471 = vmatpush2.bf16.msra.mxu1 %v9336_v47  ;;  %7425 = vmatprep.subr.bf16.mxu0 %v9341_v49  ;;  %v7543_v47 = vld [vmem:[%s10553_s16 + $0x88] sm:$0xff] }
 0xea8   :  { %8711 = vmatprep.subr.mxu1 %v7557_v58  ;;  %v7527_v49 = vld [vmem:[%s10553_s16 + $0x8] sm:$0xff] }
 0xea9   :  { %v7228_v4 = vpop.f32.mrf.mxu1  ;;  %v9363_v58 = vld [vmem:[#allocation24 + $0x648] ss:$16 sps:$4 sm:$0xff]  }
 0xeaa   :  { %v7229_v15 = vadd.f32 %v7228_v4, %v5897_v50  ;;  %v7269_v39 = vpop.f32.mrf.mxu0  ;;  %7426 = vmatpush2.bf16.msra.mxu0 %v9339_v60  ;;  %7473 = vmatmul.mubr.bf16.vlgmr.msra.gmra.mxu1 %v10285_v17  ;;  %v7539_v17 = vld [vmem:[%s10553_s16 + $0x68] sm:$0xff]  ;;  %v7542_v60 = vld [vmem:[%s10553_s16 + $0x80] sm:$0xff] }
 0xeab   :  { %v7230_v20 = vpop.f32.mrf.mxu1  ;;  %7427 = vmatprep.subr.bf16.mxu0 %v9344_v0  ;;  %8712 = vmatpush3.msra.mxu1 %v7541_v3  ;;  %v9368_v50 = vld [vmem:[#allocation24 + $0x62c] ss:$16 sps:$4 sm:$0xff]   ;;  %v9369_v4 = vld [vmem:[#allocation24 + $0x608] ss:$16 sps:$4 sm:$0xff]  }
 0xeac   :  { %v10338_v23 = vadd.f32 %v7269_v39, %v7229_v15  ;;  %v7231_v24 = vadd.f32 %v7230_v20, %v5901_v38  ;;  %v7271_v63 = vpop.f32.mrf.mxu0  ;;  %8713 = vmatprep.subr.mxu1 %v7556_v53  ;;  %v7526_v0 = vld [vmem:[%s10553_s16] sm:$0xff]  ;;  %v9366_v38 = vld [vmem:[#allocation24 + $0x628] ss:$16 sps:$4 sm:$0xff]  }
 0xead   :  { %v7232_v42 = vpop.f32.mrf.mxu1  ;;  %8714 = vmatpush3.msra.mxu1 %v7540_v34  ;;  %v9371_v3 = vld [vmem:[#allocation24 + $0x60c] ss:$16 sps:$4 sm:$0xff]   ;;  %v9372_v15 = vld [vmem:[#allocation24 + $0x7e8] ss:$16 sps:$4 sm:$0xff]  }
 0xeae   :  { %v10346_v51 = vadd.f32 %v7271_v63, %v7231_v24  ;;  %v7273_v55 = vpop.f32.mrf.mxu0  ;;  %7428 = vmatpush2.bf16.msra.mxu0 %v9342_v12  ;;  %8715 = vmatprep.subr.mxu1 %v7555_v5  ;;  %v9374_v53 = vld [vmem:[#allocation24 + $0x7ec] ss:$16 sps:$4 sm:$0xff]   ;;  %v9375_v12 = vld [vmem:[#allocation24 + $0x7c8] ss:$16 sps:$4 sm:$0xff]  }
 0xeaf   :  { %v7233_v57 = vpop.f32.mrf.mxu1  ;;  %7429 = vmatprep.subr.bf16.mxu0 %v9347_v52  ;;  %8716 = vmatpush3.msra.mxu1 %v7539_v17  ;;  %v9377_v39 = vld [vmem:[#allocation24 + $0x7cc] ss:$16 sps:$4 sm:$0xff]   ;;  %v9378_v20 = vld [vmem:[#allocation24 + $0x7a8] ss:$16 sps:$4 sm:$0xff]  }
 0xeb0   :  { %v7274_v10 = vpop.f32.mrf.mxu0  ;;  %8717 = vmatprep.subr.mxu1 %v7554_v41  ;;  %v9380_v34 = vld [vmem:[#allocation24 + $0x7ac] ss:$16 sps:$4 sm:$0xff]   ;;  %v9381_v5 = vld [vmem:[#allocation24 + $0x788] ss:$16 sps:$4 sm:$0xff]  }
 0xeb1   :  { %8718 = vmatpush3.msra.mxu1 %v7538_v45  ;;  %v9383_v52 = vld [vmem:[#allocation24 + $0x78c] ss:$16 sps:$4 sm:$0xff]   ;;  %v9384_v63 = vld [vmem:[#allocation24 + $0x768] ss:$16 sps:$4 sm:$0xff]  }
 0xeb2   :  { %7430 = vmatpush2.bf16.msra.mxu0 %v9345_v22  ;;  %8719 = vmatprep.subr.mxu1 %v7553_v61  ;;  %v9386_v24 = vld [vmem:[#allocation24 + $0x76c] ss:$16 sps:$4 sm:$0xff]   ;;  %v9387_v42 = vld [vmem:[#allocation24 + $0x748] ss:$16 sps:$4 sm:$0xff]  }
 0xeb3   :  { %7481 = vmatprep.subr.bf16.mxu0 %v9350_v19  ;;  %8720 = vmatpush3.msra.mxu1 %v7537_v13  ;;  %v9389_v17 = vld [vmem:[#allocation24 + $0x74c] ss:$16 sps:$4 sm:$0xff]   ;;  %v9390_v45 = vld [vmem:[#allocation24 + $0x728] ss:$16 sps:$4 sm:$0xff]  }
 0xeb4   :  { %8721 = vmatprep.subr.mxu1 %v7552_v7  ;;  %v9392_v41 = vld [vmem:[#allocation24 + $0x72c] ss:$16 sps:$4 sm:$0xff]   ;;  %v9393_v13 = vld [vmem:[#allocation24 + $0x708] ss:$16 sps:$4 sm:$0xff]  }
 0xeb5   :  { %7432 = vmatmul.mubr.bf16.vlgmr.msra.gmra.mxu0 %v10270_v9  ;;  %8722 = vmatpush3.msra.mxu1 %v7536_v14  ;;  %v7534_v9 = vld [vmem:[%s10553_s16 + $0x40] sm:$0xff]  ;;  %v7572_v14 = vld [vmem:[%s10553_s16 + $0x170] sm:$0xff] }
 0xeb6   :  { %7482 = vmatpush1.bf16.msra.mxu0 %v9348_v8  ;;  %7513 = vmatprep.mubr.bf16.mxu0 %v10309_v2  ;;  %v7533_v2 = vld [vmem:[%s10553_s16 + $0x38] sm:$0xff] }
 0xeb7   :  { %7483 = vmatprep.subr.bf16.mxu0 %v9353_v11  ;;  %8723 = vmatprep.subr.mxu1 %v7551_v56  ;;  %v9395_v19 = vld [vmem:[#allocation24 + $0x70c] ss:$16 sps:$4 sm:$0xff]  }
 0xeb8   :  { %8724 = vmatpush3.msra.mxu1 %v7535_v26  ;;  %v7573_v8 = vld [vmem:[%s10553_s16 + $0x178] sm:$0xff]  ;;  %v7571_v11 = vld [vmem:[%s10553_s16 + $0x168] sm:$0xff]  ;;  %v7586_v56 = vld [vmem:[%s10553_s16 + $0x1e0] sm:$0xff] }
 0xeb9   :  { %8725 = vmatprep.subr.mxu1 %v7550_v36  ;;  %v7570_v26 = vld [vmem:[%s10553_s16 + $0x160] sm:$0xff]  ;;  %v7569_v36 = vld [vmem:[%s10553_s16 + $0x158] sm:$0xff] }
 0xeba   :  { %7484 = vmatpush1.bf16.msra.mxu0 %v9351_v35  ;;  %8726 = vmatpush3.msra.mxu1 %v7534_v9  ;;  %v7585_v35 = vld [vmem:[%s10553_s16 + $0x1d8] sm:$0xff]  ;;  %v7568_v9 = vld [vmem:[%s10553_s16 + $0x150] sm:$0xff] }
 0xebb   :  { %7485 = vmatprep.subr.bf16.mxu0 %v9356_v54  ;;  %8727 = vmatprep.subr.mxu1 %v7549_v16  ;;  %v7584_v54 = vld [vmem:[%s10553_s16 + $0x1d0] sm:$0xff]  ;;  %v7583_v16 = vld [vmem:[%s10553_s16 + $0x1c8] sm:$0xff] }
 0xebc   :  { %8728 = vmatpush3.msra.mxu1 %v7533_v2  ;;  %v7567_v2 = vld [vmem:[%s10553_s16 + $0x148] sm:$0xff] }
 0xebd   :  { %8729 = vmatprep.subr.mxu1 %v7548_v62  ;;  %v7566_v62 = vld [vmem:[%s10553_s16 + $0x140] sm:$0xff] }
 0xebe   :  { %7486 = vmatpush1.bf16.msra.mxu0 %v9354_v33  ;;  %8730 = vmatpush3.msra.mxu1 %v7532_v40  ;;  %v7582_v33 = vld [vmem:[%s10553_s16 + $0x1c0] sm:$0xff]  ;;  %v7565_v40 = vld [vmem:[%s10553_s16 + $0x138] sm:$0xff] }
 0xebf   :  { %7487 = vmatprep.subr.bf16.mxu0 %v9359_v30  ;;  %8731 = vmatprep.subr.mxu1 %v7547_v18  ;;  %v7581_v30 = vld [vmem:[%s10553_s16 + $0x1b8] sm:$0xff]  ;;  %v7580_v18 = vld [vmem:[%s10553_s16 + $0x1b0] sm:$0xff] }
 0xec0   :  { %8732 = vmatpush3.msra.mxu1 %v7531_v27  ;;  %v7564_v27 = vld [vmem:[%s10553_s16 + $0x130] sm:$0xff] }
 0xec1   :  { %8733 = vmatprep.subr.mxu1 %v7546_v21  ;;  %v7563_v21 = vld [vmem:[%s10553_s16 + $0x128] sm:$0xff] }
 0xec2   :  { %7488 = vmatpush1.bf16.msra.mxu0 %v9357_v44  ;;  %8734 = vmatpush3.msra.mxu1 %v7530_v48  ;;  %v7579_v44 = vld [vmem:[%s10553_s16 + $0x1a8] sm:$0xff]  ;;  %v7562_v48 = vld [vmem:[%s10553_s16 + $0x120] sm:$0xff] }
 0xec3   :  { %7489 = vmatprep.subr.bf16.mxu0 %v9362_v37  ;;  %8735 = vmatprep.subr.mxu1 %v7545_v6  ;;  %v7578_v37 = vld [vmem:[%s10553_s16 + $0x1a0] sm:$0xff] }
 0xec4   :  { %8736 = vmatpush3.msra.mxu1 %v7529_v31 }
 0xec5   :  { %8737 = vmatprep.subr.mxu1 %v7544_v25 }
 0xec6   :  { %7490 = vmatpush1.bf16.msra.mxu0 %v9360_v43  ;;  %8738 = vmatpush3.msra.mxu1 %v7528_v59  ;;  %v7577_v59 = vld [vmem:[%s10553_s16 + $0x198] sm:$0xff] }
 0xec7   :  { %7491 = vmatprep.subr.bf16.mxu0 %v9365_v46  ;;  %8739 = vmatprep.subr.mxu1 %v7543_v47  ;;  %v7561_v47 = vld [vmem:[%s10553_s16 + $0x118] sm:$0xff] }
 0xec8   :  { %8740 = vmatpush3.msra.mxu1 %v7527_v49 }
 0xec9   :  { %8741 = vmatprep.subr.mxu1 %v7542_v60  ;;  %v7576_v60 = vld [vmem:[%s10553_s16 + $0x190] sm:$0xff] }
 0xeca   :  { %7492 = vmatpush1.bf16.msra.mxu0 %v9363_v58  ;;  %8742 = vmatpush3.msra.mxu1 %v7526_v0  ;;  %v7560_v0 = vld [vmem:[%s10553_s16 + $0x110] sm:$0xff] }
 0xecb   :  { %7493 = vmatprep.subr.bf16.mxu0 %v9368_v50 }
 0xece   :  { %7494 = vmatpush1.bf16.msra.mxu0 %v9366_v38 }
 0xecf   :  { %7495 = vmatprep.subr.bf16.mxu0 %v9371_v3  ;;  %v7575_v3 = vld [vmem:[%s10553_s16 + $0x188] sm:$0xff] }
 0xed2   :  { %7496 = vmatpush1.bf16.msra.mxu0 %v9369_v4 }
 0xed3   :  { %7497 = vmatprep.subr.bf16.mxu0 %v9374_v53  ;;  %v7559_v53 = vld [vmem:[%s10553_s16 + $0x108] sm:$0xff] }
 0xed6   :  { %7498 = vmatpush2.bf16.msra.mxu0 %v9372_v15 }
 0xed7   :  { %7499 = vmatprep.subr.bf16.mxu0 %v9377_v39 }
 0xeda   :  { %7500 = vmatpush2.bf16.msra.mxu0 %v9375_v12  ;;  %v7574_v12 = vld [vmem:[%s10553_s16 + $0x180] sm:$0xff] }
 0xedb   :  { %7501 = vmatprep.subr.bf16.mxu0 %v9380_v34  ;;  %v7558_v34 = vld [vmem:[%s10553_s16 + $0x100] sm:$0xff] }
 0xede   :  { %7502 = vmatpush2.bf16.msra.mxu0 %v9378_v20 }
 0xedf   :  { %7503 = vmatprep.subr.bf16.mxu0 %v9383_v52 }
 0xee2   :  { %7504 = vmatpush2.bf16.msra.mxu0 %v9381_v5 }
 0xee3   :  { %7505 = vmatprep.subr.bf16.mxu0 %v9386_v24  ;;  %v5905_v24 = vrot.slane %v10316_v1, %v10116_v29 }
 0xee6   :  { %7506 = vmatpush2.bf16.msra.mxu0 %v9384_v63 }
 0xee7   :  { %7507 = vmatprep.subr.bf16.mxu0 %v9389_v17  ;;  %v5909_v17 = vrot.slane %v10316_v1, %v10124_v32 }
 0xee9   :  { %v7310_v55 = vpop.f32.mrf.mxu1 }
 0xeea   :  { %v10426_v22 = vadd.f32 %v7310_v55, %v10338_v23  ;;  %7508 = vmatpush2.bf16.msra.mxu0 %v9387_v42  ;;  %v7589_v23 = vld [vmem:[%s10553_s16 + $0x1f8] sm:$0xff] }
 0xeeb   :  { %v7312_v57 = vpop.f32.mrf.mxu1  ;;  %7509 = vmatprep.subr.bf16.mxu0 %v9392_v41 }
 0xeec   :  { %v10429_v61 = vadd.f32 %v7312_v57, %v10346_v51  ;;  %v7588_v51 = vld [vmem:[%s10553_s16 + $0x1f0] sm:$0xff] }
 0xeed   :  { %v7314_v10 = vpop.f32.mrf.mxu1 }
 0xeee   :  { %7510 = vmatpush2.bf16.msra.mxu0 %v9390_v45 }
 0xeef   :  { %v7315_v7 = vpop.f32.mrf.mxu1  ;;  %7511 = vmatprep.subr.bf16.mxu0 %v9395_v19 }
 0xef2   :  { %7512 = vmatpush2.bf16.msra.mxu0 %v9393_v13 }
 0xef3   :  { %8746 = vmatprep.subr.mxu0 %v7589_v23 }
 0xef5   :  { %7514 = vmatmul.mubr.bf16.vlgmr.msra.gmra.mxu0 %v10311_v28  ;;  %v7587_v28 = vld [vmem:[%s10553_s16 + $0x1e8] sm:$0xff] }
 0xef6   :  { %8747 = vmatpush3.msra.mxu0 %v7573_v8 }
 0xef7   :  { %8748 = vmatprep.subr.mxu0 %v7588_v51 }
 0xef8   :  { %8749 = vmatpush3.msra.mxu0 %v7572_v14 }
 0xef9   :  { %8750 = vmatprep.subr.mxu0 %v7587_v28 }
 0xefa   :  { %8751 = vmatpush3.msra.mxu0 %v7571_v11 }
 0xefb   :  { %8752 = vmatprep.subr.mxu0 %v7586_v56 }
 0xefc   :  { %8753 = vmatpush3.msra.mxu0 %v7570_v26  ;;  %v8635_v26 = vld [vmem:[#allocation2] ss:$0 sm:$0xff] }
 0xefd   :  { %8754 = vmatprep.subr.mxu0 %v7585_v35 }
 0xefe   :  { %8755 = vmatpush3.msra.mxu0 %v7569_v36 }
 0xeff   :  { %8756 = vmatprep.subr.mxu0 %v7584_v54 }
 0xf00   :  { %8757 = vmatpush3.msra.mxu0 %v7568_v9 }
 0xf01   :  { %8758 = vmatprep.subr.mxu0 %v7583_v16 }
 0xf02   :  { %8759 = vmatpush3.msra.mxu0 %v7567_v2 }
 0xf03   :  { %8760 = vmatprep.subr.mxu0 %v7582_v33 }
 0xf04   :  { %8761 = vmatpush3.msra.mxu0 %v7566_v62 }
 0xf05   :  { %8762 = vmatprep.subr.mxu0 %v7581_v30 }
 0xf06   :  { %8763 = vmatpush3.msra.mxu0 %v7565_v40 }
 0xf07   :  { %8764 = vmatprep.subr.mxu0 %v7580_v18 }
 0xf08   :  { %8765 = vmatpush3.msra.mxu0 %v7564_v27 }
 0xf09   :  { %8766 = vmatprep.subr.mxu0 %v7579_v44 }
 0xf0a   :  { %8767 = vmatpush3.msra.mxu0 %v7563_v21 }
 0xf0b   :  { %8768 = vmatprep.subr.mxu0 %v7578_v37 }
 0xf0c   :  { %8769 = vmatpush3.msra.mxu0 %v7562_v48 }
 0xf0d   :  { %8770 = vmatprep.subr.mxu0 %v7577_v59 }
 0xf0e   :  { %8771 = vmatpush3.msra.mxu0 %v7561_v47 }
 0xf0f   :  { %8772 = vmatprep.subr.mxu0 %v7576_v60 }
 0xf10   :  { %8773 = vmatpush3.msra.mxu0 %v7560_v0 }
 0xf11   :  { %8774 = vmatprep.subr.mxu0 %v7575_v3 }
 0xf12   :  { %8775 = vmatpush3.msra.mxu0 %v7559_v53 }
 0xf13   :  { %8776 = vmatprep.subr.mxu0 %v7574_v12 }
 0xf14   :  { %8777 = vmatpush3.msra.mxu0 %v7558_v34 }
 0xf29   :  { %v7392_v6 = vpop.f32.mrf.mxu1 }
 0xf2a   :  { %v7393_v42 = vadd.f32 %v7392_v6, %v5905_v24 }
 0xf2b   :  { %v7394_v31 = vpop.f32.mrf.mxu1 }
 0xf2c   :  { %v7395_v55 = vadd.f32 %v7394_v31, %v5909_v17 }
 0xf2d   :  { %v7396_v43 = vpop.f32.mrf.mxu1 }
 0xf2f   :  { %v7397_v25 = vpop.f32.mrf.mxu1 }
 0xf35   :  { %v7351_v46 = vpop.f32.mrf.mxu0 }
 0xf36   :  { %v7352_v49 = vadd.f32 %v7351_v46, %v10426_v22 }
 0xf37   :  { %v7353_v58 = vpop.f32.mrf.mxu0 }
 0xf38   :  { %v7354_v50 = vadd.f32 %v7353_v58, %v10429_v61  ;;  %v7522_v15 = vmax.f32 %v7352_v49, 0.0 }
 0xf39   :  { %v7355_v38 = vpop.f32.mrf.mxu0 }
 0xf3a   :  { %v7523_v4 = vmax.f32 %v7354_v50, 0.0 }
 0xf3b   :  { %v7356_v39 = vpop.f32.mrf.mxu0 }
 0xf3c   :  { %7661 = vmatprep.mubr.f32.mxu1 %v7523_v4 }
 0xf3d   :  { %7662 = vmatmul.mubr.f32.vlgmr.msra.gmra.mxu1 %v7522_v15 }
 0xf6a   :  { %v7474_v20 = vpop.f32.mrf.mxu1 }
 0xf6c   :  { %v7476_v52 = vpop.f32.mrf.mxu1 }
 0xf6e   :  { %v7478_v5 = vpop.f32.mrf.mxu1 }
 0xf70   :  { %v7479_v63 = vpop.f32.mrf.mxu1 }
 0xf75   :  { %v7433_v41 = vpop.f32.mrf.mxu0 }
 0xf76   :  { %v7434_v22 = vadd.f32 %v7433_v41, %v7393_v42 }
 0xf77   :  { %v7435_v45 = vpop.f32.mrf.mxu0 }
 0xf78   :  { %v7436_v57 = vadd.f32 %v7435_v45, %v7395_v55  ;;  %v7475_v19 = vadd.f32 %v7474_v20, %v7434_v22 }
 0xf79   :  { %v7437_v61 = vpop.f32.mrf.mxu0 }
 0xf7a   :  { %v7477_v10 = vadd.f32 %v7476_v52, %v7436_v57 }
 0xf7b   :  { %v7438_v13 = vpop.f32.mrf.mxu0 }
 0xfb5   :  { %v7515_v7 = vpop.f32.mrf.mxu0 }
 0xfb6   :  { %v7516_v23 = vadd.f32 %v7515_v7, %v7475_v19 }
 0xfb7   :  { %v7517_v8 = vpop.f32.mrf.mxu0 }
 0xfb8   :  { %v7518_v51 = vadd.f32 %v7517_v8, %v7477_v10  ;;  %v7524_v28 = vmax.f32 %v7516_v23, 0.0 }
 0xfb9   :  { %v7519_v14 = vpop.f32.mrf.mxu0 }
 0xfba   :  { %v7525_v29 = vmax.f32 %v7518_v51, 0.0 }
 0xfbb   :  { %v7520_v11 = vpop.f32.mrf.mxu0 }
 0xfbc   :  { %7731 = vmatprep.mubr.f32.mxu0 %v7525_v29 }
 0xfbd   :  { %7732 = vmatmul.mubr.f32.vlgmr.msra.gmra.mxu0 %v7524_v28 }
 0xffd   :  { %v8743_v32 = vpop.f32.mrf.mxu1 }
 0xfff   :  { %v8744_v1 = vpop.f32.mrf.mxu1 }
0x1000   :  { %v8745_v56 = vadd.f32 %v8744_v1, %v8743_v32 }
0x1002   :  { %v7664_v54 = vadd.f32 %v8745_v56, %v8635_v26 }
0x107d   :  { %v8778_v35 = vpop.f32.mrf.mxu0 }
0x107f   :  { %v8779_v36 = vpop.f32.mrf.mxu0 }
0x1080   :  { %v8780_v9 = vadd.f32 %v8779_v36, %v8778_v35 }
0x1082   :  { %v7734_v16 = vadd.f32 %v8780_v9, %v7664_v54 }
0x1084   :  { %7738 = vst.msk [vmem:[%s10555_s18] sm:$0x3] %vm7737_vm3, %v7734_v16 }
0x1085   :  { %7743 = vsyncpa [#allocation4], 1 }
0x1086   :  { %7744 = vsyncpa [#allocation8], 1 }
0x1087   :  { %7745 = vsyncpa [#allocation11], 1 }
0x1088   :  { %7746 = vsyncpa [#allocation14], 1 }
0x1089   :  { %7747 = vsyncpa [#allocation17], 1 }
0x108a   :  { %7748 = vsyncpa [#allocation20], 1 }
0x108b   :  { %7749 = vsyncpa [#allocation23], 1 }
0x108c   :  { %7750 = vsyncpa [#allocation26], 1 }
0x108d   :  { %7751 = vsyncpa [#allocation5], 1 }

</bundles_post_ra>
